<compile_context>
chip_gen: v5e
topology: v5e:2x2
jax: 0.10.0
libtpu: 0.0.40
codegen_flags: <defaults>
</compile_context>

<pallas_src>
import jax
import jax.numpy as jnp
from jax.experimental import pallas as pl
from jax.experimental.pallas import tpu as pltpu  # noqa: F401  (TPU backend assumed)


# ----------------------------------------------------------------------------- fused kernel
def _fused_vae_kernel(x_ref, wenc_ref, benc_ref, wmu_ref, bmu_ref, wlv_ref, blv_ref,
                      eps_ref, wdec_ref, bdec_ref, y_ref, mu_ref, lv_ref):
    """Whole ConvVAE forward on VMEM-resident operands.

    x_ref    : (B, C*H*W)        f32   flattened NCHW input
    wenc_ref : (C*H*W, Oc*Ho*Wo) bf16  conv folded to dense matrix (output order (oc,oh,ow))
    benc_ref : (1, Oc*Ho*Wo)     f32
    wmu/wlv  : (Oc*Ho*Wo, L)     bf16  fc head split into mu / logvar column blocks
    bmu/blv  : (1, L)            f32
    eps_ref  : (B, L)            f32
    wdec_ref : (L, n_dec*C*H*W)  bf16  decoders concatenated along N (lane-dense)
    bdec_ref : (1, n_dec*C*H*W)  f32
    outputs  : y (B, n_dec*C*H*W) f32, mu (B, L) f32, logvar (B, L) f32
    """
    # ---- encoder: conv (dense-folded) + bias + ReLU; bf16 MXU inputs, f32 accumulate ----
    xb = x_ref[...].astype(jnp.bfloat16)
    feat = jnp.dot(xb, wenc_ref[...], preferred_element_type=jnp.float32) + benc_ref[...]
    feat = jnp.maximum(feat, 0.0)                       # f32 elementwise (VPU)
    featb = feat.astype(jnp.bfloat16)

    # ---- encoder head: mu / logvar (weights pre-split, so no in-kernel lane slicing) ----
    mu = jnp.dot(featb, wmu_ref[...], preferred_element_type=jnp.float32) + bmu_ref[...]
    logvar = jnp.dot(featb, wlv_ref[...], preferred_element_type=jnp.float32) + blv_ref[...]

    # ---- reparameterize: z = mu + eps * exp(0.5*logvar)  (f32; exp -> EUP slot) ----
    z = mu + eps_ref[...] * jnp.exp(0.5 * logvar)

    # ---- decoders: one concatenated matmul, lane-dense output (multiple of 128) ----
    y = jnp.dot(z.astype(jnp.bfloat16), wdec_ref[...],
                preferred_element_type=jnp.float32) + bdec_ref[...]

    y_ref[...] = y
    mu_ref[...] = mu
    lv_ref[...] = logvar


def _fused_forward(p, x_flat, eps):
    B = x_flat.shape[0]
    L = p["w_mu"].shape[1]
    n_out = p["w_dec"].shape[1]

    inputs = (x_flat, p["w_enc"], p["b_enc"], p["w_mu"], p["b_mu"],
              p["w_lv"], p["b_lv"], eps, p["w_dec"], p["b_dec"])

    def full_spec(a):
        # Whole-array block, gridless call -> single DMA per operand, no tiling.
        return pl.BlockSpec(a.shape, lambda: (0, 0))

    return pl.pallas_call(
        _fused_vae_kernel,
        out_shape=(jax.ShapeDtypeStruct((B, n_out), jnp.float32),
                   jax.ShapeDtypeStruct((B, L), jnp.float32),
                   jax.ShapeDtypeStruct((B, L), jnp.float32)),
        in_specs=[full_spec(a) for a in inputs],
        out_specs=(pl.BlockSpec((B, n_out), lambda: (0, 0)),
                   pl.BlockSpec((B, L), lambda: (0, 0)),
                   pl.BlockSpec((B, L), lambda: (0, 0))),
    )(*inputs)


@jax.jit
def conv_vae_forward(prepped, x, eps):
    """Forward pass matching ConvVAE.forward; x is NCHW float32, eps is the reparam noise."""
    B, C, H, W = x.shape
    x_flat = x.reshape(B, -1).astype(jnp.float32)            # PyTorch (c, h, w) flatten order
    y, mu, logvar = _fused_forward(prepped, x_flat, eps)
    n_dec = y.shape[1] // (C * H * W)
    y5 = y.reshape(B, n_dec, C, H, W)
    outs = [y5[:, i] for i in range(n_dec)]
    return outs, mu, logvar


# ----------------------------------------------------------------------------- parameter prep
def im2col_3x3_s2_p1(x):
    """x: [B, C, H, W] (NCHW) -> patches [B*Ho*Wo, C*3*3], stride 2, pad 1. (prep/reference only)"""
    B, C, H, W = x.shape
    Ho, Wo = H // 2, W // 2
    xp = jnp.pad(x, ((0, 0), (0, 0), (1, 1), (1, 1)))
    cols = []
    for kh in range(3):
        for kw in range(3):
            cols.append(xp[:, :, kh:kh + 2 * Ho:2, kw:kw + 2 * Wo:2])  # (B, C, Ho, Wo)
    patches = jnp.stack(cols, axis=2)                 # (B, C, 9, Ho, Wo)
    patches = patches.transpose(0, 3, 4, 1, 2)        # (B, Ho, Wo, C, 9)
    return patches.reshape(B * Ho * Wo, C * 9), (B, Ho, Wo)


def conv3x3_s2_p1_to_dense(conv_w, H, W):
    """Fold Conv2d(k=3, s=2, p=1) into an equivalent dense matrix (run once at init).

    Returns D of shape (C*H*W, Oc*Ho*Wo) such that
      (x_flat @ D)[b, oc*Ho*Wo + oh*Wo + ow] == conv2d(x, conv_w)[b, oc, oh, ow]
    i.e. output ordering is already PyTorch's flatten(C_out, Ho, Wo) order, so the
    downstream fc weight applies unchanged (permutation folded into the weights).
    """
    Oc, C, _, _ = conv_w.shape
    Ho, Wo = H // 2, W // 2
    eye = jnp.eye(C * H * W, dtype=jnp.float32).reshape(C * H * W, C, H, W)
    patches, _ = im2col_3x3_s2_p1(eye)                      # (CHW*Ho*Wo, C*9)
    w2d = conv_w.reshape(Oc, -1).T                          # (C*9, Oc)
    y = (patches @ w2d).reshape(C * H * W, Ho, Wo, Oc)      # conv of each unit image
    y = y.transpose(0, 3, 1, 2)                             # (CHW, Oc, Ho, Wo)
    return y.reshape(C * H * W, Oc * Ho * Wo)


def prepare_params(params, H, W):
    """Precompute kernel-ready weights (dense-folded conv, split fc, concat decoders, bf16)."""
    conv_w, conv_b = params["conv_w"], params["conv_b"]
    Ho, Wo = H // 2, W // 2
    latent = params["latent_dim"]

    w_enc = conv3x3_s2_p1_to_dense(conv_w, H, W)                       # (C*H*W, Oc*Ho*Wo)
    b_enc = jnp.repeat(conv_b, Ho * Wo).reshape(1, -1)                 # bias over (oc, oh, ow)

    fc_w, fc_b = params["fc_w"], params["fc_b"]
    w_mu, w_lv = fc_w[:, :latent], fc_w[:, latent:2 * latent]
    b_mu, b_lv = fc_b[:latent].reshape(1, -1), fc_b[latent:2 * latent].reshape(1, -1)

    w_dec = jnp.concatenate([dw for dw, _ in params["decoders"]], axis=1)   # (latent, n_dec*CHW)
    b_dec = jnp.concatenate([db for _, db in params["decoders"]]).reshape(1, -1)

    return {
        "w_enc": w_enc.astype(jnp.bfloat16), "b_enc": b_enc.astype(jnp.float32),
        "w_mu": w_mu.astype(jnp.bfloat16), "b_mu": b_mu.astype(jnp.float32),
        "w_lv": w_lv.astype(jnp.bfloat16), "b_lv": b_lv.astype(jnp.float32),
        "w_dec": w_dec.astype(jnp.bfloat16), "b_dec": b_dec.astype(jnp.float32),
    }


def init_params(key, *, in_c=4, hw=16, conv_c=16, latent_dim=32, n_decoders=2):
    ks = jax.random.split(key, 6 + 2 * n_decoders)
    Ho = hw // 2
    flat = conv_c * Ho * Ho
    params = {
        "latent_dim": latent_dim,
        "conv_w": 0.05 * jax.random.normal(ks[0], (conv_c, in_c, 3, 3), jnp.float32),
        "conv_b": 0.01 * jax.random.normal(ks[1], (conv_c,), jnp.float32),
        "fc_w": 0.05 * jax.random.normal(ks[2], (flat, 2 * latent_dim), jnp.float32),
        "fc_b": 0.01 * jax.random.normal(ks[3], (2 * latent_dim,), jnp.float32),
        "decoders": [],
    }
    for i in range(n_decoders):
        dw = 0.05 * jax.random.normal(ks[6 + 2 * i], (latent_dim, in_c * hw * hw), jnp.float32)
        db = 0.01 * jax.random.normal(ks[7 + 2 * i], (in_c * hw * hw,), jnp.float32)
        params["decoders"].append((dw, db))
    return params


# ----------------------------------------------------------------------------- f32 reference
def conv_vae_reference(params, x, eps):
    """Pure-JAX f32 reference with the original conv lowering (PyTorch semantics)."""
    B = x.shape[0]
    latent = params["latent_dim"]
    patches, (_, Ho, Wo) = im2col_3x3_s2_p1(x)
    Oc = params["conv_w"].shape[0]
    w2d = params["conv_w"].reshape(Oc, -1).T
    conv = jnp.maximum(patches @ w2d + params["conv_b"], 0.0)
    feat = conv.reshape(B, Ho, Wo, Oc).transpose(0, 3, 1, 2).reshape(B, -1)
    h = feat @ params["fc_w"] + params["fc_b"]
    mu, logvar = h[:, :latent], h[:, latent:2 * latent]
    z = mu + eps * jnp.exp(0.5 * logvar)
    outs = [(z @ dw + db).reshape(x.shape) for dw, db in params["decoders"]]
    return outs, mu, logvar


# ----------------------------------------------------------------------------- main
if __name__ == "__main__":
    key = jax.random.PRNGKey(0)
    k_x, k_eps, k_p = jax.random.split(key, 3)

    B, C, H, W = 2, 4, 16, 16
    latent_dim = 32
    x = jax.random.normal(k_x, (B, C, H, W), jnp.float32)
    eps = jax.random.normal(k_eps, (B, latent_dim), jnp.float32)   # torch.randn_like(std)

    params = init_params(k_p, in_c=C, hw=H, conv_c=16, latent_dim=latent_dim, n_decoders=2)
    prepped = prepare_params(params, H, W)

    outs, mu, logvar = conv_vae_forward(prepped, x, eps)
    outs = [jax.block_until_ready(o) for o in outs]
    jax.block_until_ready(mu)
    jax.block_until_ready(logvar)

    assert mu.shape == (B, latent_dim) and logvar.shape == (B, latent_dim)
    assert all(o.shape == (B, C, H, W) for o in outs)

    # Guard against silent permutation/ordering bugs (tolerances generous for bf16 matmuls).
    r_outs, r_mu, r_lv = conv_vae_reference(params, x, eps)
    assert jnp.allclose(mu, r_mu, rtol=0.1, atol=0.1)
    assert jnp.allclose(logvar, r_lv, rtol=0.1, atol=0.1)
    for o, r in zip(outs, r_outs):
        assert jnp.allclose(o, r, rtol=0.1, atol=0.1)

    print("KERNEL_OK")
</pallas_src>

<mosaic_0001>
module attributes {stable_mosaic.version = 11 : i64} {
  func.func @_fused_vae_kernel(%arg0: memref<2x1024xf32, #tpu.memory_space<vmem>>, %arg1: memref<1024x1024xbf16, #tpu.memory_space<vmem>>, %arg2: memref<1x1024xf32, #tpu.memory_space<vmem>>, %arg3: memref<1024x32xbf16, #tpu.memory_space<vmem>>, %arg4: memref<1x32xf32, #tpu.memory_space<vmem>>, %arg5: memref<1024x32xbf16, #tpu.memory_space<vmem>>, %arg6: memref<1x32xf32, #tpu.memory_space<vmem>>, %arg7: memref<2x32xf32, #tpu.memory_space<vmem>>, %arg8: memref<32x2048xbf16, #tpu.memory_space<vmem>>, %arg9: memref<1x2048xf32, #tpu.memory_space<vmem>>, %arg10: memref<2x2048xf32, #tpu.memory_space<vmem>>, %arg11: memref<2x32xf32, #tpu.memory_space<vmem>>, %arg12: memref<2x32xf32, #tpu.memory_space<vmem>>) attributes {dimension_semantics = [], scalar_prefetch = 0 : i64, scratch_operands = 0 : i64, tpu.core_type = #tpu.core_type<tc>} {
    %c0 = arith.constant 0 : index
    %c0_0 = arith.constant 0 : index
    %0 = vector.load %arg0[%c0, %c0_0] : memref<2x1024xf32, #tpu.memory_space<vmem>>, vector<2x1024xf32>
    %1 = arith.truncf %0 : vector<2x1024xf32> to vector<2x1024xbf16>
    %c0_1 = arith.constant 0 : index
    %c0_2 = arith.constant 0 : index
    %2 = vector.load %arg1[%c0_1, %c0_2] : memref<1024x1024xbf16, #tpu.memory_space<vmem>>, vector<1024x1024xbf16>
    %cst = arith.constant dense<0.000000e+00> : vector<2x1024xf32>
    %3 = tpu.matmul %1, %2, %cst {dimension_numbers = #tpu.dot_dimension_numbers<[1], [0], [0], [1], [0, 0, 1, 1], [], []>} : vector<2x1024xbf16>, vector<1024x1024xbf16>, vector<2x1024xf32> -> vector<2x1024xf32>
    %c0_3 = arith.constant 0 : index
    %c0_4 = arith.constant 0 : index
    %4 = vector.load %arg2[%c0_3, %c0_4] : memref<1x1024xf32, #tpu.memory_space<vmem>>, vector<1x1024xf32>
    %5 = vector.broadcast %4 : vector<1x1024xf32> to vector<2x1024xf32>
    %6 = arith.addf %3, %5 : vector<2x1024xf32>
    %cst_5 = arith.constant 0.000000e+00 : f32
    %7 = vector.broadcast %cst_5 : f32 to vector<2x1024xf32>
    %8 = arith.maximumf %6, %7 : vector<2x1024xf32>
    %9 = arith.truncf %8 : vector<2x1024xf32> to vector<2x1024xbf16>
    %c0_6 = arith.constant 0 : index
    %c0_7 = arith.constant 0 : index
    %10 = vector.load %arg3[%c0_6, %c0_7] : memref<1024x32xbf16, #tpu.memory_space<vmem>>, vector<1024x32xbf16>
    %cst_8 = arith.constant dense<0.000000e+00> : vector<2x32xf32>
    %11 = tpu.matmul %9, %10, %cst_8 {dimension_numbers = #tpu.dot_dimension_numbers<[1], [0], [0], [1], [0, 0, 1, 1], [], []>} : vector<2x1024xbf16>, vector<1024x32xbf16>, vector<2x32xf32> -> vector<2x32xf32>
    %c0_9 = arith.constant 0 : index
    %c0_10 = arith.constant 0 : index
    %12 = vector.load %arg4[%c0_9, %c0_10] : memref<1x32xf32, #tpu.memory_space<vmem>>, vector<1x32xf32>
    %13 = vector.broadcast %12 : vector<1x32xf32> to vector<2x32xf32>
    %14 = arith.addf %11, %13 : vector<2x32xf32>
    %c0_11 = arith.constant 0 : index
    %c0_12 = arith.constant 0 : index
    %15 = vector.load %arg5[%c0_11, %c0_12] : memref<1024x32xbf16, #tpu.memory_space<vmem>>, vector<1024x32xbf16>
    %cst_13 = arith.constant dense<0.000000e+00> : vector<2x32xf32>
    %16 = tpu.matmul %9, %15, %cst_13 {dimension_numbers = #tpu.dot_dimension_numbers<[1], [0], [0], [1], [0, 0, 1, 1], [], []>} : vector<2x1024xbf16>, vector<1024x32xbf16>, vector<2x32xf32> -> vector<2x32xf32>
    %c0_14 = arith.constant 0 : index
    %c0_15 = arith.constant 0 : index
    %17 = vector.load %arg6[%c0_14, %c0_15] : memref<1x32xf32, #tpu.memory_space<vmem>>, vector<1x32xf32>
    %18 = vector.broadcast %17 : vector<1x32xf32> to vector<2x32xf32>
    %19 = arith.addf %16, %18 : vector<2x32xf32>
    %c0_16 = arith.constant 0 : index
    %c0_17 = arith.constant 0 : index
    %20 = vector.load %arg7[%c0_16, %c0_17] : memref<2x32xf32, #tpu.memory_space<vmem>>, vector<2x32xf32>
    %cst_18 = arith.constant 5.000000e-01 : f32
    %21 = vector.broadcast %cst_18 : f32 to vector<2x32xf32>
    %22 = arith.mulf %21, %19 : vector<2x32xf32>
    %23 = math.exp %22 : vector<2x32xf32>
    %24 = arith.mulf %20, %23 : vector<2x32xf32>
    %25 = arith.addf %14, %24 : vector<2x32xf32>
    %26 = arith.truncf %25 : vector<2x32xf32> to vector<2x32xbf16>
    %c0_19 = arith.constant 0 : index
    %c0_20 = arith.constant 0 : index
    %27 = vector.load %arg8[%c0_19, %c0_20] : memref<32x2048xbf16, #tpu.memory_space<vmem>>, vector<32x2048xbf16>
    %cst_21 = arith.constant dense<0.000000e+00> : vector<2x2048xf32>
    %28 = tpu.matmul %26, %27, %cst_21 {dimension_numbers = #tpu.dot_dimension_numbers<[1], [0], [0], [1], [0, 0, 1, 1], [], []>} : vector<2x32xbf16>, vector<32x2048xbf16>, vector<2x2048xf32> -> vector<2x2048xf32>
    %c0_22 = arith.constant 0 : index
    %c0_23 = arith.constant 0 : index
    %29 = vector.load %arg9[%c0_22, %c0_23] : memref<1x2048xf32, #tpu.memory_space<vmem>>, vector<1x2048xf32>
    %30 = vector.broadcast %29 : vector<1x2048xf32> to vector<2x2048xf32>
    %31 = arith.addf %28, %30 : vector<2x2048xf32>
    %c0_24 = arith.constant 0 : index
    %c0_25 = arith.constant 0 : index
    %32 = vector.load %arg10[%c0_24, %c0_25] : memref<2x2048xf32, #tpu.memory_space<vmem>>, vector<2x2048xf32>
    tpu.vector_store %arg10[%c0_24, %c0_25], %31 {strides = array<i32>} : memref<2x2048xf32, #tpu.memory_space<vmem>>, vector<2x2048xf32>,
    %c0_26 = arith.constant 0 : index
    %c0_27 = arith.constant 0 : index
    %33 = vector.load %arg11[%c0_26, %c0_27] : memref<2x32xf32, #tpu.memory_space<vmem>>, vector<2x32xf32>
    tpu.vector_store %arg11[%c0_26, %c0_27], %14 {strides = array<i32>} : memref<2x32xf32, #tpu.memory_space<vmem>>, vector<2x32xf32>,
    %c0_28 = arith.constant 0 : index
    %c0_29 = arith.constant 0 : index
    %34 = vector.load %arg12[%c0_28, %c0_29] : memref<2x32xf32, #tpu.memory_space<vmem>>, vector<2x32xf32>
    tpu.vector_store %arg12[%c0_28, %c0_29], %19 {strides = array<i32>} : memref<2x32xf32, #tpu.memory_space<vmem>>, vector<2x32xf32>,
    return
  }
}

</mosaic_0001>

<bundles_post_ra>
// kernel: conv_vae_forward.1
= control target key start
LH: loop header
LB: loop body
LE: loop exit
PB: predicated region body
PF: predicated region fallthrough
CT: control target
= control target key end

     0   :  { %18 = vsyncpa [#allocation3], 0  ;;  %s10254_s0 = inlined_call_operand.vmem [shape: f32[2,1024], index: 0, kind: input, shape index: {}]   ;;  %s10255_s1 = inlined_call_operand.hbm [shape: bf16[1024,1024], index: 1, kind: input, shape index: {}]   ;;  %s10256_s2 = inlined_call_operand.hbm [shape: f32[1,1024], index: 2, kind: input, shape index: {}]   ;;  %s10257_s3 = inlined_call_operand.vmem [shape: bf16[1024,32], index: 3, kind: input, shape index: {}]   ;;  %s10258_s4 = inlined_call_operand.hbm [shape: f32[1,32], index: 4, kind: input, shape index: {}]   ;;  %s10259_s5 = inlined_call_operand.vmem [shape: bf16[1024,32], index: 5, kind: input, shape index: {}]   ;;  %s10260_s6 = inlined_call_operand.hbm [shape: f32[1,32], index: 6, kind: input, shape index: {}]   ;;  %s10261_s7 = inlined_call_operand.hbm [shape: f32[2,32], index: 7, kind: input, shape index: {}]   ;;  %s10262_s8 = inlined_call_operand.hbm [shape: bf16[32,2048], index: 8, kind: input, shape index: {}]   ;;  %s10263_s9 = inlined_call_operand.hbm [shape: f32[1,2048], index: 9, kind: input, shape index: {}]   ;;  %s10264_s10 = inlined_call_operand.vmem [shape: f32[2,2048], index: 10, kind: output, shape index: {0}]   ;;  %s10265_s11 = inlined_call_operand.hbm [shape: f32[2,32], index: 11, kind: output, shape index: {1}]   ;;  %s10266_s12 = inlined_call_operand.hbm [shape: f32[2,32], index: 12, kind: output, shape index: {2}]  }
   0x1   :  { %19 = vsyncpa [#allocation6], 0 }
   0x2   :  { %20 = vsyncpa [#allocation9], 0 }
   0x3   :  { %21 = vsyncpa [#allocation12], 0 }
   0x4   :  { %22 = vsyncpa [#allocation4], 0  ;;  %s44_s23 = sshll.u32 %s10256_s2, 4  ;;  %s45_s23 = int_to_ptr.hbm [resolvable:$true] %s44_s23 }
   0x5   :  { %23 = vsyncpa [#allocation16], 0  ;;  %s9514_s24 = smov [#allocation5]   ;;  %s70_s28 = sshll.u32 %s10260_s6, 4  ;;  %s71_s28 = int_to_ptr.hbm [resolvable:$true] %s70_s28 }
   0x6   :  { %s46_s25 = sshll.u32 %s9514_s24, 4  ;;  %s9515_s29 = smov [#allocation8]   ;;  %s47_s25 = int_to_ptr.vmem [resolvable:$true] %s46_s25 }
   0x7   :  { %49 = dma.hbm_to_vmem [thread:$0]  %s45_s23, 128, %s47_s25, [#allocation6]  }
   0x8   :  { %s72_s30 = sshll.u32 %s9515_s29, 4  ;;  %s91_s15 = sshll.u32 %s10262_s8, 4  ;;  %s73_s30 = int_to_ptr.vmem [resolvable:$true] %s72_s30  ;;  %s92_s15 = int_to_ptr.hbm [resolvable:$true] %s91_s15 }
   0x9   :  { %75 = dma.hbm_to_vmem [thread:$0]  %s71_s28, 16, %s73_s30, [#allocation9]  }
   0xa   :  { %s9516_s2 = smov [#allocation11]   ;;  %s30_s19 = sshll.u32 %s10255_s1, 4  ;;  %s31_s19 = int_to_ptr.hbm [resolvable:$true] %s30_s19 }
   0xb   :  { %s93_s16 = sshll.u32 %s9516_s2, 4  ;;  %s9517_s20 = smov 1024   ;;  %s94_s16 = int_to_ptr.vmem [resolvable:$true] %s93_s16 }
   0xc   :  { %s9518_s6 = smov 64   ;;  %s9519_s21 = smov [#allocation2]  }
   0xd   :  { %99 = dma.hbm_to_vmem [thread:$0]  %s92_s15, 4096, %s94_s16, [#allocation12], %s9517_s20, %s9517_s20, %s9518_s6  }
   0xe   :  { %s32_s22 = sshll.u32 %s9519_s21, 4  ;;  %s9520_s23 = smov 512   ;;  %s33_s22 = int_to_ptr.vmem [resolvable:$true] %s32_s22 }
   0xf   :  { %s9521_s24 = smov 32   ;;  %s57_s26 = sshll.u32 %s10258_s4, 4  ;;  %s58_s26 = int_to_ptr.hbm [resolvable:$true] %s57_s26 }
  0x10   :  { %38 = dma.hbm_to_vmem [thread:$0]  %s31_s19, 65536, %s33_s22, [#allocation3], %s9520_s23, %s9520_s23, %s9521_s24  }
  0x11   :  { %s9522_s27 = smov [#allocation7]   ;;  %s81_s30 = sshll.u32 %s10261_s7, 4  ;;  %s82_s30 = int_to_ptr.hbm [resolvable:$true] %s81_s30 }
  0x12   :  { %s59_s28 = sshll.u32 %s9522_s27, 4  ;;  %s9523_s13 = smov [#allocation10]   ;;  %s60_s28 = int_to_ptr.vmem [resolvable:$true] %s59_s28 }
  0x13   :  { %62 = dma.hbm_to_vmem [thread:$0]  %s58_s26, 16, %s60_s28, [#allocation6]  }
  0x14   :  { %s83_s14 = sshll.u32 %s9523_s13, 4  ;;  %s105_s16 = sshll.u32 %s10263_s9, 4  ;;  %s84_s14 = int_to_ptr.vmem [resolvable:$true] %s83_s14  ;;  %s106_s16 = int_to_ptr.hbm [resolvable:$true] %s105_s16 }
  0x15   :  { %86 = dma.hbm_to_vmem [thread:$0]  %s82_s30, 32, %s84_s14, [#allocation9]  }
  0x16   :  { %s9524_s4 = smov [#allocation13]  }
  0x17   :  { %s107_s17 = sshll.u32 %s9524_s4, 4  ;;  %s108_s17 = int_to_ptr.vmem [resolvable:$true] %s107_s17 }
  0x18   :  { %110 = dma.hbm_to_vmem [thread:$0]  %s106_s16, 256, %s108_s17, [#allocation12]  }
  0x19   :  { %9502 = dma.done.wait [#allocation3], 65536  }
  0x1a   :  { %9503 = vsyncadd [#allocation3], 4294901760 }
  0x1b   :  { %9504 = dma.done.wait [#allocation6], 144  }
  0x1c   :  { %9505 = vsyncadd [#allocation6], 4294967152 }
  0x1d   :  { %9506 = dma.done.wait [#allocation9], 48  }
  0x1e   :  { %9507 = vsyncadd [#allocation9], 4294967248 }
  0x1f   :  { %9508 = dma.done.wait [#allocation12], 4352  }
  0x20   :  { %9509 = vsyncadd [#allocation12], 4294962944  ;;  %v6116_v0 = vld [vmem:[#allocation2 + $0x1c0] sm:$0xf]  ;;  %vm5847_vm0 = vcmask 254976   ;;  %vm5584_vm1 = vcmask 261120  }
  0x21   :  { %v8654_v1 = vld [vmem:[#allocation2 + $0x1dc] sm:$0xf0]  ;;  %s9526_s7 = smov [#allocation15]   ;;  %vm5824_vm2 = vcmask 1041408   ;;  %vm5826_vm3 = vcmask 1045508   ;;  %vm5828_vm4 = vcmask 1043456  }
  0x22   :  { %v6372_v2 = vld [vmem:[#allocation2 + $0x3c0] sm:$0xf]  ;;  %v6117_v3 = vor.u32 %v8654_v1, %v6116_v0  ;;  %s5868_s9 = sshll.u32 %s9526_s7, 4  ;;  %s5869_s9 = int_to_ptr.vmem [resolvable:$true] %s5868_s9 }
  0x23   :  { %v8718_v4 = vld [vmem:[#allocation2 + $0x3dc] sm:$0xf0] }
  0x24   :  { %v6628_v5 = vld [vmem:[#allocation2 + $0x5c0] sm:$0xf]  ;;  %v6373_v7 = vor.u32 %v8718_v4, %v6372_v2  ;;  %3261 = vmatpush.bf16.msra.mxu0 %v6117_v3 }
  0x25   :  { %v8782_v6 = vld [vmem:[#allocation2 + $0x5dc] sm:$0xf0] }
  0x26   :  { %v6629_v8 = vor.u32 %v8782_v6, %v6628_v5  ;;  %v6884_v9 = vld [vmem:[#allocation2 + $0x7c0] sm:$0xf]  ;;  %3274 = vmatpush.bf16.msra.mxu1 %v6373_v7 }
  0x27   :  { %v8846_v10 = vld [vmem:[#allocation2 + $0x7dc] sm:$0xf0] }
  0x28   :  { %v6084_v11 = vld [vmem:[#allocation2 + $0x180] sm:$0xf]  ;;  %v6885_v12 = vor.u32 %v8846_v10, %v6884_v9  ;;  %3287 = vmatpush.bf16.msra.mxu2 %v6629_v8 }
  0x29   :  { %v8646_v13 = vld [vmem:[#allocation2 + $0x19c] sm:$0xf0] }
  0x2a   :  { %v6340_v14 = vld [vmem:[#allocation2 + $0x380] sm:$0xf]  ;;  %v6085_v16 = vor.u32 %v8646_v13, %v6084_v11  ;;  %3300 = vmatpush.bf16.msra.mxu3 %v6885_v12 }
  0x2b   :  { %v8710_v15 = vld [vmem:[#allocation2 + $0x39c] sm:$0xf0] }
  0x2c   :  { %v6341_v17 = vor.u32 %v8710_v15, %v6340_v14  ;;  %v6596_v18 = vld [vmem:[#allocation2 + $0x580] sm:$0xf]  ;;  %3262 = vmatpush.bf16.msra.mxu0 %v6085_v16 }
  0x2d   :  { %v8774_v19 = vld [vmem:[#allocation2 + $0x59c] sm:$0xf0] }
  0x2e   :  { %v6852_v20 = vld [vmem:[#allocation2 + $0x780] sm:$0xf]  ;;  %v6597_v21 = vor.u32 %v8774_v19, %v6596_v18  ;;  %3275 = vmatpush.bf16.msra.mxu1 %v6341_v17 }
  0x2f   :  { %v8838_v22 = vld [vmem:[#allocation2 + $0x79c] sm:$0xf0] }
  0x30   :  { %v6052_v23 = vld [vmem:[#allocation2 + $0x140] sm:$0xf]  ;;  %v6853_v25 = vor.u32 %v8838_v22, %v6852_v20  ;;  %3288 = vmatpush.bf16.msra.mxu2 %v6597_v21 }
  0x31   :  { %v8638_v24 = vld [vmem:[#allocation2 + $0x15c] sm:$0xf0] }
  0x32   :  { %v6308_v26 = vld [vmem:[#allocation2 + $0x340] sm:$0xf]  ;;  %v6053_v29 = vor.u32 %v8638_v24, %v6052_v23  ;;  %3301 = vmatpush.bf16.msra.mxu3 %v6853_v25 }
  0x33   :  { %v8702_v27 = vld [vmem:[#allocation2 + $0x35c] sm:$0xf0] }
  0x34   :  { %v6564_v28 = vld [vmem:[#allocation2 + $0x540] sm:$0xf]  ;;  %v6309_v33 = vor.u32 %v8702_v27, %v6308_v26  ;;  %3263 = vmatpush.bf16.msra.mxu0 %v6053_v29 }
  0x35   :  { %v8766_v30 = vld [vmem:[#allocation2 + $0x55c] sm:$0xf0] }
  0x36   :  { %v6820_v31 = vld [vmem:[#allocation2 + $0x740] sm:$0xf]  ;;  %v6565_v34 = vor.u32 %v8766_v30, %v6564_v28  ;;  %3276 = vmatpush.bf16.msra.mxu1 %v6309_v33 }
  0x37   :  { %v8830_v32 = vld [vmem:[#allocation2 + $0x75c] sm:$0xf0] }
  0x38   :  { %v6020_v35 = vld [vmem:[#allocation2 + $0x100] sm:$0xf]  ;;  %v6821_v38 = vor.u32 %v8830_v32, %v6820_v31  ;;  %3289 = vmatpush.bf16.msra.mxu2 %v6565_v34 }
  0x39   :  { %v8630_v36 = vld [vmem:[#allocation2 + $0x11c] sm:$0xf0] }
  0x3a   :  { %v6276_v37 = vld [vmem:[#allocation2 + $0x300] sm:$0xf]  ;;  %v6021_v44 = vor.u32 %v8630_v36, %v6020_v35  ;;  %3302 = vmatpush.bf16.msra.mxu3 %v6821_v38 }
  0x3b   :  { %v8694_v39 = vld [vmem:[#allocation2 + $0x31c] sm:$0xf0] }
  0x3c   :  { %v6532_v40 = vld [vmem:[#allocation2 + $0x500] sm:$0xf]  ;;  %v6277_v45 = vor.u32 %v8694_v39, %v6276_v37  ;;  %3264 = vmatpush.bf16.msra.mxu0 %v6021_v44 }
  0x3d   :  { %v8758_v41 = vld [vmem:[#allocation2 + $0x51c] sm:$0xf0] }
  0x3e   :  { %v6788_v42 = vld [vmem:[#allocation2 + $0x700] sm:$0xf]  ;;  %v6533_v46 = vor.u32 %v8758_v41, %v6532_v40  ;;  %3277 = vmatpush.bf16.msra.mxu1 %v6277_v45 }
  0x3f   :  { %v8822_v43 = vld [vmem:[#allocation2 + $0x71c] sm:$0xf0] }
  0x40   :  { %v5988_v47 = vld [vmem:[#allocation2 + $0xc0] sm:$0xf]  ;;  %v6789_v50 = vor.u32 %v8822_v43, %v6788_v42  ;;  %3290 = vmatpush.bf16.msra.mxu2 %v6533_v46 }
  0x41   :  { %v8622_v48 = vld [vmem:[#allocation2 + $0xdc] sm:$0xf0] }
  0x42   :  { %v6244_v49 = vld [vmem:[#allocation2 + $0x2c0] sm:$0xf]  ;;  %v5989_v56 = vor.u32 %v8622_v48, %v5988_v47  ;;  %3303 = vmatpush.bf16.msra.mxu3 %v6789_v50 }
  0x43   :  { %v8686_v51 = vld [vmem:[#allocation2 + $0x2dc] sm:$0xf0] }
  0x44   :  { %v6500_v52 = vld [vmem:[#allocation2 + $0x4c0] sm:$0xf]  ;;  %v6245_v57 = vor.u32 %v8686_v51, %v6244_v49  ;;  %3265 = vmatpush.bf16.msra.mxu0 %v5989_v56 }
  0x45   :  { %v8750_v53 = vld [vmem:[#allocation2 + $0x4dc] sm:$0xf0] }
  0x46   :  { %v6756_v54 = vld [vmem:[#allocation2 + $0x6c0] sm:$0xf]  ;;  %v6501_v58 = vor.u32 %v8750_v53, %v6500_v52  ;;  %3278 = vmatpush.bf16.msra.mxu1 %v6245_v57 }
  0x47   :  { %v8814_v55 = vld [vmem:[#allocation2 + $0x6dc] sm:$0xf0] }
  0x48   :  { %v5956_v59 = vld [vmem:[#allocation2 + $0x80] sm:$0xf]  ;;  %v6757_v62 = vor.u32 %v8814_v55, %v6756_v54  ;;  %3291 = vmatpush.bf16.msra.mxu2 %v6501_v58 }
  0x49   :  { %v8614_v60 = vld [vmem:[#allocation2 + $0x9c] sm:$0xf0] }
  0x4a   :  { %v6212_v61 = vld [vmem:[#allocation2 + $0x280] sm:$0xf]  ;;  %v5957_v4 = vor.u32 %v8614_v60, %v5956_v59  ;;  %3304 = vmatpush.bf16.msra.mxu3 %v6757_v62 }
  0x4b   :  { %v8678_v63 = vld [vmem:[#allocation2 + $0x29c] sm:$0xf0] }
  0x4c   :  { %v6468_v0 = vld [vmem:[#allocation2 + $0x480] sm:$0xf]  ;;  %v6213_v5 = vor.u32 %v8678_v63, %v6212_v61  ;;  %3266 = vmatpush.bf16.msra.mxu0 %v5957_v4 }
  0x4d   :  { %v8742_v1 = vld [vmem:[#allocation2 + $0x49c] sm:$0xf0] }
  0x4e   :  { %v6724_v2 = vld [vmem:[#allocation2 + $0x680] sm:$0xf]  ;;  %v6469_v6 = vor.u32 %v8742_v1, %v6468_v0  ;;  %3279 = vmatpush.bf16.msra.mxu1 %v6213_v5 }
  0x4f   :  { %v8806_v3 = vld [vmem:[#allocation2 + $0x69c] sm:$0xf0] }
  0x50   :  { %v5924_v7 = vld [vmem:[#allocation2 + $0x40] sm:$0xf]  ;;  %v6725_v10 = vor.u32 %v8806_v3, %v6724_v2  ;;  %3292 = vmatpush.bf16.msra.mxu2 %v6469_v6  ;;  %v140_v2 = vld [vmem:[%s10254_s0] sm:$0xff] }
  0x51   :  { %v8606_v8 = vld [vmem:[#allocation2 + $0x5c] sm:$0xf0]  ;;  %144 = vst [vmem:[#allocation1] ss:$4 sm:$0xff] %v140_v2 }
  0x52   :  { %v6180_v9 = vld [vmem:[#allocation2 + $0x240] sm:$0xf]  ;;  %v5925_v16 = vor.u32 %v8606_v8, %v5924_v7  ;;  %3305 = vmatpush.bf16.msra.mxu3 %v6725_v10 }
  0x53   :  { %v8670_v11 = vld [vmem:[#allocation2 + $0x25c] sm:$0xf0] }
  0x54   :  { %v6436_v12 = vld [vmem:[#allocation2 + $0x440] sm:$0xf]  ;;  %v6181_v19 = vor.u32 %v8670_v11, %v6180_v9  ;;  %3267 = vmatpush.bf16.msra.mxu0 %v5925_v16 }
  0x55   :  { %v8734_v13 = vld [vmem:[#allocation2 + $0x45c] sm:$0xf0] }
  0x56   :  { %v6692_v14 = vld [vmem:[#allocation2 + $0x640] sm:$0xf]  ;;  %v6437_v20 = vor.u32 %v8734_v13, %v6436_v12  ;;  %3280 = vmatpush.bf16.msra.mxu1 %v6181_v19 }
  0x57   :  { %v8798_v15 = vld [vmem:[#allocation2 + $0x65c] sm:$0xf0] }
  0x58   :  { %v5892_v17 = vld [vmem:[#allocation2] sm:$0xf]  ;;  %v6693_v24 = vor.u32 %v8798_v15, %v6692_v14  ;;  %3293 = vmatpush.bf16.msra.mxu2 %v6437_v20 }
  0x59   :  { %v8598_v18 = vld [vmem:[#allocation2 + $0x1c] sm:$0xf0] }
  0x5a   :  { %v6148_v21 = vld [vmem:[#allocation2 + $0x200] sm:$0xf]  ;;  %v5893_v31 = vor.u32 %v8598_v18, %v5892_v17  ;;  %3306 = vmatpush.bf16.msra.mxu3 %v6693_v24 }
  0x5b   :  { %v8662_v22 = vld [vmem:[#allocation2 + $0x21c] sm:$0xf0] }
  0x5c   :  { %v6404_v23 = vld [vmem:[#allocation2 + $0x400] sm:$0xf]  ;;  %v6149_v35 = vor.u32 %v8662_v22, %v6148_v21  ;;  %3268 = vmatpush.bf16.msra.mxu0 %v5893_v31  ;;  %v147_v31 = vld.sshfl [vmem:[#allocation1] sm:$0xff pattern:$0x73625140] }
  0x5d   :  { %v8726_v25 = vld [vmem:[#allocation2 + $0x41c] sm:$0xf0] }
  0x5e   :  { %v6660_v26 = vld [vmem:[#allocation2 + $0x600] sm:$0xf]  ;;  %v6405_v36 = vor.u32 %v8726_v25, %v6404_v23  ;;  %3281 = vmatpush.bf16.msra.mxu1 %v6149_v35  ;;  %v150_v35 = vld.sshfl [vmem:[#allocation1 + $0x18] sm:$0xff pattern:$0x73625140] }
  0x5f   :  { %v8790_v27 = vld [vmem:[#allocation2 + $0x61c] sm:$0xf0] }
  0x60   :  { %v7140_v28 = vld [vmem:[#allocation2 + $0x9c0] sm:$0xf]  ;;  %v6661_v39 = vor.u32 %v8790_v27, %v6660_v26  ;;  %3294 = vmatpush.bf16.msra.mxu2 %v6405_v36 }
  0x61   :  { %v8910_v29 = vld [vmem:[#allocation2 + $0x9dc] sm:$0xf0] }
  0x62   :  { %v7396_v30 = vld [vmem:[#allocation2 + $0xbc0] sm:$0xf]  ;;  %v7141_v40 = vor.u32 %v8910_v29, %v7140_v28  ;;  %3307 = vmatpush.bf16.msra.mxu3 %v6661_v39 }
  0x63   :  { %v8974_v32 = vld [vmem:[#allocation2 + $0xbdc] sm:$0xf0] }
  0x64   :  { %v7652_v33 = vld [vmem:[#allocation2 + $0xdc0] sm:$0xf]  ;;  %v7397_v41 = vor.u32 %v8974_v32, %v7396_v30  ;;  %3313 = vmatpush.bf16.msrb.mxu0 %v7141_v40  ;;  %v149_v30 = vld.sshfl [vmem:[#allocation1 + $0x10] sm:$0xff pattern:$0x73625140] }
  0x65   :  { %v9038_v34 = vld [vmem:[#allocation2 + $0xddc] sm:$0xf0] }
  0x66   :  { %v7908_v37 = vld [vmem:[#allocation2 + $0xfc0] sm:$0xf]  ;;  %v7653_v42 = vor.u32 %v9038_v34, %v7652_v33  ;;  %3326 = vmatpush.bf16.msrb.mxu1 %v7397_v41  ;;  %v9616_v33 = vpack.c.bf16 %v149_v30, %v149_v30  ;;  %v9618_v34 = vpack.c.bf16 %v147_v31, %v147_v31  ;;  %v9620_v41 = vpack.c.bf16 %v150_v35, %v150_v35  ;;  %v8770_v30 = vld [vmem:[#allocation2 + $0x584] sm:$0xf] }
  0x67   :  { %v9102_v38 = vld [vmem:[#allocation2 + $0xfdc] sm:$0xf0]  ;;  %v6598_v31 = vld [vmem:[#allocation2 + $0x5a0] sm:$0xf0] }
  0x68   :  { %v7108_v43 = vld [vmem:[#allocation2 + $0x980] sm:$0xf]  ;;  %v7909_v46 = vor.u32 %v9102_v38, %v7908_v37  ;;  %3339 = vmatpush.bf16.msrb.mxu2 %v7653_v42  ;;  %3269 = vmatmul.bf16.vlgmr.msra.gmra.mxu0 %v9618_v34  ;;  %v8834_v35 = vld [vmem:[#allocation2 + $0x784] sm:$0xf] }
  0x69   :  { %v8902_v44 = vld [vmem:[#allocation2 + $0x99c] sm:$0xf0]  ;;  %3295 = vmatmul.bf16.vlgmr.msra.gmra.mxu2 %v9616_v33  ;;  %3308 = vmatmul.bf16.vlgmr.msra.gmra.mxu3 %v9620_v41 }
  0x6a   :  { %v7364_v45 = vld [vmem:[#allocation2 + $0xb80] sm:$0xf]  ;;  %v7109_v52 = vor.u32 %v8902_v44, %v7108_v43  ;;  %3352 = vmatpush.bf16.msrb.mxu3 %v7909_v46 }
  0x6b   :  { %v8966_v47 = vld [vmem:[#allocation2 + $0xb9c] sm:$0xf0] }
  0x6c   :  { %v7620_v48 = vld [vmem:[#allocation2 + $0xd80] sm:$0xf]  ;;  %v7365_v53 = vor.u32 %v8966_v47, %v7364_v45  ;;  %3314 = vmatpush.bf16.msrb.mxu0 %v7109_v52 }
  0x6d   :  { %v9030_v49 = vld [vmem:[#allocation2 + $0xd9c] sm:$0xf0] }
  0x6e   :  { %v7876_v50 = vld [vmem:[#allocation2 + $0xf80] sm:$0xf]  ;;  %v7621_v54 = vor.u32 %v9030_v49, %v7620_v48  ;;  %3327 = vmatpush.bf16.msrb.mxu1 %v7365_v53 }
  0x6f   :  { %v9094_v51 = vld [vmem:[#allocation2 + $0xf9c] sm:$0xf0] }
  0x70   :  { %v7076_v55 = vld [vmem:[#allocation2 + $0x940] sm:$0xf]  ;;  %v7877_v58 = vor.u32 %v9094_v51, %v7876_v50  ;;  %3340 = vmatpush.bf16.msrb.mxu2 %v7621_v54 }
  0x71   :  { %v8894_v56 = vld [vmem:[#allocation2 + $0x95c] sm:$0xf0] }
  0x72   :  { %v7332_v57 = vld [vmem:[#allocation2 + $0xb40] sm:$0xf]  ;;  %v7077_v0 = vor.u32 %v8894_v56, %v7076_v55  ;;  %3353 = vmatpush.bf16.msrb.mxu3 %v7877_v58 }
  0x73   :  { %v8958_v59 = vld [vmem:[#allocation2 + $0xb5c] sm:$0xf0] }
  0x74   :  { %v7588_v60 = vld [vmem:[#allocation2 + $0xd40] sm:$0xf]  ;;  %v7333_v3 = vor.u32 %v8958_v59, %v7332_v57  ;;  %3315 = vmatpush.bf16.msrb.mxu0 %v7077_v0 }
  0x75   :  { %v9022_v61 = vld [vmem:[#allocation2 + $0xd5c] sm:$0xf0] }
  0x76   :  { %v7844_v62 = vld [vmem:[#allocation2 + $0xf40] sm:$0xf]  ;;  %v7589_v4 = vor.u32 %v9022_v61, %v7588_v60  ;;  %3328 = vmatpush.bf16.msrb.mxu1 %v7333_v3 }
  0x77   :  { %v9086_v63 = vld [vmem:[#allocation2 + $0xf5c] sm:$0xf0] }
  0x78   :  { %v7044_v1 = vld [vmem:[#allocation2 + $0x900] sm:$0xf]  ;;  %v7845_v7 = vor.u32 %v9086_v63, %v7844_v62  ;;  %3341 = vmatpush.bf16.msrb.mxu2 %v7589_v4 }
  0x79   :  { %v8886_v5 = vld [vmem:[#allocation2 + $0x91c] sm:$0xf0] }
  0x7a   :  { %v7300_v6 = vld [vmem:[#allocation2 + $0xb00] sm:$0xf]  ;;  %v7045_v13 = vor.u32 %v8886_v5, %v7044_v1  ;;  %3354 = vmatpush.bf16.msrb.mxu3 %v7845_v7  ;;  %v6118_v7 = vld [vmem:[#allocation2 + $0x1e0] sm:$0xf0] }
  0x7b   :  { %v8950_v8 = vld [vmem:[#allocation2 + $0xb1c] sm:$0xf0] }
  0x7c   :  { %v7556_v9 = vld [vmem:[#allocation2 + $0xd00] sm:$0xf]  ;;  %v7301_v15 = vor.u32 %v8950_v8, %v7300_v6  ;;  %3316 = vmatpush.bf16.msrb.mxu0 %v7045_v13  ;;  %v8650_v6 = vld [vmem:[#allocation2 + $0x1c4] sm:$0xf] }
  0x7d   :  { %v9014_v10 = vld [vmem:[#allocation2 + $0xd1c] sm:$0xf0]  ;;  %v8714_v8 = vld [vmem:[#allocation2 + $0x3c4] sm:$0xf] }
  0x7e   :  { %v7812_v11 = vld [vmem:[#allocation2 + $0xf00] sm:$0xf]  ;;  %v7557_v16 = vor.u32 %v9014_v10, %v7556_v9  ;;  %3329 = vmatpush.bf16.msrb.mxu1 %v7301_v15  ;;  %v6374_v9 = vld [vmem:[#allocation2 + $0x3e0] sm:$0xf0] }
  0x7f   :  { %v9078_v12 = vld [vmem:[#allocation2 + $0xf1c] sm:$0xf0]  ;;  %v8778_v10 = vld [vmem:[#allocation2 + $0x5c4] sm:$0xf] }
  0x80   :  { %v7012_v14 = vld [vmem:[#allocation2 + $0x8c0] sm:$0xf]  ;;  %v7813_v20 = vor.u32 %v9078_v12, %v7812_v11  ;;  %3342 = vmatpush.bf16.msrb.mxu2 %v7557_v16  ;;  %v6630_v12 = vld [vmem:[#allocation2 + $0x5e0] sm:$0xf0] }
  0x81   :  { %v8878_v17 = vld [vmem:[#allocation2 + $0x8dc] sm:$0xf0]  ;;  %v8842_v13 = vld [vmem:[#allocation2 + $0x7c4] sm:$0xf] }
  0x82   :  { %v7268_v18 = vld [vmem:[#allocation2 + $0xac0] sm:$0xf]  ;;  %v7013_v27 = vor.u32 %v8878_v17, %v7012_v14  ;;  %3355 = vmatpush.bf16.msrb.mxu3 %v7813_v20  ;;  %v6886_v14 = vld [vmem:[#allocation2 + $0x7e0] sm:$0xf0] }
  0x83   :  { %v8942_v19 = vld [vmem:[#allocation2 + $0xadc] sm:$0xf0]  ;;  %v8642_v17 = vld [vmem:[#allocation2 + $0x184] sm:$0xf] }
  0x84   :  { %v7524_v21 = vld [vmem:[#allocation2 + $0xcc0] sm:$0xf]  ;;  %v7269_v28 = vor.u32 %v8942_v19, %v7268_v18  ;;  %3317 = vmatpush.bf16.msrb.mxu0 %v7013_v27  ;;  %v6086_v18 = vld [vmem:[#allocation2 + $0x1a0] sm:$0xf0] }
  0x85   :  { %v9006_v22 = vld [vmem:[#allocation2 + $0xcdc] sm:$0xf0] }
  0x86   :  { %v7780_v23 = vld [vmem:[#allocation2 + $0xec0] sm:$0xf]  ;;  %v7525_v32 = vor.u32 %v9006_v22, %v7524_v21  ;;  %3330 = vmatpush.bf16.msrb.mxu1 %v7269_v28  ;;  %v6121_v21 = vor.u32 %v8650_v6, %v6118_v7  ;;  %v6889_v28 = vor.u32 %v8842_v13, %v6886_v14  ;;  %v5990_v6 = vld [vmem:[#allocation2 + $0xe0] sm:$0xf0] }
  0x87   :  { %v9070_v24 = vld [vmem:[#allocation2 + $0xedc] sm:$0xf0]  ;;  %v8682_v7 = vld [vmem:[#allocation2 + $0x2c4] sm:$0xf] }
  0x88   :  { %v6980_v25 = vld [vmem:[#allocation2 + $0x880] sm:$0xf]  ;;  %v7781_v37 = vor.u32 %v9070_v24, %v7780_v23  ;;  %3343 = vmatpush.bf16.msrb.mxu2 %v7525_v32  ;;  %v6377_v24 = vor.u32 %v8714_v8, %v6374_v9  ;;  %v6246_v9 = vld [vmem:[#allocation2 + $0x2e0] sm:$0xf0] }
  0x89   :  { %v8870_v26 = vld [vmem:[#allocation2 + $0x89c] sm:$0xf0]  ;;  %v6758_v13 = vld [vmem:[#allocation2 + $0x6e0] sm:$0xf0] }
  0x8a   :  { %v7236_v29 = vld [vmem:[#allocation2 + $0xa80] sm:$0xf]  ;;  %v6981_v45 = vor.u32 %v8870_v26, %v6980_v25  ;;  %3356 = vmatpush.bf16.msrb.mxu3 %v7781_v37  ;;  %v6633_v25 = vor.u32 %v8778_v10, %v6630_v12  ;;  %v8706_v26 = vld [vmem:[#allocation2 + $0x384] sm:$0xf] }
  0x8b   :  { %v148_v36 = vld.sshfl [vmem:[#allocation1 + $0x8] sm:$0xff pattern:$0x73625140] }
  0x8c   :  { %v8934_v38 = vld [vmem:[#allocation2 + $0xa9c] sm:$0xf0]  ;;  %v9622_v42 = vpack.c.bf16 %v148_v36, %v148_v36  ;;  %3318 = vmatpush.bf16.msrb.mxu0 %v6981_v45  ;;  %v6854_v36 = vld [vmem:[#allocation2 + $0x7a0] sm:$0xf0] }
  0x8d   :  { %v7492_v39 = vld [vmem:[#allocation2 + $0xc80] sm:$0xf]  ;;  %v7237_v48 = vor.u32 %v8934_v38, %v7236_v29  ;;  %v6342_v29 = vld [vmem:[#allocation2 + $0x3a0] sm:$0xf0] }
  0x8e   :  { %v8998_v40 = vld [vmem:[#allocation2 + $0xc9c] sm:$0xf0]  ;;  %3282 = vmatmul.bf16.vlgmr.msra.gmra.mxu1 %v9622_v42  ;;  %v8634_v45 = vld [vmem:[#allocation2 + $0x144] sm:$0xf] }
  0x8f   :  { %v7748_v43 = vld [vmem:[#allocation2 + $0xe80] sm:$0xf]  ;;  %v7493_v49 = vor.u32 %v8998_v40, %v7492_v39  ;;  %3331 = vmatpush.bf16.msrb.mxu1 %v7237_v48  ;;  %v6089_v39 = vor.u32 %v8642_v17, %v6086_v18  ;;  %v6857_v48 = vor.u32 %v8834_v35, %v6854_v36  ;;  %v8746_v10 = vld [vmem:[#allocation2 + $0x4c4] sm:$0xf] }
  0x90   :  { %v9062_v44 = vld [vmem:[#allocation2 + $0xe9c] sm:$0xf0]  ;;  %v8810_v12 = vld [vmem:[#allocation2 + $0x6c4] sm:$0xf] }
  0x91   :  { %v6948_v46 = vld [vmem:[#allocation2 + $0x840] sm:$0xf]  ;;  %v7749_v53 = vor.u32 %v9062_v44, %v7748_v43  ;;  %3344 = vmatpush.bf16.msrb.mxu2 %v7493_v49  ;;  %v6345_v43 = vor.u32 %v8706_v26, %v6342_v29  ;;  %v6601_v44 = vor.u32 %v8770_v30, %v6598_v31  ;;  %v6310_v49 = vld [vmem:[#allocation2 + $0x360] sm:$0xf0] }
  0x92   :  { %v8862_v47 = vld [vmem:[#allocation2 + $0x85c] sm:$0xf0]  ;;  %v8610_v17 = vld [vmem:[#allocation2 + $0x84] sm:$0xf] }
  0x93   :  { %v7204_v50 = vld [vmem:[#allocation2 + $0xa40] sm:$0xf]  ;;  %v6949_v59 = vor.u32 %v8862_v47, %v6948_v46  ;;  %3357 = vmatpush.bf16.msrb.mxu3 %v7749_v53  ;;  %v6054_v46 = vld [vmem:[#allocation2 + $0x160] sm:$0xf0] }
  0x94   :  { %v8926_v51 = vld [vmem:[#allocation2 + $0xa5c] sm:$0xf0]  ;;  %v8698_v47 = vld [vmem:[#allocation2 + $0x344] sm:$0xf] }
  0x95   :  { %v141_v52 = vld [vmem:[%s10254_s0 + $0x8] sm:$0xff]  ;;  %v7205_v63 = vor.u32 %v8926_v51, %v7204_v50  ;;  %3319 = vmatpush.bf16.msrb.mxu0 %v6949_v59  ;;  %s5870_s0 = sshll.u32 %s10266_s12, 4  ;;  %s5871_s0 = int_to_ptr.hbm [resolvable:$true] %s5870_s0 }
  0x96   :  { %v7460_v54 = vld [vmem:[#allocation2 + $0xc40] sm:$0xf]  ;;  %146 = vst [vmem:[#allocation1 + $0x20] ss:$4 sm:$0xff] %v141_v52  ;;  %v8762_v50 = vld [vmem:[#allocation2 + $0x544] sm:$0xf] }
  0x97   :  { %v8990_v55 = vld [vmem:[#allocation2 + $0xc5c] sm:$0xf0]  ;;  %3332 = vmatpush.bf16.msrb.mxu1 %v7205_v63  ;;  %v6566_v51 = vld [vmem:[#allocation2 + $0x560] sm:$0xf0] }
  0x98   :  { %v7716_v56 = vld [vmem:[#allocation2 + $0xe40] sm:$0xf]  ;;  %v7461_v0 = vor.u32 %v8990_v55, %v7460_v54  ;;  %v8826_v52 = vld [vmem:[#allocation2 + $0x744] sm:$0xf]  ;;  %v6057_v54 = vor.u32 %v8634_v45, %v6054_v46  ;;  %v6313_v55 = vor.u32 %v8698_v47, %v6310_v49 }
  0x99   :  { %v9054_v57 = vld [vmem:[#allocation2 + $0xe5c] sm:$0xf0]  ;;  %v6822_v53 = vld [vmem:[#allocation2 + $0x760] sm:$0xf0] }
  0x9a   :  { %v6916_v58 = vld [vmem:[#allocation2 + $0x800] sm:$0xf]  ;;  %v7717_v4 = vor.u32 %v9054_v57, %v7716_v56  ;;  %3345 = vmatpush.bf16.msrb.mxu2 %v7461_v0  ;;  %v6569_v56 = vor.u32 %v8762_v50, %v6566_v51  ;;  %v8626_v57 = vld [vmem:[#allocation2 + $0x104] sm:$0xf] }
  0x9b   :  { %v8854_v60 = vld [vmem:[#allocation2 + $0x81c] sm:$0xf0]  ;;  %v8690_v59 = vld [vmem:[#allocation2 + $0x304] sm:$0xf] }
  0x9c   :  { %v7172_v61 = vld [vmem:[#allocation2 + $0xa00] sm:$0xf]  ;;  %v6917_v11 = vor.u32 %v8854_v60, %v6916_v58  ;;  %3358 = vmatpush.bf16.msrb.mxu3 %v7717_v4  ;;  %v6022_v58 = vld [vmem:[#allocation2 + $0x120] sm:$0xf0]  ;;  %v6825_v60 = vor.u32 %v8826_v52, %v6822_v53 }
  0x9d   :  { %v8918_v62 = vld [vmem:[#allocation2 + $0xa1c] sm:$0xf0]  ;;  %v153_v19 = vld.sshfl [vmem:[#allocation1 + $0x30] sm:$0xff pattern:$0x73625140] }
  0x9e   :  { %v7428_v1 = vld [vmem:[#allocation2 + $0xc00] sm:$0xf]  ;;  %v7173_v15 = vor.u32 %v8918_v62, %v7172_v61  ;;  %v151_v22 = vld.sshfl [vmem:[#allocation1 + $0x20] sm:$0xff pattern:$0x73625140]  ;;  %3320 = vmatpush.bf16.msrb.mxu0 %v6917_v11  ;;  %v9631_v32 = vpack.c.bf16 %v153_v19, %v153_v19 }
  0x9f   :  { %v8982_v2 = vld [vmem:[#allocation2 + $0xc1c] sm:$0xf0]  ;;  %v154_v23 = vld.sshfl [vmem:[#allocation1 + $0x38] sm:$0xff pattern:$0x73625140]  ;;  %v9633_v37 = vpack.c.bf16 %v151_v22, %v151_v22 }
  0xa0   :  { %v7684_v3 = vld [vmem:[#allocation2 + $0xe00] sm:$0xf]  ;;  %v7429_v16 = vor.u32 %v8982_v2, %v7428_v1  ;;  %3333 = vmatpush.bf16.msrb.mxu1 %v7173_v15  ;;  %v9635_v38 = vpack.c.bf16 %v154_v23, %v154_v23  ;;  %v6278_v61 = vld [vmem:[#allocation2 + $0x320] sm:$0xf0]  ;;  %v6025_v2 = vor.u32 %v8626_v57, %v6022_v58  ;;  %v6249_v15 = vor.u32 %v8682_v7, %v6246_v9 }
  0xa1   :  { %v9046_v5 = vld [vmem:[#allocation2 + $0xe1c] sm:$0xf0]  ;;  %3321 = vmatmul.bf16.vlgmr.msrb.gmra.mxu0 %v9633_v37  ;;  %v8754_v62 = vld [vmem:[#allocation2 + $0x504] sm:$0xf] }
  0xa2   :  { %v7685_v20 = vor.u32 %v9046_v5, %v7684_v3  ;;  %v152_v27 = vld.sshfl [vmem:[#allocation1 + $0x28] sm:$0xff pattern:$0x73625140]  ;;  %3346 = vmatpush.bf16.msrb.mxu2 %v7429_v16  ;;  %3365 = vmatpush.bf16.msra.mxu0 %v6121_v21  ;;  %v6281_v3 = vor.u32 %v8690_v59, %v6278_v61 }
  0xa3   :  { %v9637_v40 = vpack.c.bf16 %v152_v27, %v152_v27  ;;  %v6534_v63 = vld [vmem:[#allocation2 + $0x520] sm:$0xf0] }
  0xa4   :  { %3359 = vmatpush.bf16.msrb.mxu3 %v7685_v20  ;;  %3378 = vmatpush.bf16.msra.mxu1 %v6377_v24  ;;  %v8818_v0 = vld [vmem:[#allocation2 + $0x704] sm:$0xf]  ;;  %v6537_v4 = vor.u32 %v8754_v62, %v6534_v63  ;;  %v6761_v20 = vor.u32 %v8810_v12, %v6758_v13 }
  0xa5   :  { %3347 = vmatmul.bf16.vlgmr.msrb.gmra.mxu2 %v9631_v32  ;;  %3334 = vmatmul.bf16.vlgmr.msrb.gmra.mxu1 %v9637_v40  ;;  %v6790_v1 = vld [vmem:[#allocation2 + $0x720] sm:$0xf0] }
  0xa6   :  { %3391 = vmatpush.bf16.msra.mxu2 %v6633_v25  ;;  %3366 = vmatpush.bf16.msra.mxu0 %v6089_v39  ;;  %v8618_v5 = vld [vmem:[#allocation2 + $0xc4] sm:$0xf]  ;;  %v6793_v8 = vor.u32 %v8818_v0, %v6790_v1 }
  0xa7   :  { %3360 = vmatmul.bf16.vlgmr.msrb.gmra.mxu3 %v9635_v38  ;;  %v6502_v11 = vld [vmem:[#allocation2 + $0x4e0] sm:$0xf0]  ;;  %v5993_v14 = vor.u32 %v8618_v5, %v5990_v6 }
  0xa8   :  { %3404 = vmatpush.bf16.msra.mxu3 %v6889_v28  ;;  %3379 = vmatpush.bf16.msra.mxu1 %v6345_v43  ;;  %v6505_v16 = vor.u32 %v8746_v10, %v6502_v11  ;;  %v5958_v18 = vld [vmem:[#allocation2 + $0xa0] sm:$0xf0] }
  0xa9   :  { %v8674_v19 = vld [vmem:[#allocation2 + $0x284] sm:$0xf]  ;;  %v5961_v26 = vor.u32 %v8610_v17, %v5958_v18 }
  0xaa   :  { %3392 = vmatpush.bf16.msra.mxu2 %v6601_v44  ;;  %3367 = vmatpush.bf16.msra.mxu0 %v6057_v54  ;;  %v6214_v21 = vld [vmem:[#allocation2 + $0x2a0] sm:$0xf0] }
  0xab   :  { %v8738_v22 = vld [vmem:[#allocation2 + $0x484] sm:$0xf]  ;;  %v6217_v27 = vor.u32 %v8674_v19, %v6214_v21 }
  0xac   :  { %3405 = vmatpush.bf16.msra.mxu3 %v6857_v48  ;;  %3380 = vmatpush.bf16.msra.mxu1 %v6313_v55  ;;  %v6470_v23 = vld [vmem:[#allocation2 + $0x4a0] sm:$0xf0] }
  0xad   :  { %v8802_v24 = vld [vmem:[#allocation2 + $0x684] sm:$0xf]  ;;  %v6473_v28 = vor.u32 %v8738_v22, %v6470_v23 }
  0xae   :  { %3393 = vmatpush.bf16.msra.mxu2 %v6569_v56  ;;  %3368 = vmatpush.bf16.msra.mxu0 %v6025_v2  ;;  %v6726_v25 = vld [vmem:[#allocation2 + $0x6a0] sm:$0xf0] }
  0xaf   :  { %v8602_v29 = vld [vmem:[#allocation2 + $0x44] sm:$0xf]  ;;  %v6729_v35 = vor.u32 %v8802_v24, %v6726_v25 }
  0xb0   :  { %3406 = vmatpush.bf16.msra.mxu3 %v6825_v60  ;;  %3381 = vmatpush.bf16.msra.mxu1 %v6281_v3  ;;  %v5926_v30 = vld [vmem:[#allocation2 + $0x60] sm:$0xf0] }
  0xb1   :  { %v8666_v31 = vld [vmem:[#allocation2 + $0x244] sm:$0xf]  ;;  %v5929_v46 = vor.u32 %v8602_v29, %v5926_v30 }
  0xb2   :  { %3394 = vmatpush.bf16.msra.mxu2 %v6537_v4  ;;  %3369 = vmatpush.bf16.msra.mxu0 %v5993_v14  ;;  %v6182_v36 = vld [vmem:[#allocation2 + $0x260] sm:$0xf0] }
  0xb3   :  { %v8730_v39 = vld [vmem:[#allocation2 + $0x444] sm:$0xf]  ;;  %v6185_v49 = vor.u32 %v8666_v31, %v6182_v36 }
  0xb4   :  { %3407 = vmatpush.bf16.msra.mxu3 %v6793_v8  ;;  %3382 = vmatpush.bf16.msra.mxu1 %v6249_v15  ;;  %v6438_v43 = vld [vmem:[#allocation2 + $0x460] sm:$0xf0] }
  0xb5   :  { %v8794_v44 = vld [vmem:[#allocation2 + $0x644] sm:$0xf]  ;;  %v6441_v50 = vor.u32 %v8730_v39, %v6438_v43 }
  0xb6   :  { %3395 = vmatpush.bf16.msra.mxu2 %v6505_v16  ;;  %v6694_v45 = vld [vmem:[#allocation2 + $0x660] sm:$0xf0]  ;;  %3370 = vmatpush.bf16.msra.mxu0 %v5961_v26 }
  0xb7   :  { %v8594_v47 = vld [vmem:[#allocation2 + $0x4] sm:$0xf]  ;;  %v6697_v54 = vor.u32 %v8794_v44, %v6694_v45 }
  0xb8   :  { %3408 = vmatpush.bf16.msra.mxu3 %v6761_v20  ;;  %v5894_v48 = vld [vmem:[#allocation2 + $0x20] sm:$0xf0]  ;;  %3383 = vmatpush.bf16.msra.mxu1 %v6217_v27 }
  0xb9   :  { %v8658_v51 = vld [vmem:[#allocation2 + $0x204] sm:$0xf]  ;;  %v5897_v61 = vor.u32 %v8594_v47, %v5894_v48 }
  0xba   :  { %3396 = vmatpush.bf16.msra.mxu2 %v6473_v28  ;;  %v6150_v52 = vld [vmem:[#allocation2 + $0x220] sm:$0xf0]  ;;  %3371 = vmatpush.bf16.msra.mxu0 %v5929_v46 }
  0xbb   :  { %v8722_v53 = vld [vmem:[#allocation2 + $0x404] sm:$0xf]  ;;  %v6153_v1 = vor.u32 %v8658_v51, %v6150_v52 }
  0xbc   :  { %3409 = vmatpush.bf16.msra.mxu3 %v6729_v35  ;;  %v6406_v55 = vld [vmem:[#allocation2 + $0x420] sm:$0xf0]  ;;  %3384 = vmatpush.bf16.msra.mxu1 %v6185_v49 }
  0xbd   :  { %v8786_v56 = vld [vmem:[#allocation2 + $0x604] sm:$0xf]  ;;  %v6409_v2 = vor.u32 %v8722_v53, %v6406_v55 }
  0xbe   :  { %v6662_v57 = vld [vmem:[#allocation2 + $0x620] sm:$0xf0]  ;;  %3397 = vmatpush.bf16.msra.mxu2 %v6441_v50  ;;  %3372 = vmatpush.bf16.msra.mxu0 %v5897_v61 }
  0xbf   :  { %v8906_v58 = vld [vmem:[#allocation2 + $0x9c4] sm:$0xf]  ;;  %v6665_v5 = vor.u32 %v8786_v56, %v6662_v57 }
  0xc0   :  { %v7142_v59 = vld [vmem:[#allocation2 + $0x9e0] sm:$0xf0]  ;;  %3410 = vmatpush.bf16.msra.mxu3 %v6697_v54  ;;  %3385 = vmatpush.bf16.msra.mxu1 %v6153_v1 }
  0xc1   :  { %v8970_v60 = vld [vmem:[#allocation2 + $0xbc4] sm:$0xf]  ;;  %v7145_v6 = vor.u32 %v8906_v58, %v7142_v59  ;;  %3373 = vmatmul.bf16.vlgmr.msra.gmra.mxu0 %v9618_v34 }
  0xc2   :  { %v7398_v62 = vld [vmem:[#allocation2 + $0xbe0] sm:$0xf0]  ;;  %3398 = vmatpush.bf16.msra.mxu2 %v6409_v2 }
  0xc3   :  { %v9034_v63 = vld [vmem:[#allocation2 + $0xdc4] sm:$0xf]  ;;  %v7401_v7 = vor.u32 %v8970_v60, %v7398_v62  ;;  %3417 = vmatpush.bf16.msrb.mxu0 %v7145_v6  ;;  %3386 = vmatmul.bf16.vlgmr.msra.gmra.mxu1 %v9622_v42 }
  0xc4   :  { %v7654_v0 = vld [vmem:[#allocation2 + $0xde0] sm:$0xf0]  ;;  %3411 = vmatpush.bf16.msra.mxu3 %v6665_v5 }
  0xc5   :  { %v9098_v3 = vld [vmem:[#allocation2 + $0xfc4] sm:$0xf]  ;;  %v7657_v8 = vor.u32 %v9034_v63, %v7654_v0  ;;  %3430 = vmatpush.bf16.msrb.mxu1 %v7401_v7  ;;  %3399 = vmatmul.bf16.vlgmr.msra.gmra.mxu2 %v9616_v33 }
  0xc6   :  { %v7910_v4 = vld [vmem:[#allocation2 + $0xfe0] sm:$0xf0] }
  0xc7   :  { %v8898_v9 = vld [vmem:[#allocation2 + $0x984] sm:$0xf]  ;;  %v7913_v12 = vor.u32 %v9098_v3, %v7910_v4  ;;  %3443 = vmatpush.bf16.msrb.mxu2 %v7657_v8  ;;  %3412 = vmatmul.bf16.vlgmr.msra.gmra.mxu3 %v9620_v41 }
  0xc8   :  { %v7110_v10 = vld [vmem:[#allocation2 + $0x9a0] sm:$0xf0] }
  0xc9   :  { %v8962_v11 = vld [vmem:[#allocation2 + $0xb84] sm:$0xf]  ;;  %v7113_v18 = vor.u32 %v8898_v9, %v7110_v10  ;;  %3456 = vmatpush.bf16.msrb.mxu3 %v7913_v12 }
  0xca   :  { %v7366_v13 = vld [vmem:[#allocation2 + $0xba0] sm:$0xf0] }
  0xcb   :  { %v9026_v14 = vld [vmem:[#allocation2 + $0xd84] sm:$0xf]  ;;  %v7369_v20 = vor.u32 %v8962_v11, %v7366_v13  ;;  %3418 = vmatpush.bf16.msrb.mxu0 %v7113_v18 }
  0xcc   :  { %v7622_v15 = vld [vmem:[#allocation2 + $0xda0] sm:$0xf0] }
  0xcd   :  { %v9090_v16 = vld [vmem:[#allocation2 + $0xf84] sm:$0xf]  ;;  %v7625_v21 = vor.u32 %v9026_v14, %v7622_v15  ;;  %3431 = vmatpush.bf16.msrb.mxu1 %v7369_v20 }
  0xce   :  { %v7878_v17 = vld [vmem:[#allocation2 + $0xfa0] sm:$0xf0] }
  0xcf   :  { %v8890_v19 = vld [vmem:[#allocation2 + $0x944] sm:$0xf]  ;;  %v7881_v25 = vor.u32 %v9090_v16, %v7878_v17  ;;  %3444 = vmatpush.bf16.msrb.mxu2 %v7625_v21 }
  0xd0   :  { %v7078_v22 = vld [vmem:[#allocation2 + $0x960] sm:$0xf0] }
  0xd1   :  { %v8954_v23 = vld [vmem:[#allocation2 + $0xb44] sm:$0xf]  ;;  %v7081_v30 = vor.u32 %v8890_v19, %v7078_v22  ;;  %3457 = vmatpush.bf16.msrb.mxu3 %v7881_v25 }
  0xd2   :  { %v7334_v24 = vld [vmem:[#allocation2 + $0xb60] sm:$0xf0] }
  0xd3   :  { %v9018_v26 = vld [vmem:[#allocation2 + $0xd44] sm:$0xf]  ;;  %v7337_v31 = vor.u32 %v8954_v23, %v7334_v24  ;;  %3419 = vmatpush.bf16.msrb.mxu0 %v7081_v30 }
  0xd4   :  { %v7590_v27 = vld [vmem:[#allocation2 + $0xd60] sm:$0xf0] }
  0xd5   :  { %v9082_v28 = vld [vmem:[#allocation2 + $0xf44] sm:$0xf]  ;;  %v7593_v35 = vor.u32 %v9018_v26, %v7590_v27  ;;  %3432 = vmatpush.bf16.msrb.mxu1 %v7337_v31 }
  0xd6   :  { %v7846_v29 = vld [vmem:[#allocation2 + $0xf60] sm:$0xf0] }
  0xd7   :  { %v8882_v36 = vld [vmem:[#allocation2 + $0x904] sm:$0xf]  ;;  %v7849_v44 = vor.u32 %v9082_v28, %v7846_v29  ;;  %3445 = vmatpush.bf16.msrb.mxu2 %v7593_v35 }
  0xd8   :  { %v7046_v39 = vld [vmem:[#allocation2 + $0x920] sm:$0xf0] }
  0xd9   :  { %v8946_v43 = vld [vmem:[#allocation2 + $0xb04] sm:$0xf]  ;;  %v7049_v50 = vor.u32 %v8882_v36, %v7046_v39  ;;  %3458 = vmatpush.bf16.msrb.mxu3 %v7849_v44  ;;  %v6124_v39 = vld [vmem:[#allocation2 + $0x1c8] sm:$0xf] }
  0xda   :  { %v7302_v45 = vld [vmem:[#allocation2 + $0xb20] sm:$0xf0]  ;;  %v6380_v44 = vld [vmem:[#allocation2 + $0x3c8] sm:$0xf] }
  0xdb   :  { %v9010_v46 = vld [vmem:[#allocation2 + $0xd04] sm:$0xf]  ;;  %v7305_v51 = vor.u32 %v8946_v43, %v7302_v45  ;;  %3420 = vmatpush.bf16.msrb.mxu0 %v7049_v50  ;;  %v8655_v43 = vld [vmem:[#allocation2 + $0x1e4] sm:$0xf0] }
  0xdc   :  { %v7558_v47 = vld [vmem:[#allocation2 + $0xd20] sm:$0xf0] }
  0xdd   :  { %v9074_v48 = vld [vmem:[#allocation2 + $0xf04] sm:$0xf]  ;;  %v7561_v52 = vor.u32 %v9010_v46, %v7558_v47  ;;  %3433 = vmatpush.bf16.msrb.mxu1 %v7305_v51  ;;  %v8719_v46 = vld [vmem:[#allocation2 + $0x3e4] sm:$0xf0] }
  0xde   :  { %v7814_v49 = vld [vmem:[#allocation2 + $0xf20] sm:$0xf0]  ;;  %v6636_v47 = vld [vmem:[#allocation2 + $0x5c8] sm:$0xf] }
  0xdf   :  { %v8874_v53 = vld [vmem:[#allocation2 + $0x8c4] sm:$0xf]  ;;  %v7817_v56 = vor.u32 %v9074_v48, %v7814_v49  ;;  %3446 = vmatpush.bf16.msrb.mxu2 %v7561_v52  ;;  %v8783_v48 = vld [vmem:[#allocation2 + $0x5e4] sm:$0xf0] }
  0xe0   :  { %v7014_v54 = vld [vmem:[#allocation2 + $0x8e0] sm:$0xf0]  ;;  %v6892_v51 = vld [vmem:[#allocation2 + $0x7c8] sm:$0xf] }
  0xe1   :  { %v8938_v55 = vld [vmem:[#allocation2 + $0xac4] sm:$0xf]  ;;  %v7017_v62 = vor.u32 %v8874_v53, %v7014_v54  ;;  %3459 = vmatpush.bf16.msrb.mxu3 %v7817_v56  ;;  %v8847_v52 = vld [vmem:[#allocation2 + $0x7e4] sm:$0xf0]  ;;  %v6125_v54 = vor.u32 %v8655_v43, %v6124_v39  ;;  %v6637_v56 = vor.u32 %v8783_v48, %v6636_v47 }
  0xe2   :  { %v7270_v57 = vld [vmem:[#allocation2 + $0xae0] sm:$0xf0]  ;;  %v6508_v39 = vld [vmem:[#allocation2 + $0x4c8] sm:$0xf] }
  0xe3   :  { %v9002_v58 = vld [vmem:[#allocation2 + $0xcc4] sm:$0xf]  ;;  %v7273_v63 = vor.u32 %v8938_v55, %v7270_v57  ;;  %3421 = vmatpush.bf16.msrb.mxu0 %v7017_v62  ;;  %v6381_v55 = vor.u32 %v8719_v46, %v6380_v44  ;;  %v6092_v57 = vld [vmem:[#allocation2 + $0x188] sm:$0xf] }
  0xe4   :  { %v7526_v59 = vld [vmem:[#allocation2 + $0xce0] sm:$0xf0]  ;;  %v6604_v62 = vld [vmem:[#allocation2 + $0x588] sm:$0xf] }
  0xe5   :  { %v9066_v60 = vld [vmem:[#allocation2 + $0xec4] sm:$0xf]  ;;  %v7529_v0 = vor.u32 %v9002_v58, %v7526_v59  ;;  %3434 = vmatpush.bf16.msrb.mxu1 %v7273_v63  ;;  %v8647_v58 = vld [vmem:[#allocation2 + $0x1a4] sm:$0xf0] }
  0xe6   :  { %v7782_v61 = vld [vmem:[#allocation2 + $0xee0] sm:$0xf0]  ;;  %v6348_v59 = vld [vmem:[#allocation2 + $0x388] sm:$0xf] }
  0xe7   :  { %v8866_v1 = vld [vmem:[#allocation2 + $0x884] sm:$0xf]  ;;  %v7785_v4 = vor.u32 %v9066_v60, %v7782_v61  ;;  %3447 = vmatpush.bf16.msrb.mxu2 %v7529_v0  ;;  %v6893_v60 = vor.u32 %v8847_v52, %v6892_v51  ;;  %v8711_v61 = vld [vmem:[#allocation2 + $0x3a4] sm:$0xf0] }
  0xe8   :  { %v6982_v2 = vld [vmem:[#allocation2 + $0x8a0] sm:$0xf0]  ;;  %v8775_v63 = vld [vmem:[#allocation2 + $0x5a4] sm:$0xf0] }
  0xe9   :  { %v8930_v3 = vld [vmem:[#allocation2 + $0xa84] sm:$0xf]  ;;  %v6985_v10 = vor.u32 %v8866_v1, %v6982_v2  ;;  %3460 = vmatpush.bf16.msrb.mxu3 %v7785_v4  ;;  %v6860_v0 = vld [vmem:[#allocation2 + $0x788] sm:$0xf]  ;;  %v6093_v2 = vor.u32 %v8647_v58, %v6092_v57  ;;  %v6605_v4 = vor.u32 %v8775_v63, %v6604_v62 }
  0xea   :  { %v7238_v5 = vld [vmem:[#allocation2 + $0xaa0] sm:$0xf0]  ;;  %v8839_v1 = vld [vmem:[#allocation2 + $0x7a4] sm:$0xf0] }
  0xeb   :  { %v8994_v6 = vld [vmem:[#allocation2 + $0xc84] sm:$0xf]  ;;  %v7241_v11 = vor.u32 %v8930_v3, %v7238_v5  ;;  %3422 = vmatpush.bf16.msrb.mxu0 %v6985_v10  ;;  %v6349_v3 = vor.u32 %v8711_v61, %v6348_v59  ;;  %v6060_v5 = vld [vmem:[#allocation2 + $0x148] sm:$0xf] }
  0xec   :  { %v7494_v7 = vld [vmem:[#allocation2 + $0xca0] sm:$0xf0]  ;;  %v6572_v10 = vld [vmem:[#allocation2 + $0x548] sm:$0xf] }
  0xed   :  { %v9058_v8 = vld [vmem:[#allocation2 + $0xe84] sm:$0xf]  ;;  %v7497_v12 = vor.u32 %v8994_v6, %v7494_v7  ;;  %3435 = vmatpush.bf16.msrb.mxu1 %v7241_v11  ;;  %v8639_v6 = vld [vmem:[#allocation2 + $0x164] sm:$0xf0] }
  0xee   :  { %v7750_v9 = vld [vmem:[#allocation2 + $0xea0] sm:$0xf0]  ;;  %v6316_v7 = vld [vmem:[#allocation2 + $0x348] sm:$0xf] }
  0xef   :  { %v8858_v13 = vld [vmem:[#allocation2 + $0x844] sm:$0xf]  ;;  %v7753_v16 = vor.u32 %v9058_v8, %v7750_v9  ;;  %3448 = vmatpush.bf16.msrb.mxu2 %v7497_v12  ;;  %v6861_v8 = vor.u32 %v8839_v1, %v6860_v0  ;;  %v8703_v9 = vld [vmem:[#allocation2 + $0x364] sm:$0xf0] }
  0xf0   :  { %v6950_v14 = vld [vmem:[#allocation2 + $0x860] sm:$0xf0]  ;;  %v8767_v11 = vld [vmem:[#allocation2 + $0x564] sm:$0xf0] }
  0xf1   :  { %v8922_v15 = vld [vmem:[#allocation2 + $0xa44] sm:$0xf]  ;;  %v6953_v22 = vor.u32 %v8858_v13, %v6950_v14  ;;  %3461 = vmatpush.bf16.msrb.mxu3 %v7753_v16  ;;  %v6828_v12 = vld [vmem:[#allocation2 + $0x748] sm:$0xf]  ;;  %v6061_v14 = vor.u32 %v8639_v6, %v6060_v5  ;;  %v6573_v16 = vor.u32 %v8767_v11, %v6572_v10 }
  0xf2   :  { %v7206_v17 = vld [vmem:[#allocation2 + $0xa60] sm:$0xf0]  ;;  %v8831_v13 = vld [vmem:[#allocation2 + $0x764] sm:$0xf0] }
  0xf3   :  { %v8986_v18 = vld [vmem:[#allocation2 + $0xc44] sm:$0xf]  ;;  %v7209_v25 = vor.u32 %v8922_v15, %v7206_v17  ;;  %3423 = vmatpush.bf16.msrb.mxu0 %v6953_v22  ;;  %v6317_v15 = vor.u32 %v8703_v9, %v6316_v7  ;;  %v6028_v17 = vld [vmem:[#allocation2 + $0x108] sm:$0xf] }
  0xf4   :  { %v7462_v19 = vld [vmem:[#allocation2 + $0xc60] sm:$0xf0]  ;;  %v6540_v22 = vld [vmem:[#allocation2 + $0x508] sm:$0xf] }
  0xf5   :  { %v9050_v20 = vld [vmem:[#allocation2 + $0xe44] sm:$0xf]  ;;  %v7465_v26 = vor.u32 %v8986_v18, %v7462_v19  ;;  %3436 = vmatpush.bf16.msrb.mxu1 %v7209_v25  ;;  %v8631_v18 = vld [vmem:[#allocation2 + $0x124] sm:$0xf0] }
  0xf6   :  { %v7718_v21 = vld [vmem:[#allocation2 + $0xe60] sm:$0xf0]  ;;  %v6284_v19 = vld [vmem:[#allocation2 + $0x308] sm:$0xf] }
  0xf7   :  { %v8850_v23 = vld [vmem:[#allocation2 + $0x804] sm:$0xf]  ;;  %v7721_v30 = vor.u32 %v9050_v20, %v7718_v21  ;;  %3449 = vmatpush.bf16.msrb.mxu2 %v7465_v26  ;;  %v6829_v20 = vor.u32 %v8831_v13, %v6828_v12  ;;  %v8695_v21 = vld [vmem:[#allocation2 + $0x324] sm:$0xf0]  ;;  %v6029_v26 = vor.u32 %v8631_v18, %v6028_v17 }
  0xf8   :  { %v6918_v24 = vld [vmem:[#allocation2 + $0x820] sm:$0xf0]  ;;  %v8823_v25 = vld [vmem:[#allocation2 + $0x724] sm:$0xf0] }
  0xf9   :  { %v8914_v27 = vld [vmem:[#allocation2 + $0xa04] sm:$0xf]  ;;  %v6921_v45 = vor.u32 %v8850_v23, %v6918_v24  ;;  %3462 = vmatpush.bf16.msrb.mxu3 %v7721_v30  ;;  %v8759_v23 = vld [vmem:[#allocation2 + $0x524] sm:$0xf0] }
  0xfa   :  { %v7174_v28 = vld [vmem:[#allocation2 + $0xa20] sm:$0xf0]  ;;  %v6796_v24 = vld [vmem:[#allocation2 + $0x708] sm:$0xf] }
  0xfb   :  { %v8978_v29 = vld [vmem:[#allocation2 + $0xc04] sm:$0xf]  ;;  %v7177_v49 = vor.u32 %v8914_v27, %v7174_v28  ;;  %3424 = vmatpush.bf16.msrb.mxu0 %v6921_v45  ;;  %v6285_v27 = vor.u32 %v8695_v21, %v6284_v19  ;;  %v6541_v28 = vor.u32 %v8759_v23, %v6540_v22  ;;  %v8623_v30 = vld [vmem:[#allocation2 + $0xe4] sm:$0xf0] }
  0xfc   :  { %v7430_v31 = vld [vmem:[#allocation2 + $0xc20] sm:$0xf0]  ;;  %v8751_v43 = vld [vmem:[#allocation2 + $0x4e4] sm:$0xf0] }
  0xfd   :  { %v9042_v35 = vld [vmem:[#allocation2 + $0xe04] sm:$0xf]  ;;  %v7433_v50 = vor.u32 %v8978_v29, %v7430_v31  ;;  %3437 = vmatpush.bf16.msrb.mxu1 %v7177_v49  ;;  %v5996_v29 = vld [vmem:[#allocation2 + $0xc8] sm:$0xf]  ;;  %v6509_v48 = vor.u32 %v8751_v43, %v6508_v39 }
  0xfe   :  { %v7686_v36 = vld [vmem:[#allocation2 + $0xe20] sm:$0xf0]  ;;  %3425 = vmatmul.bf16.vlgmr.msrb.gmra.mxu0 %v9633_v37  ;;  %v6252_v31 = vld [vmem:[#allocation2 + $0x2c8] sm:$0xf]  ;;  %v5997_v46 = vor.u32 %v8623_v30, %v5996_v29 }
  0xff   :  { %v7689_v53 = vor.u32 %v9042_v35, %v7686_v36  ;;  %3450 = vmatpush.bf16.msrb.mxu2 %v7433_v50  ;;  %3469 = vmatpush.bf16.msra.mxu0 %v6125_v54  ;;  %v6797_v35 = vor.u32 %v8823_v25, %v6796_v24  ;;  %v8687_v36 = vld [vmem:[#allocation2 + $0x2e4] sm:$0xf0] }
 0x100   :  { %3438 = vmatmul.bf16.vlgmr.msrb.gmra.mxu1 %v9637_v40  ;;  %v6764_v44 = vld [vmem:[#allocation2 + $0x6c8] sm:$0xf]  ;;  %v6253_v47 = vor.u32 %v8687_v36, %v6252_v31 }
 0x101   :  { %3463 = vmatpush.bf16.msrb.mxu3 %v7689_v53  ;;  %3482 = vmatpush.bf16.msra.mxu1 %v6381_v55  ;;  %v8815_v45 = vld [vmem:[#allocation2 + $0x6e4] sm:$0xf0] }
 0x102   :  { %3451 = vmatmul.bf16.vlgmr.msrb.gmra.mxu2 %v9631_v32  ;;  %v5964_v49 = vld [vmem:[#allocation2 + $0x88] sm:$0xf]  ;;  %v6765_v52 = vor.u32 %v8815_v45, %v6764_v44 }
 0x103   :  { %3495 = vmatpush.bf16.msra.mxu2 %v6637_v56  ;;  %3470 = vmatpush.bf16.msra.mxu0 %v6093_v2  ;;  %v8615_v50 = vld [vmem:[#allocation2 + $0xa4] sm:$0xf0] }
 0x104   :  { %3464 = vmatmul.bf16.vlgmr.msrb.gmra.mxu3 %v9635_v38  ;;  %v6220_v51 = vld [vmem:[#allocation2 + $0x288] sm:$0xf]  ;;  %v5965_v58 = vor.u32 %v8615_v50, %v5964_v49 }
 0x105   :  { %3508 = vmatpush.bf16.msra.mxu3 %v6893_v60  ;;  %3483 = vmatpush.bf16.msra.mxu1 %v6349_v3  ;;  %v8679_v53 = vld [vmem:[#allocation2 + $0x2a4] sm:$0xf0] }
 0x106   :  { %v6476_v54 = vld [vmem:[#allocation2 + $0x488] sm:$0xf]  ;;  %v6221_v59 = vor.u32 %v8679_v53, %v6220_v51 }
 0x107   :  { %3496 = vmatpush.bf16.msra.mxu2 %v6605_v4  ;;  %3471 = vmatpush.bf16.msra.mxu0 %v6061_v14  ;;  %v8743_v55 = vld [vmem:[#allocation2 + $0x4a4] sm:$0xf0] }
 0x108   :  { %v6732_v56 = vld [vmem:[#allocation2 + $0x688] sm:$0xf]  ;;  %v6477_v60 = vor.u32 %v8743_v55, %v6476_v54 }
 0x109   :  { %3509 = vmatpush.bf16.msra.mxu3 %v6861_v8  ;;  %3484 = vmatpush.bf16.msra.mxu1 %v6317_v15  ;;  %v8807_v57 = vld [vmem:[#allocation2 + $0x6a4] sm:$0xf0] }
 0x10a   :  { %v5932_v61 = vld [vmem:[#allocation2 + $0x48] sm:$0xf]  ;;  %v6733_v0 = vor.u32 %v8807_v57, %v6732_v56 }
 0x10b   :  { %3497 = vmatpush.bf16.msra.mxu2 %v6573_v16  ;;  %3472 = vmatpush.bf16.msra.mxu0 %v6029_v26  ;;  %v8607_v62 = vld [vmem:[#allocation2 + $0x64] sm:$0xf0] }
 0x10c   :  { %v6188_v63 = vld [vmem:[#allocation2 + $0x248] sm:$0xf]  ;;  %v5933_v6 = vor.u32 %v8607_v62, %v5932_v61 }
 0x10d   :  { %3510 = vmatpush.bf16.msra.mxu3 %v6829_v20  ;;  %3485 = vmatpush.bf16.msra.mxu1 %v6285_v27  ;;  %v8671_v1 = vld [vmem:[#allocation2 + $0x264] sm:$0xf0] }
 0x10e   :  { %v6444_v2 = vld [vmem:[#allocation2 + $0x448] sm:$0xf]  ;;  %v6189_v9 = vor.u32 %v8671_v1, %v6188_v63 }
 0x10f   :  { %3498 = vmatpush.bf16.msra.mxu2 %v6541_v28  ;;  %3473 = vmatpush.bf16.msra.mxu0 %v5997_v46  ;;  %v8735_v3 = vld [vmem:[#allocation2 + $0x464] sm:$0xf0] }
 0x110   :  { %v6700_v4 = vld [vmem:[#allocation2 + $0x648] sm:$0xf]  ;;  %v6445_v10 = vor.u32 %v8735_v3, %v6444_v2 }
 0x111   :  { %3511 = vmatpush.bf16.msra.mxu3 %v6797_v35  ;;  %3486 = vmatpush.bf16.msra.mxu1 %v6253_v47  ;;  %v8799_v5 = vld [vmem:[#allocation2 + $0x664] sm:$0xf0] }
 0x112   :  { %v5900_v7 = vld [vmem:[#allocation2 + $0x8] sm:$0xf]  ;;  %v6701_v14 = vor.u32 %v8799_v5, %v6700_v4 }
 0x113   :  { %3499 = vmatpush.bf16.msra.mxu2 %v6509_v48  ;;  %3474 = vmatpush.bf16.msra.mxu0 %v5965_v58  ;;  %v8599_v8 = vld [vmem:[#allocation2 + $0x24] sm:$0xf0] }
 0x114   :  { %v6156_v11 = vld [vmem:[#allocation2 + $0x208] sm:$0xf]  ;;  %v5901_v21 = vor.u32 %v8599_v8, %v5900_v7 }
 0x115   :  { %3512 = vmatpush.bf16.msra.mxu3 %v6765_v52  ;;  %3487 = vmatpush.bf16.msra.mxu1 %v6221_v59  ;;  %v8663_v12 = vld [vmem:[#allocation2 + $0x224] sm:$0xf0] }
 0x116   :  { %v6412_v13 = vld [vmem:[#allocation2 + $0x408] sm:$0xf]  ;;  %v6157_v25 = vor.u32 %v8663_v12, %v6156_v11 }
 0x117   :  { %3500 = vmatpush.bf16.msra.mxu2 %v6477_v60  ;;  %v8727_v15 = vld [vmem:[#allocation2 + $0x424] sm:$0xf0]  ;;  %3475 = vmatpush.bf16.msra.mxu0 %v5933_v6 }
 0x118   :  { %v6668_v16 = vld [vmem:[#allocation2 + $0x608] sm:$0xf]  ;;  %v6413_v26 = vor.u32 %v8727_v15, %v6412_v13 }
 0x119   :  { %3513 = vmatpush.bf16.msra.mxu3 %v6733_v0  ;;  %v8791_v17 = vld [vmem:[#allocation2 + $0x624] sm:$0xf0]  ;;  %3488 = vmatpush.bf16.msra.mxu1 %v6189_v9 }
 0x11a   :  { %v7148_v18 = vld [vmem:[#allocation2 + $0x9c8] sm:$0xf]  ;;  %v6669_v29 = vor.u32 %v8791_v17, %v6668_v16 }
 0x11b   :  { %v8911_v19 = vld [vmem:[#allocation2 + $0x9e4] sm:$0xf0]  ;;  %3501 = vmatpush.bf16.msra.mxu2 %v6445_v10  ;;  %3476 = vmatpush.bf16.msra.mxu0 %v5901_v21 }
 0x11c   :  { %v7404_v20 = vld [vmem:[#allocation2 + $0xbc8] sm:$0xf]  ;;  %v7149_v30 = vor.u32 %v8911_v19, %v7148_v18 }
 0x11d   :  { %v8975_v22 = vld [vmem:[#allocation2 + $0xbe4] sm:$0xf0]  ;;  %3514 = vmatpush.bf16.msra.mxu3 %v6701_v14  ;;  %3489 = vmatpush.bf16.msra.mxu1 %v6157_v25 }
 0x11e   :  { %v7660_v23 = vld [vmem:[#allocation2 + $0xdc8] sm:$0xf]  ;;  %v7405_v31 = vor.u32 %v8975_v22, %v7404_v20  ;;  %3477 = vmatmul.bf16.vlgmr.msra.gmra.mxu0 %v9618_v34 }
 0x11f   :  { %v9039_v24 = vld [vmem:[#allocation2 + $0xde4] sm:$0xf0]  ;;  %3502 = vmatpush.bf16.msra.mxu2 %v6413_v26  ;;  %3521 = vmatpush.bf16.msrb.mxu0 %v7149_v30 }
 0x120   :  { %v7916_v27 = vld [vmem:[#allocation2 + $0xfc8] sm:$0xf]  ;;  %v7661_v35 = vor.u32 %v9039_v24, %v7660_v23  ;;  %3490 = vmatmul.bf16.vlgmr.msra.gmra.mxu1 %v9622_v42 }
 0x121   :  { %v9103_v28 = vld [vmem:[#allocation2 + $0xfe4] sm:$0xf0]  ;;  %3515 = vmatpush.bf16.msra.mxu3 %v6669_v29  ;;  %3534 = vmatpush.bf16.msrb.mxu1 %v7405_v31 }
 0x122   :  { %v7116_v36 = vld [vmem:[#allocation2 + $0x988] sm:$0xf]  ;;  %v7917_v44 = vor.u32 %v9103_v28, %v7916_v27  ;;  %3503 = vmatmul.bf16.vlgmr.msra.gmra.mxu2 %v9616_v33 }
 0x123   :  { %v8903_v39 = vld [vmem:[#allocation2 + $0x9a4] sm:$0xf0]  ;;  %3547 = vmatpush.bf16.msrb.mxu2 %v7661_v35  ;;  %v9655_v35 = vld [vmem:[#allocation5] sm:$0xff] }
 0x124   :  { %v7372_v43 = vld [vmem:[#allocation2 + $0xb88] sm:$0xf]  ;;  %v7117_v50 = vor.u32 %v8903_v39, %v7116_v36  ;;  %3516 = vmatmul.bf16.vlgmr.msra.gmra.mxu3 %v9620_v41 }
 0x125   :  { %v8967_v45 = vld [vmem:[#allocation2 + $0xba4] sm:$0xf0]  ;;  %3560 = vmatpush.bf16.msrb.mxu3 %v7917_v44 }
 0x126   :  { %v7628_v46 = vld [vmem:[#allocation2 + $0xd88] sm:$0xf]  ;;  %v7373_v51 = vor.u32 %v8967_v45, %v7372_v43  ;;  %3522 = vmatpush.bf16.msrb.mxu0 %v7117_v50 }
 0x127   :  { %v9031_v47 = vld [vmem:[#allocation2 + $0xda4] sm:$0xf0] }
 0x128   :  { %v7884_v48 = vld [vmem:[#allocation2 + $0xf88] sm:$0xf]  ;;  %v7629_v52 = vor.u32 %v9031_v47, %v7628_v46  ;;  %3535 = vmatpush.bf16.msrb.mxu1 %v7373_v51 }
 0x129   :  { %v9095_v49 = vld [vmem:[#allocation2 + $0xfa4] sm:$0xf0] }
 0x12a   :  { %v7084_v53 = vld [vmem:[#allocation2 + $0x948] sm:$0xf]  ;;  %v7885_v56 = vor.u32 %v9095_v49, %v7884_v48  ;;  %3548 = vmatpush.bf16.msrb.mxu2 %v7629_v52  ;;  %v685_v49 = vperm.slane %v9655_v35, 0 }
 0x12b   :  { %v8895_v54 = vld [vmem:[#allocation2 + $0x964] sm:$0xf0] }
 0x12c   :  { %v7340_v55 = vld [vmem:[#allocation2 + $0xb48] sm:$0xf]  ;;  %v7085_v62 = vor.u32 %v8895_v54, %v7084_v53  ;;  %3561 = vmatpush.bf16.msrb.mxu3 %v7885_v56 }
 0x12d   :  { %v8959_v57 = vld [vmem:[#allocation2 + $0xb64] sm:$0xf0] }
 0x12e   :  { %v7596_v58 = vld [vmem:[#allocation2 + $0xd48] sm:$0xf]  ;;  %v7341_v63 = vor.u32 %v8959_v57, %v7340_v55  ;;  %3523 = vmatpush.bf16.msrb.mxu0 %v7085_v62 }
 0x12f   :  { %v9023_v59 = vld [vmem:[#allocation2 + $0xd64] sm:$0xf0] }
 0x130   :  { %v7852_v60 = vld [vmem:[#allocation2 + $0xf48] sm:$0xf]  ;;  %v7597_v0 = vor.u32 %v9023_v59, %v7596_v58  ;;  %3536 = vmatpush.bf16.msrb.mxu1 %v7341_v63  ;;  %v3270_v59 = vpop.f32.mrf.mxu0 }
 0x131   :  { %v9087_v61 = vld [vmem:[#allocation2 + $0xf64] sm:$0xf0] }
 0x132   :  { %v7052_v1 = vld [vmem:[#allocation2 + $0x908] sm:$0xf]  ;;  %v7853_v4 = vor.u32 %v9087_v61, %v7852_v60  ;;  %3549 = vmatpush.bf16.msrb.mxu2 %v7597_v0 }
 0x133   :  { %v8887_v2 = vld [vmem:[#allocation2 + $0x924] sm:$0xf0] }
 0x134   :  { %v7308_v3 = vld [vmem:[#allocation2 + $0xb08] sm:$0xf]  ;;  %v7053_v10 = vor.u32 %v8887_v2, %v7052_v1  ;;  %3562 = vmatpush.bf16.msrb.mxu3 %v7853_v4  ;;  %v3271_v1 = vadd.f32 %v3270_v59, %v685_v49  ;;  %v8635_v49 = vld [vmem:[#allocation2 + $0x14c] sm:$0xf] }
 0x135   :  { %v8951_v5 = vld [vmem:[#allocation2 + $0xb24] sm:$0xf0] }
 0x136   :  { %v7564_v6 = vld [vmem:[#allocation2 + $0xd08] sm:$0xf]  ;;  %v7309_v11 = vor.u32 %v8951_v5, %v7308_v3  ;;  %3524 = vmatpush.bf16.msrb.mxu0 %v7053_v10 }
 0x137   :  { %v9015_v7 = vld [vmem:[#allocation2 + $0xd24] sm:$0xf0] }
 0x138   :  { %v7820_v8 = vld [vmem:[#allocation2 + $0xf08] sm:$0xf]  ;;  %v7565_v12 = vor.u32 %v9015_v7, %v7564_v6  ;;  %3537 = vmatpush.bf16.msrb.mxu1 %v7309_v11  ;;  %v8651_v6 = vld [vmem:[#allocation2 + $0x1cc] sm:$0xf] }
 0x139   :  { %v9079_v9 = vld [vmem:[#allocation2 + $0xf24] sm:$0xf0]  ;;  %v6126_v7 = vld [vmem:[#allocation2 + $0x1e8] sm:$0xf0] }
 0x13a   :  { %v7020_v13 = vld [vmem:[#allocation2 + $0x8c8] sm:$0xf]  ;;  %v7821_v16 = vor.u32 %v9079_v9, %v7820_v8  ;;  %3550 = vmatpush.bf16.msrb.mxu2 %v7565_v12  ;;  %v8715_v8 = vld [vmem:[#allocation2 + $0x3cc] sm:$0xf]  ;;  %v3283_v9 = vpop.f32.mrf.mxu1 }
 0x13b   :  { %v8879_v14 = vld [vmem:[#allocation2 + $0x8e4] sm:$0xf0]  ;;  %v6382_v11 = vld [vmem:[#allocation2 + $0x3e8] sm:$0xf0] }
 0x13c   :  { %v7276_v15 = vld [vmem:[#allocation2 + $0xac8] sm:$0xf]  ;;  %v7021_v22 = vor.u32 %v8879_v14, %v7020_v13  ;;  %3563 = vmatpush.bf16.msrb.mxu3 %v7821_v16  ;;  %v8779_v12 = vld [vmem:[#allocation2 + $0x5cc] sm:$0xf]  ;;  %v3284_v14 = vadd.f32 %v3283_v9, %v3271_v1 }
 0x13d   :  { %v8943_v17 = vld [vmem:[#allocation2 + $0xae4] sm:$0xf0]  ;;  %v6638_v13 = vld [vmem:[#allocation2 + $0x5e8] sm:$0xf0] }
 0x13e   :  { %v7532_v18 = vld [vmem:[#allocation2 + $0xcc8] sm:$0xf]  ;;  %v7277_v24 = vor.u32 %v8943_v17, %v7276_v15  ;;  %3525 = vmatpush.bf16.msrb.mxu0 %v7021_v22  ;;  %v8843_v17 = vld [vmem:[#allocation2 + $0x7cc] sm:$0xf]  ;;  %v6385_v22 = vor.u32 %v8715_v8, %v6382_v11 }
 0x13f   :  { %v9007_v19 = vld [vmem:[#allocation2 + $0xce4] sm:$0xf0]  ;;  %v8691_v1 = vld [vmem:[#allocation2 + $0x30c] sm:$0xf] }
 0x140   :  { %v7788_v20 = vld [vmem:[#allocation2 + $0xec8] sm:$0xf]  ;;  %v7533_v25 = vor.u32 %v9007_v19, %v7532_v18  ;;  %3538 = vmatpush.bf16.msrb.mxu1 %v7277_v24  ;;  %v6894_v18 = vld [vmem:[#allocation2 + $0x7e8] sm:$0xf0] }
 0x141   :  { %v9071_v21 = vld [vmem:[#allocation2 + $0xee4] sm:$0xf0]  ;;  %v8643_v24 = vld [vmem:[#allocation2 + $0x18c] sm:$0xf] }
 0x142   :  { %v6988_v23 = vld [vmem:[#allocation2 + $0x888] sm:$0xf]  ;;  %v7789_v29 = vor.u32 %v9071_v21, %v7788_v20  ;;  %3551 = vmatpush.bf16.msrb.mxu2 %v7533_v25  ;;  %v6129_v20 = vor.u32 %v8651_v6, %v6126_v7  ;;  %v3296_v21 = vpop.f32.mrf.mxu2  ;;  %v6094_v25 = vld [vmem:[#allocation2 + $0x1a8] sm:$0xf0] }
 0x143   :  { %v8871_v26 = vld [vmem:[#allocation2 + $0x8a4] sm:$0xf0]  ;;  %v6542_v6 = vld [vmem:[#allocation2 + $0x528] sm:$0xf0] }
 0x144   :  { %v7244_v27 = vld [vmem:[#allocation2 + $0xa88] sm:$0xf]  ;;  %v6989_v43 = vor.u32 %v8871_v26, %v6988_v23  ;;  %3564 = vmatpush.bf16.msrb.mxu3 %v7789_v29  ;;  %v6641_v23 = vor.u32 %v8779_v12, %v6638_v13  ;;  %v8707_v26 = vld [vmem:[#allocation2 + $0x38c] sm:$0xf]  ;;  %v6897_v29 = vor.u32 %v8843_v17, %v6894_v18 }
 0x145   :  { %v8935_v28 = vld [vmem:[#allocation2 + $0xaa4] sm:$0xf0]  ;;  %v8819_v7 = vld [vmem:[#allocation2 + $0x70c] sm:$0xf] }
 0x146   :  { %v7500_v30 = vld [vmem:[#allocation2 + $0xc88] sm:$0xf]  ;;  %v7245_v45 = vor.u32 %v8935_v28, %v7244_v27  ;;  %3526 = vmatpush.bf16.msrb.mxu0 %v6989_v43  ;;  %v3297_v27 = vadd.f32 %v3296_v21, %v3284_v14  ;;  %v3309_v28 = vpop.f32.mrf.mxu3  ;;  %v8835_v43 = vld [vmem:[#allocation2 + $0x78c] sm:$0xf] }
 0x147   :  { %v8999_v31 = vld [vmem:[#allocation2 + $0xca4] sm:$0xf0]  ;;  %v6798_v8 = vld [vmem:[#allocation2 + $0x728] sm:$0xf0] }
 0x148   :  { %v7756_v36 = vld [vmem:[#allocation2 + $0xe88] sm:$0xf]  ;;  %v7501_v46 = vor.u32 %v8999_v31, %v7500_v30  ;;  %3539 = vmatpush.bf16.msrb.mxu1 %v7245_v45  ;;  %v6350_v30 = vld [vmem:[#allocation2 + $0x3a8] sm:$0xf0]  ;;  %v3310_v45 = vadd.f32 %v3309_v28, %v3297_v27  ;;  %v6801_v18 = vor.u32 %v8819_v7, %v6798_v8 }
 0x149   :  { %v9063_v39 = vld [vmem:[#allocation2 + $0xea4] sm:$0xf0]  ;;  %v8771_v31 = vld [vmem:[#allocation2 + $0x58c] sm:$0xf] }
 0x14a   :  { %v6956_v44 = vld [vmem:[#allocation2 + $0x848] sm:$0xf]  ;;  %v7757_v50 = vor.u32 %v9063_v39, %v7756_v36  ;;  %3552 = vmatpush.bf16.msrb.mxu2 %v7501_v46  ;;  %v6606_v36 = vld [vmem:[#allocation2 + $0x5a8] sm:$0xf0]  ;;  %v3272_v39 = vpop.f32.mrf.mxu0  ;;  %v6097_v46 = vor.u32 %v8643_v24, %v6094_v25 }
 0x14b   :  { %v8863_v47 = vld [vmem:[#allocation2 + $0x864] sm:$0xf0]  ;;  %v8619_v13 = vld [vmem:[#allocation2 + $0xcc] sm:$0xf] }
 0x14c   :  { %v7212_v48 = vld [vmem:[#allocation2 + $0xa48] sm:$0xf]  ;;  %v6957_v56 = vor.u32 %v8863_v47, %v6956_v44  ;;  %3565 = vmatpush.bf16.msrb.mxu3 %v7757_v50  ;;  %v6862_v44 = vld [vmem:[#allocation2 + $0x7a8] sm:$0xf0]  ;;  %v6353_v47 = vor.u32 %v8707_v26, %v6350_v30 }
 0x14d   :  { %v8927_v51 = vld [vmem:[#allocation2 + $0xa64] sm:$0xf0]  ;;  %v6062_v50 = vld [vmem:[#allocation2 + $0x168] sm:$0xf0] }
 0x14e   :  { %v7468_v52 = vld [vmem:[#allocation2 + $0xc48] sm:$0xf]  ;;  %v7213_v60 = vor.u32 %v8927_v51, %v7212_v48  ;;  %3527 = vmatpush.bf16.msrb.mxu0 %v6957_v56  ;;  %v6609_v48 = vor.u32 %v8771_v31, %v6606_v36  ;;  %v8699_v51 = vld [vmem:[#allocation2 + $0x34c] sm:$0xf]  ;;  %v6065_v59 = vor.u32 %v8635_v49, %v6062_v50 }
 0x14f   :  { %v8991_v53 = vld [vmem:[#allocation2 + $0xc64] sm:$0xf0]  ;;  %v6574_v56 = vld [vmem:[#allocation2 + $0x568] sm:$0xf0] }
 0x150   :  { %v7724_v54 = vld [vmem:[#allocation2 + $0xe48] sm:$0xf]  ;;  %v7469_v61 = vor.u32 %v8991_v53, %v7468_v52  ;;  %3540 = vmatpush.bf16.msrb.mxu1 %v7213_v60  ;;  %v3285_v52 = vpop.f32.mrf.mxu1  ;;  %v6865_v53 = vor.u32 %v8835_v43, %v6862_v44  ;;  %v3298_v60 = vpop.f32.mrf.mxu2  ;;  %v5998_v14 = vld [vmem:[#allocation2 + $0xe8] sm:$0xf0] }
 0x151   :  { %v9055_v55 = vld [vmem:[#allocation2 + $0xe64] sm:$0xf0]  ;;  %v6510_v21 = vld [vmem:[#allocation2 + $0x4e8] sm:$0xf0]  ;;  %v6001_v25 = vor.u32 %v8619_v13, %v5998_v14 }
 0x152   :  { %v6924_v57 = vld [vmem:[#allocation2 + $0x808] sm:$0xf]  ;;  %v7725_v2 = vor.u32 %v9055_v55, %v7724_v54  ;;  %3553 = vmatpush.bf16.msrb.mxu2 %v7469_v61  ;;  %v6318_v54 = vld [vmem:[#allocation2 + $0x368] sm:$0xf0] }
 0x153   :  { %v8855_v58 = vld [vmem:[#allocation2 + $0x824] sm:$0xf0]  ;;  %v8763_v55 = vld [vmem:[#allocation2 + $0x54c] sm:$0xf]  ;;  %v6321_v61 = vor.u32 %v8699_v51, %v6318_v54 }
 0x154   :  { %v7180_v62 = vld [vmem:[#allocation2 + $0xa08] sm:$0xf]  ;;  %v6925_v10 = vor.u32 %v8855_v58, %v6924_v57  ;;  %3566 = vmatpush.bf16.msrb.mxu3 %v7725_v2  ;;  %v8827_v57 = vld [vmem:[#allocation2 + $0x74c] sm:$0xf]  ;;  %v3311_v2 = vpop.f32.mrf.mxu3 }
 0x155   :  { %v8919_v63 = vld [vmem:[#allocation2 + $0xa24] sm:$0xf0]  ;;  %v6830_v58 = vld [vmem:[#allocation2 + $0x768] sm:$0xf0] }
 0x156   :  { %v7436_v0 = vld [vmem:[#allocation2 + $0xc08] sm:$0xf]  ;;  %v7181_v15 = vor.u32 %v8919_v63, %v7180_v62  ;;  %3528 = vmatpush.bf16.msrb.mxu0 %v6925_v10  ;;  %v6577_v62 = vor.u32 %v8763_v55, %v6574_v56  ;;  %v8627_v63 = vld [vmem:[#allocation2 + $0x10c] sm:$0xf]  ;;  %v3322_v10 = vpop.f32.mrf.mxu0 }
 0x157   :  { %v8983_v3 = vld [vmem:[#allocation2 + $0xc24] sm:$0xf0]  ;;  %v8611_v28 = vld [vmem:[#allocation2 + $0x8c] sm:$0xf] }
 0x158   :  { %v7692_v4 = vld [vmem:[#allocation2 + $0xe08] sm:$0xf]  ;;  %v7437_v16 = vor.u32 %v8983_v3, %v7436_v0  ;;  %3541 = vmatpush.bf16.msrb.mxu1 %v7181_v15  ;;  %v6030_v0 = vld [vmem:[#allocation2 + $0x128] sm:$0xf0]  ;;  %v6833_v3 = vor.u32 %v8827_v57, %v6830_v58  ;;  %v3335_v17 = vpop.f32.mrf.mxu1  ;;  %v3348_v31 = vpop.f32.mrf.mxu2 }
 0x159   :  { %v9047_v5 = vld [vmem:[#allocation2 + $0xe24] sm:$0xf0]  ;;  %3529 = vmatmul.bf16.vlgmr.msrb.gmra.mxu0 %v9633_v37  ;;  %v6033_v9 = vor.u32 %v8627_v63, %v6030_v0  ;;  %v8683_v15 = vld [vmem:[#allocation2 + $0x2cc] sm:$0xf] }
 0x15a   :  { %v7693_v19 = vor.u32 %v9047_v5, %v7692_v4  ;;  %3554 = vmatpush.bf16.msrb.mxu2 %v7437_v16  ;;  %3573 = vmatpush.bf16.msra.mxu0 %v6129_v20  ;;  %v6286_v4 = vld [vmem:[#allocation2 + $0x328] sm:$0xf0]  ;;  %v3323_v16 = vadd.f32 %v3322_v10, %v3310_v45 }
 0x15b   :  { %3542 = vmatmul.bf16.vlgmr.msrb.gmra.mxu1 %v9637_v40  ;;  %v8755_v5 = vld [vmem:[#allocation2 + $0x50c] sm:$0xf]  ;;  %v6289_v11 = vor.u32 %v8691_v1, %v6286_v4 }
 0x15c   :  { %3567 = vmatpush.bf16.msrb.mxu3 %v7693_v19  ;;  %3586 = vmatpush.bf16.msra.mxu1 %v6385_v22  ;;  %v6545_v12 = vor.u32 %v8755_v5, %v6542_v6  ;;  %v6254_v19 = vld [vmem:[#allocation2 + $0x2e8] sm:$0xf0]  ;;  %v3336_v24 = vadd.f32 %v3335_v17, %v3323_v16 }
 0x15d   :  { %3555 = vmatmul.bf16.vlgmr.msrb.gmra.mxu2 %v9631_v32  ;;  %v8747_v20 = vld [vmem:[#allocation2 + $0x4cc] sm:$0xf]  ;;  %v6257_v26 = vor.u32 %v8683_v15, %v6254_v19 }
 0x15e   :  { %3599 = vmatpush.bf16.msra.mxu2 %v6641_v23  ;;  %3574 = vmatpush.bf16.msra.mxu0 %v6097_v46  ;;  %v8811_v22 = vld [vmem:[#allocation2 + $0x6cc] sm:$0xf]  ;;  %v6513_v27 = vor.u32 %v8747_v20, %v6510_v21  ;;  %v3349_v45 = vadd.f32 %v3348_v31, %v3336_v24  ;;  %v3361_v46 = vpop.f32.mrf.mxu3  ;;  %v3324_v51 = vpop.f32.mrf.mxu0 }
 0x15f   :  { %3568 = vmatmul.bf16.vlgmr.msrb.gmra.mxu3 %v9635_v38  ;;  %v6766_v23 = vld [vmem:[#allocation2 + $0x6e8] sm:$0xf0] }
 0x160   :  { %3612 = vmatpush.bf16.msra.mxu3 %v6897_v29  ;;  %3587 = vmatpush.bf16.msra.mxu1 %v6353_v47  ;;  %v5966_v29 = vld [vmem:[#allocation2 + $0xa8] sm:$0xf0]  ;;  %v6769_v36 = vor.u32 %v8811_v22, %v6766_v23  ;;  %v9662_v50 = vadd.f32 %v3361_v46, %v3349_v45  ;;  %v3337_v57 = vpop.f32.mrf.mxu1  ;;  %v3350_v8 = vpop.f32.mrf.mxu2 }
 0x161   :  { %v8675_v30 = vld [vmem:[#allocation2 + $0x28c] sm:$0xf]  ;;  %v5969_v49 = vor.u32 %v8611_v28, %v5966_v29 }
 0x162   :  { %3600 = vmatpush.bf16.msra.mxu2 %v6609_v48  ;;  %3575 = vmatpush.bf16.msra.mxu0 %v6065_v59  ;;  %v6222_v39 = vld [vmem:[#allocation2 + $0x2a8] sm:$0xf0] }
 0x163   :  { %v8739_v43 = vld [vmem:[#allocation2 + $0x48c] sm:$0xf]  ;;  %v6225_v52 = vor.u32 %v8675_v30, %v6222_v39 }
 0x164   :  { %3613 = vmatpush.bf16.msra.mxu3 %v6865_v53  ;;  %3588 = vmatpush.bf16.msra.mxu1 %v6321_v61  ;;  %v6478_v44 = vld [vmem:[#allocation2 + $0x4a8] sm:$0xf0] }
 0x165   :  { %v8803_v47 = vld [vmem:[#allocation2 + $0x68c] sm:$0xf]  ;;  %v6481_v53 = vor.u32 %v8739_v43, %v6478_v44 }
 0x166   :  { %3601 = vmatpush.bf16.msra.mxu2 %v6577_v62  ;;  %3576 = vmatpush.bf16.msra.mxu0 %v6033_v9  ;;  %v6734_v48 = vld [vmem:[#allocation2 + $0x6a8] sm:$0xf0]  ;;  %v3363_v13 = vpop.f32.mrf.mxu3 }
 0x167   :  { %v8603_v54 = vld [vmem:[#allocation2 + $0x4c] sm:$0xf]  ;;  %v6737_v58 = vor.u32 %v8803_v47, %v6734_v48 }
 0x168   :  { %3614 = vmatpush.bf16.msra.mxu3 %v6833_v3  ;;  %3589 = vmatpush.bf16.msra.mxu1 %v6289_v11  ;;  %v5934_v55 = vld [vmem:[#allocation2 + $0x68] sm:$0xf0] }
 0x169   :  { %v8667_v56 = vld [vmem:[#allocation2 + $0x24c] sm:$0xf]  ;;  %v5937_v0 = vor.u32 %v8603_v54, %v5934_v55 }
 0x16a   :  { %3602 = vmatpush.bf16.msra.mxu2 %v6545_v12  ;;  %3577 = vmatpush.bf16.msra.mxu0 %v6001_v25  ;;  %v6190_v59 = vld [vmem:[#allocation2 + $0x268] sm:$0xf0] }
 0x16b   :  { %v8731_v60 = vld [vmem:[#allocation2 + $0x44c] sm:$0xf]  ;;  %v6193_v3 = vor.u32 %v8667_v56, %v6190_v59 }
 0x16c   :  { %3615 = vmatpush.bf16.msra.mxu3 %v6801_v18  ;;  %3590 = vmatpush.bf16.msra.mxu1 %v6257_v26  ;;  %v6446_v61 = vld [vmem:[#allocation2 + $0x468] sm:$0xf0] }
 0x16d   :  { %v8795_v62 = vld [vmem:[#allocation2 + $0x64c] sm:$0xf]  ;;  %v6449_v4 = vor.u32 %v8731_v60, %v6446_v61 }
 0x16e   :  { %3603 = vmatpush.bf16.msra.mxu2 %v6513_v27  ;;  %v6702_v63 = vld [vmem:[#allocation2 + $0x668] sm:$0xf0]  ;;  %3578 = vmatpush.bf16.msra.mxu0 %v5969_v49 }
 0x16f   :  { %v8595_v1 = vld [vmem:[#allocation2 + $0xc] sm:$0xf]  ;;  %v6705_v9 = vor.u32 %v8795_v62, %v6702_v63 }
 0x170   :  { %3616 = vmatpush.bf16.msra.mxu3 %v6769_v36  ;;  %v5902_v2 = vld [vmem:[#allocation2 + $0x28] sm:$0xf0]  ;;  %3591 = vmatpush.bf16.msra.mxu1 %v6225_v52 }
 0x171   :  { %v8659_v5 = vld [vmem:[#allocation2 + $0x20c] sm:$0xf]  ;;  %v5905_v17 = vor.u32 %v8595_v1, %v5902_v2  ;;  %v686_v2 = vperm.slane %v9655_v35, 1 }
 0x172   :  { %3604 = vmatpush.bf16.msra.mxu2 %v6481_v53  ;;  %v6158_v6 = vld [vmem:[#allocation2 + $0x228] sm:$0xf0]  ;;  %3579 = vmatpush.bf16.msra.mxu0 %v5937_v0 }
 0x173   :  { %v8723_v7 = vld [vmem:[#allocation2 + $0x40c] sm:$0xf]  ;;  %v6161_v21 = vor.u32 %v8659_v5, %v6158_v6 }
 0x174   :  { %3617 = vmatpush.bf16.msra.mxu3 %v6737_v58  ;;  %v6414_v10 = vld [vmem:[#allocation2 + $0x428] sm:$0xf0]  ;;  %3592 = vmatpush.bf16.msra.mxu1 %v6193_v3 }
 0x175   :  { %v8787_v11 = vld [vmem:[#allocation2 + $0x60c] sm:$0xf]  ;;  %v6417_v22 = vor.u32 %v8723_v7, %v6414_v10  ;;  %v3374_v10 = vpop.f32.mrf.mxu0 }
 0x176   :  { %v6670_v12 = vld [vmem:[#allocation2 + $0x628] sm:$0xf0]  ;;  %3605 = vmatpush.bf16.msra.mxu2 %v6449_v4  ;;  %3580 = vmatpush.bf16.msra.mxu0 %v5905_v17  ;;  %v3387_v17 = vpop.f32.mrf.mxu1 }
 0x177   :  { %v8907_v14 = vld [vmem:[#allocation2 + $0x9cc] sm:$0xf]  ;;  %v6673_v25 = vor.u32 %v8787_v11, %v6670_v12 }
 0x178   :  { %v7150_v15 = vld [vmem:[#allocation2 + $0x9e8] sm:$0xf0]  ;;  %3618 = vmatpush.bf16.msra.mxu3 %v6705_v9  ;;  %3593 = vmatpush.bf16.msra.mxu1 %v6161_v21 }
 0x179   :  { %v8971_v16 = vld [vmem:[#allocation2 + $0xbcc] sm:$0xf]  ;;  %v7153_v26 = vor.u32 %v8907_v14, %v7150_v15  ;;  %3581 = vmatmul.bf16.vlgmr.msra.gmra.mxu0 %v9618_v34 }
 0x17a   :  { %v7406_v18 = vld [vmem:[#allocation2 + $0xbe8] sm:$0xf0]  ;;  %3606 = vmatpush.bf16.msra.mxu2 %v6417_v22 }
 0x17b   :  { %v9035_v19 = vld [vmem:[#allocation2 + $0xdcc] sm:$0xf]  ;;  %v7409_v27 = vor.u32 %v8971_v16, %v7406_v18  ;;  %3625 = vmatpush.bf16.msrb.mxu0 %v7153_v26  ;;  %3594 = vmatmul.bf16.vlgmr.msra.gmra.mxu1 %v9622_v42  ;;  %v3375_v16 = vadd.f32 %v3374_v10, %v686_v2 }
 0x17c   :  { %v7662_v20 = vld [vmem:[#allocation2 + $0xde8] sm:$0xf0]  ;;  %3619 = vmatpush.bf16.msra.mxu3 %v6673_v25 }
 0x17d   :  { %v9099_v23 = vld [vmem:[#allocation2 + $0xfcc] sm:$0xf]  ;;  %v7665_v28 = vor.u32 %v9035_v19, %v7662_v20  ;;  %3638 = vmatpush.bf16.msrb.mxu1 %v7409_v27  ;;  %3607 = vmatmul.bf16.vlgmr.msra.gmra.mxu2 %v9616_v33 }
 0x17e   :  { %v7918_v24 = vld [vmem:[#allocation2 + $0xfe8] sm:$0xf0] }
 0x17f   :  { %v8899_v29 = vld [vmem:[#allocation2 + $0x98c] sm:$0xf]  ;;  %v7921_v36 = vor.u32 %v9099_v23, %v7918_v24  ;;  %3651 = vmatpush.bf16.msrb.mxu2 %v7665_v28  ;;  %3620 = vmatmul.bf16.vlgmr.msra.gmra.mxu3 %v9620_v41  ;;  %v3388_v23 = vadd.f32 %v3387_v17, %v3375_v16  ;;  %v6388_v16 = vld [vmem:[#allocation2 + $0x3d0] sm:$0xf] }
 0x180   :  { %v7118_v30 = vld [vmem:[#allocation2 + $0x9a8] sm:$0xf0] }
 0x181   :  { %v8963_v31 = vld [vmem:[#allocation2 + $0xb8c] sm:$0xf]  ;;  %v7121_v47 = vor.u32 %v8899_v29, %v7118_v30  ;;  %3664 = vmatpush.bf16.msrb.mxu3 %v7921_v36  ;;  %v3400_v30 = vpop.f32.mrf.mxu2 }
 0x182   :  { %v7374_v39 = vld [vmem:[#allocation2 + $0xba8] sm:$0xf0] }
 0x183   :  { %v9027_v43 = vld [vmem:[#allocation2 + $0xd8c] sm:$0xf]  ;;  %v7377_v48 = vor.u32 %v8963_v31, %v7374_v39  ;;  %3626 = vmatpush.bf16.msrb.mxu0 %v7121_v47 }
 0x184   :  { %v7630_v44 = vld [vmem:[#allocation2 + $0xda8] sm:$0xf0] }
 0x185   :  { %v9091_v45 = vld [vmem:[#allocation2 + $0xf8c] sm:$0xf]  ;;  %v7633_v49 = vor.u32 %v9027_v43, %v7630_v44  ;;  %3639 = vmatpush.bf16.msrb.mxu1 %v7377_v48  ;;  %v3401_v44 = vadd.f32 %v3400_v30, %v3388_v23  ;;  %v8848_v23 = vld [vmem:[#allocation2 + $0x7ec] sm:$0xf0] }
 0x186   :  { %v7886_v46 = vld [vmem:[#allocation2 + $0xfa8] sm:$0xf0]  ;;  %v6356_v30 = vld [vmem:[#allocation2 + $0x390] sm:$0xf] }
 0x187   :  { %v8891_v51 = vld [vmem:[#allocation2 + $0x94c] sm:$0xf]  ;;  %v7889_v54 = vor.u32 %v9091_v45, %v7886_v46  ;;  %3652 = vmatpush.bf16.msrb.mxu2 %v7633_v49  ;;  %v3413_v45 = vpop.f32.mrf.mxu3 }
 0x188   :  { %v7086_v52 = vld [vmem:[#allocation2 + $0x968] sm:$0xf0]  ;;  %v9669_v49 = vadd.f32 %v3413_v45, %v3401_v44  ;;  %v6868_v44 = vld [vmem:[#allocation2 + $0x790] sm:$0xf] }
 0x189   :  { %v8955_v53 = vld [vmem:[#allocation2 + $0xb4c] sm:$0xf]  ;;  %v7089_v60 = vor.u32 %v8891_v51, %v7086_v52  ;;  %3665 = vmatpush.bf16.msrb.mxu3 %v7889_v54  ;;  %v3376_v51 = vpop.f32.mrf.mxu0  ;;  %v8840_v45 = vld [vmem:[#allocation2 + $0x7ac] sm:$0xf0] }
 0x18a   :  { %v7342_v55 = vld [vmem:[#allocation2 + $0xb68] sm:$0xf0]  ;;  %v6068_v51 = vld [vmem:[#allocation2 + $0x150] sm:$0xf] }
 0x18b   :  { %v9019_v56 = vld [vmem:[#allocation2 + $0xd4c] sm:$0xf]  ;;  %v7345_v62 = vor.u32 %v8955_v53, %v7342_v55  ;;  %3627 = vmatpush.bf16.msrb.mxu0 %v7089_v60 }
 0x18c   :  { %v7598_v57 = vld [vmem:[#allocation2 + $0xd68] sm:$0xf0] }
 0x18d   :  { %v9083_v58 = vld [vmem:[#allocation2 + $0xf4c] sm:$0xf]  ;;  %v7601_v63 = vor.u32 %v9019_v56, %v7598_v57  ;;  %3640 = vmatpush.bf16.msrb.mxu1 %v7345_v62  ;;  %v3389_v57 = vpop.f32.mrf.mxu1 }
 0x18e   :  { %v7854_v59 = vld [vmem:[#allocation2 + $0xf68] sm:$0xf0]  ;;  %v8768_v57 = vld [vmem:[#allocation2 + $0x56c] sm:$0xf0] }
 0x18f   :  { %v8883_v61 = vld [vmem:[#allocation2 + $0x90c] sm:$0xf]  ;;  %v7857_v3 = vor.u32 %v9083_v58, %v7854_v59  ;;  %3653 = vmatpush.bf16.msrb.mxu2 %v7601_v63 }
 0x190   :  { %v7054_v0 = vld [vmem:[#allocation2 + $0x928] sm:$0xf0] }
 0x191   :  { %v8947_v1 = vld [vmem:[#allocation2 + $0xb0c] sm:$0xf]  ;;  %v7057_v9 = vor.u32 %v8883_v61, %v7054_v0  ;;  %3666 = vmatpush.bf16.msrb.mxu3 %v7857_v3 }
 0x192   :  { %v7310_v4 = vld [vmem:[#allocation2 + $0xb28] sm:$0xf0] }
 0x193   :  { %v9011_v5 = vld [vmem:[#allocation2 + $0xd0c] sm:$0xf]  ;;  %v7313_v11 = vor.u32 %v8947_v1, %v7310_v4  ;;  %3628 = vmatpush.bf16.msrb.mxu0 %v7057_v9 }
 0x194   :  { %v7566_v6 = vld [vmem:[#allocation2 + $0xd28] sm:$0xf0] }
 0x195   :  { %v9075_v7 = vld [vmem:[#allocation2 + $0xf0c] sm:$0xf]  ;;  %v7569_v12 = vor.u32 %v9011_v5, %v7566_v6  ;;  %3641 = vmatpush.bf16.msrb.mxu1 %v7313_v11 }
 0x196   :  { %v7822_v8 = vld [vmem:[#allocation2 + $0xf28] sm:$0xf0] }
 0x197   :  { %v8875_v13 = vld [vmem:[#allocation2 + $0x8cc] sm:$0xf]  ;;  %v7825_v35 = vor.u32 %v9075_v7, %v7822_v8  ;;  %3654 = vmatpush.bf16.msrb.mxu2 %v7569_v12  ;;  %v3402_v8 = vpop.f32.mrf.mxu2 }
 0x198   :  { %v7022_v14 = vld [vmem:[#allocation2 + $0x8e8] sm:$0xf0] }
 0x199   :  { %v8939_v15 = vld [vmem:[#allocation2 + $0xacc] sm:$0xf]  ;;  %v7025_v24 = vor.u32 %v8875_v13, %v7022_v14  ;;  %3667 = vmatpush.bf16.msrb.mxu3 %v7825_v35  ;;  %v3415_v13 = vpop.f32.mrf.mxu3  ;;  %v6132_v14 = vld [vmem:[#allocation2 + $0x1d0] sm:$0xf] }
 0x19a   :  { %v7278_v18 = vld [vmem:[#allocation2 + $0xae8] sm:$0xf0]  ;;  %v8720_v35 = vld [vmem:[#allocation2 + $0x3ec] sm:$0xf0] }
 0x19b   :  { %v9003_v19 = vld [vmem:[#allocation2 + $0xccc] sm:$0xf]  ;;  %v7281_v25 = vor.u32 %v8939_v15, %v7278_v18  ;;  %3629 = vmatpush.bf16.msrb.mxu0 %v7025_v24  ;;  %v8656_v15 = vld [vmem:[#allocation2 + $0x1ec] sm:$0xf0] }
 0x19c   :  { %v7534_v20 = vld [vmem:[#allocation2 + $0xce8] sm:$0xf0]  ;;  %v6644_v18 = vld [vmem:[#allocation2 + $0x5d0] sm:$0xf] }
 0x19d   :  { %v9067_v21 = vld [vmem:[#allocation2 + $0xecc] sm:$0xf]  ;;  %v7537_v26 = vor.u32 %v9003_v19, %v7534_v20  ;;  %3642 = vmatpush.bf16.msrb.mxu1 %v7281_v25  ;;  %v8784_v19 = vld [vmem:[#allocation2 + $0x5ec] sm:$0xf0]  ;;  %v6133_v25 = vor.u32 %v8656_v15, %v6132_v14 }
 0x19e   :  { %v7790_v22 = vld [vmem:[#allocation2 + $0xee8] sm:$0xf0]  ;;  %v8624_v13 = vld [vmem:[#allocation2 + $0xec] sm:$0xf0] }
 0x19f   :  { %v8867_v27 = vld [vmem:[#allocation2 + $0x88c] sm:$0xf]  ;;  %v7793_v31 = vor.u32 %v9067_v21, %v7790_v22  ;;  %3655 = vmatpush.bf16.msrb.mxu2 %v7537_v26  ;;  %v6900_v22 = vld [vmem:[#allocation2 + $0x7d0] sm:$0xf]  ;;  %v6389_v26 = vor.u32 %v8720_v35, %v6388_v16  ;;  %v3439_v16 = vpop.f32.mrf.mxu1 }
 0x1a0   :  { %v6990_v28 = vld [vmem:[#allocation2 + $0x8a8] sm:$0xf0]  ;;  %v6260_v14 = vld [vmem:[#allocation2 + $0x2d0] sm:$0xf] }
 0x1a1   :  { %v8931_v29 = vld [vmem:[#allocation2 + $0xa8c] sm:$0xf]  ;;  %v6993_v48 = vor.u32 %v8867_v27, %v6990_v28  ;;  %3668 = vmatpush.bf16.msrb.mxu3 %v7793_v31  ;;  %v6645_v27 = vor.u32 %v8784_v19, %v6644_v18  ;;  %v6100_v28 = vld [vmem:[#allocation2 + $0x190] sm:$0xf]  ;;  %v6901_v31 = vor.u32 %v8848_v23, %v6900_v22 }
 0x1a2   :  { %v7246_v36 = vld [vmem:[#allocation2 + $0xaa8] sm:$0xf0]  ;;  %v8688_v35 = vld [vmem:[#allocation2 + $0x2ec] sm:$0xf0] }
 0x1a3   :  { %v8995_v39 = vld [vmem:[#allocation2 + $0xc8c] sm:$0xf]  ;;  %v7249_v52 = vor.u32 %v8931_v29, %v7246_v36  ;;  %3630 = vmatpush.bf16.msrb.mxu0 %v6993_v48  ;;  %v8648_v29 = vld [vmem:[#allocation2 + $0x1ac] sm:$0xf0] }
 0x1a4   :  { %v7502_v43 = vld [vmem:[#allocation2 + $0xca8] sm:$0xf0]  ;;  %v8712_v36 = vld [vmem:[#allocation2 + $0x3ac] sm:$0xf0] }
 0x1a5   :  { %v9059_v46 = vld [vmem:[#allocation2 + $0xe8c] sm:$0xf]  ;;  %v7505_v53 = vor.u32 %v8995_v39, %v7502_v43  ;;  %3643 = vmatpush.bf16.msrb.mxu1 %v7249_v52  ;;  %v6612_v39 = vld [vmem:[#allocation2 + $0x590] sm:$0xf] }
 0x1a6   :  { %v7758_v47 = vld [vmem:[#allocation2 + $0xea8] sm:$0xf0]  ;;  %v8776_v43 = vld [vmem:[#allocation2 + $0x5ac] sm:$0xf0] }
 0x1a7   :  { %v8859_v54 = vld [vmem:[#allocation2 + $0x84c] sm:$0xf]  ;;  %v7761_v58 = vor.u32 %v9059_v46, %v7758_v47  ;;  %3656 = vmatpush.bf16.msrb.mxu2 %v7505_v53  ;;  %v6101_v46 = vor.u32 %v8648_v29, %v6100_v28  ;;  %v6357_v47 = vor.u32 %v8712_v36, %v6356_v30  ;;  %v6613_v48 = vor.u32 %v8776_v43, %v6612_v39  ;;  %v8640_v52 = vld [vmem:[#allocation2 + $0x16c] sm:$0xf0]  ;;  %v3452_v29 = vpop.f32.mrf.mxu2  ;;  %v3465_v43 = vpop.f32.mrf.mxu3 }
 0x1a8   :  { %v6958_v55 = vld [vmem:[#allocation2 + $0x868] sm:$0xf0]  ;;  %v6324_v53 = vld [vmem:[#allocation2 + $0x350] sm:$0xf] }
 0x1a9   :  { %v8923_v56 = vld [vmem:[#allocation2 + $0xa4c] sm:$0xf]  ;;  %v6961_v0 = vor.u32 %v8859_v54, %v6958_v55  ;;  %3669 = vmatpush.bf16.msrb.mxu3 %v7761_v58  ;;  %v6869_v54 = vor.u32 %v8840_v45, %v6868_v44  ;;  %v8704_v55 = vld [vmem:[#allocation2 + $0x36c] sm:$0xf0] }
 0x1aa   :  { %v7214_v59 = vld [vmem:[#allocation2 + $0xa68] sm:$0xf0]  ;;  %v6836_v58 = vld [vmem:[#allocation2 + $0x750] sm:$0xf] }
 0x1ab   :  { %v8987_v60 = vld [vmem:[#allocation2 + $0xc4c] sm:$0xf]  ;;  %v7217_v3 = vor.u32 %v8923_v56, %v7214_v59  ;;  %3631 = vmatpush.bf16.msrb.mxu0 %v6961_v0  ;;  %v6580_v56 = vld [vmem:[#allocation2 + $0x550] sm:$0xf] }
 0x1ac   :  { %v7470_v61 = vld [vmem:[#allocation2 + $0xc68] sm:$0xf0]  ;;  %v8832_v59 = vld [vmem:[#allocation2 + $0x76c] sm:$0xf0] }
 0x1ad   :  { %v9051_v62 = vld [vmem:[#allocation2 + $0xe4c] sm:$0xf]  ;;  %v7473_v4 = vor.u32 %v8987_v60, %v7470_v61  ;;  %3644 = vmatpush.bf16.msrb.mxu1 %v7217_v3  ;;  %v6069_v60 = vor.u32 %v8640_v52, %v6068_v51  ;;  %v6325_v61 = vor.u32 %v8704_v55, %v6324_v53  ;;  %v8632_v0 = vld [vmem:[#allocation2 + $0x12c] sm:$0xf0] }
 0x1ae   :  { %v7726_v63 = vld [vmem:[#allocation2 + $0xe68] sm:$0xf0]  ;;  %v8696_v3 = vld [vmem:[#allocation2 + $0x32c] sm:$0xf0] }
 0x1af   :  { %v8851_v1 = vld [vmem:[#allocation2 + $0x80c] sm:$0xf]  ;;  %v7729_v9 = vor.u32 %v9051_v62, %v7726_v63  ;;  %3657 = vmatpush.bf16.msrb.mxu2 %v7473_v4  ;;  %v6581_v62 = vor.u32 %v8768_v57, %v6580_v56  ;;  %v6036_v63 = vld [vmem:[#allocation2 + $0x110] sm:$0xf]  ;;  %v3441_v56 = vpop.f32.mrf.mxu1 }
 0x1b0   :  { %v6926_v2 = vld [vmem:[#allocation2 + $0x828] sm:$0xf0]  ;;  %v6548_v4 = vld [vmem:[#allocation2 + $0x510] sm:$0xf]  ;;  %v6037_v8 = vor.u32 %v8632_v0, %v6036_v63 }
 0x1b1   :  { %v8915_v5 = vld [vmem:[#allocation2 + $0xa0c] sm:$0xf]  ;;  %v6929_v17 = vor.u32 %v8851_v1, %v6926_v2  ;;  %3670 = vmatpush.bf16.msrb.mxu3 %v7729_v9  ;;  %v6292_v1 = vld [vmem:[#allocation2 + $0x310] sm:$0xf]  ;;  %v6837_v2 = vor.u32 %v8832_v59, %v6836_v58  ;;  %v3426_v9 = vpop.f32.mrf.mxu0 }
 0x1b2   :  { %v7182_v6 = vld [vmem:[#allocation2 + $0xa28] sm:$0xf0]  ;;  %v3427_v15 = vadd.f32 %v3426_v9, %v9669_v49  ;;  %v6516_v18 = vld [vmem:[#allocation2 + $0x4d0] sm:$0xf] }
 0x1b3   :  { %v8979_v7 = vld [vmem:[#allocation2 + $0xc0c] sm:$0xf]  ;;  %v7185_v20 = vor.u32 %v8915_v5, %v7182_v6  ;;  %3632 = vmatpush.bf16.msrb.mxu0 %v6929_v17  ;;  %v8760_v5 = vld [vmem:[#allocation2 + $0x52c] sm:$0xf0] }
 0x1b4   :  { %v7438_v10 = vld [vmem:[#allocation2 + $0xc28] sm:$0xf0]  ;;  %v6804_v6 = vld [vmem:[#allocation2 + $0x710] sm:$0xf]  ;;  %v3440_v22 = vadd.f32 %v3439_v16, %v3427_v15 }
 0x1b5   :  { %v9043_v11 = vld [vmem:[#allocation2 + $0xe0c] sm:$0xf]  ;;  %v7441_v21 = vor.u32 %v8979_v7, %v7438_v10  ;;  %3645 = vmatpush.bf16.msrb.mxu1 %v7185_v20  ;;  %v8824_v7 = vld [vmem:[#allocation2 + $0x72c] sm:$0xf0]  ;;  %v6293_v10 = vor.u32 %v8696_v3, %v6292_v1 }
 0x1b6   :  { %v7694_v12 = vld [vmem:[#allocation2 + $0xe28] sm:$0xf0]  ;;  %3633 = vmatmul.bf16.vlgmr.msrb.gmra.mxu0 %v9633_v37  ;;  %v6805_v17 = vor.u32 %v8824_v7, %v6804_v6  ;;  %v8752_v19 = vld [vmem:[#allocation2 + $0x4ec] sm:$0xf0]  ;;  %v3453_v39 = vadd.f32 %v3452_v29, %v3440_v22  ;;  %v3454_v7 = vpop.f32.mrf.mxu2 }
 0x1b7   :  { %v7697_v24 = vor.u32 %v9043_v11, %v7694_v12  ;;  %3658 = vmatpush.bf16.msrb.mxu2 %v7441_v21  ;;  %3677 = vmatpush.bf16.msra.mxu0 %v6133_v25  ;;  %v6549_v11 = vor.u32 %v8760_v5, %v6548_v4  ;;  %v6004_v12 = vld [vmem:[#allocation2 + $0xd0] sm:$0xf]  ;;  %v6517_v25 = vor.u32 %v8752_v19, %v6516_v18 }
 0x1b8   :  { %3646 = vmatmul.bf16.vlgmr.msrb.gmra.mxu1 %v9637_v40  ;;  %v6772_v20 = vld [vmem:[#allocation2 + $0x6d0] sm:$0xf]  ;;  %v6005_v23 = vor.u32 %v8624_v13, %v6004_v12  ;;  %v3467_v12 = vpop.f32.mrf.mxu3 }
 0x1b9   :  { %3671 = vmatpush.bf16.msrb.mxu3 %v7697_v24  ;;  %3690 = vmatpush.bf16.msra.mxu1 %v6389_v26  ;;  %v8816_v21 = vld [vmem:[#allocation2 + $0x6ec] sm:$0xf0]  ;;  %v6261_v24 = vor.u32 %v8688_v35, %v6260_v14 }
 0x1ba   :  { %3659 = vmatmul.bf16.vlgmr.msrb.gmra.mxu2 %v9631_v32  ;;  %v5972_v26 = vld [vmem:[#allocation2 + $0x90] sm:$0xf]  ;;  %v6773_v49 = vor.u32 %v8816_v21, %v6772_v20 }
 0x1bb   :  { %3703 = vmatpush.bf16.msra.mxu2 %v6645_v27  ;;  %3678 = vmatpush.bf16.msra.mxu0 %v6101_v46  ;;  %v8616_v27 = vld [vmem:[#allocation2 + $0xac] sm:$0xf0] }
 0x1bc   :  { %3672 = vmatmul.bf16.vlgmr.msrb.gmra.mxu3 %v9635_v38  ;;  %v6228_v28 = vld [vmem:[#allocation2 + $0x290] sm:$0xf]  ;;  %v5973_v46 = vor.u32 %v8616_v27, %v5972_v26 }
 0x1bd   :  { %3716 = vmatpush.bf16.msra.mxu3 %v6901_v31  ;;  %3691 = vmatpush.bf16.msra.mxu1 %v6357_v47  ;;  %v8680_v30 = vld [vmem:[#allocation2 + $0x2ac] sm:$0xf0]  ;;  %v9676_v47 = vadd.f32 %v3465_v43, %v3453_v39 }
 0x1be   :  { %v6484_v31 = vld [vmem:[#allocation2 + $0x490] sm:$0xf]  ;;  %v6229_v51 = vor.u32 %v8680_v30, %v6228_v28 }
 0x1bf   :  { %3704 = vmatpush.bf16.msra.mxu2 %v6613_v48  ;;  %3679 = vmatpush.bf16.msra.mxu0 %v6069_v60  ;;  %v8744_v36 = vld [vmem:[#allocation2 + $0x4ac] sm:$0xf0]  ;;  %v3428_v48 = vpop.f32.mrf.mxu0 }
 0x1c0   :  { %v6740_v44 = vld [vmem:[#allocation2 + $0x690] sm:$0xf]  ;;  %v6485_v52 = vor.u32 %v8744_v36, %v6484_v31 }
 0x1c1   :  { %3717 = vmatpush.bf16.msra.mxu3 %v6869_v54  ;;  %3692 = vmatpush.bf16.msra.mxu1 %v6325_v61  ;;  %v8808_v45 = vld [vmem:[#allocation2 + $0x6ac] sm:$0xf0] }
 0x1c2   :  { %v5940_v53 = vld [vmem:[#allocation2 + $0x50] sm:$0xf]  ;;  %v6741_v57 = vor.u32 %v8808_v45, %v6740_v44 }
 0x1c3   :  { %3705 = vmatpush.bf16.msra.mxu2 %v6581_v62  ;;  %3680 = vmatpush.bf16.msra.mxu0 %v6037_v8  ;;  %v8608_v54 = vld [vmem:[#allocation2 + $0x6c] sm:$0xf0] }
 0x1c4   :  { %v6196_v55 = vld [vmem:[#allocation2 + $0x250] sm:$0xf]  ;;  %v5941_v63 = vor.u32 %v8608_v54, %v5940_v53 }
 0x1c5   :  { %3718 = vmatpush.bf16.msra.mxu3 %v6837_v2  ;;  %3693 = vmatpush.bf16.msra.mxu1 %v6293_v10  ;;  %v8672_v58 = vld [vmem:[#allocation2 + $0x26c] sm:$0xf0] }
 0x1c6   :  { %v6452_v59 = vld [vmem:[#allocation2 + $0x450] sm:$0xf]  ;;  %v6197_v2 = vor.u32 %v8672_v58, %v6196_v55 }
 0x1c7   :  { %3706 = vmatpush.bf16.msra.mxu2 %v6549_v11  ;;  %3681 = vmatpush.bf16.msra.mxu0 %v6005_v23  ;;  %v8736_v60 = vld [vmem:[#allocation2 + $0x46c] sm:$0xf0] }
 0x1c8   :  { %v6708_v61 = vld [vmem:[#allocation2 + $0x650] sm:$0xf]  ;;  %v6453_v3 = vor.u32 %v8736_v60, %v6452_v59 }
 0x1c9   :  { %3719 = vmatpush.bf16.msra.mxu3 %v6805_v17  ;;  %3694 = vmatpush.bf16.msra.mxu1 %v6261_v24  ;;  %v8800_v62 = vld [vmem:[#allocation2 + $0x66c] sm:$0xf0] }
 0x1ca   :  { %v5908_v0 = vld [vmem:[#allocation2 + $0x10] sm:$0xf]  ;;  %v6709_v8 = vor.u32 %v8800_v62, %v6708_v61 }
 0x1cb   :  { %3707 = vmatpush.bf16.msra.mxu2 %v6517_v25  ;;  %3682 = vmatpush.bf16.msra.mxu0 %v5973_v46  ;;  %v8600_v1 = vld [vmem:[#allocation2 + $0x2c] sm:$0xf0] }
 0x1cc   :  { %v6164_v4 = vld [vmem:[#allocation2 + $0x210] sm:$0xf]  ;;  %v5909_v16 = vor.u32 %v8600_v1, %v5908_v0  ;;  %v9682_v1 = vld [vmem:[#allocation5] sm:$0xff] }
 0x1cd   :  { %3720 = vmatpush.bf16.msra.mxu3 %v6773_v49  ;;  %3695 = vmatpush.bf16.msra.mxu1 %v6229_v51  ;;  %v8664_v5 = vld [vmem:[#allocation2 + $0x22c] sm:$0xf0] }
 0x1ce   :  { %v6420_v6 = vld [vmem:[#allocation2 + $0x410] sm:$0xf]  ;;  %v6165_v19 = vor.u32 %v8664_v5, %v6164_v4 }
 0x1cf   :  { %3708 = vmatpush.bf16.msra.mxu2 %v6485_v52  ;;  %v8728_v9 = vld [vmem:[#allocation2 + $0x42c] sm:$0xf0]  ;;  %3683 = vmatpush.bf16.msra.mxu0 %v5941_v63 }
 0x1d0   :  { %v6676_v10 = vld [vmem:[#allocation2 + $0x610] sm:$0xf]  ;;  %v6421_v20 = vor.u32 %v8728_v9, %v6420_v6 }
 0x1d1   :  { %3721 = vmatpush.bf16.msra.mxu3 %v6741_v57  ;;  %v8792_v11 = vld [vmem:[#allocation2 + $0x62c] sm:$0xf0]  ;;  %3696 = vmatpush.bf16.msra.mxu1 %v6197_v2  ;;  %v687_v2 = vperm.slane %v9682_v1, 2 }
 0x1d2   :  { %v7156_v13 = vld [vmem:[#allocation2 + $0x9d0] sm:$0xf]  ;;  %v6677_v23 = vor.u32 %v8792_v11, %v6676_v10  ;;  %v3478_v10 = vpop.f32.mrf.mxu0 }
 0x1d3   :  { %v8912_v14 = vld [vmem:[#allocation2 + $0x9ec] sm:$0xf0]  ;;  %3709 = vmatpush.bf16.msra.mxu2 %v6453_v3  ;;  %3684 = vmatpush.bf16.msra.mxu0 %v5909_v16  ;;  %v3479_v16 = vadd.f32 %v3478_v10, %v687_v2 }
 0x1d4   :  { %v7412_v15 = vld [vmem:[#allocation2 + $0xbd0] sm:$0xf]  ;;  %v7157_v24 = vor.u32 %v8912_v14, %v7156_v13 }
 0x1d5   :  { %v8976_v17 = vld [vmem:[#allocation2 + $0xbec] sm:$0xf0]  ;;  %3722 = vmatpush.bf16.msra.mxu3 %v6709_v8  ;;  %3697 = vmatpush.bf16.msra.mxu1 %v6165_v19 }
 0x1d6   :  { %v7668_v35 = vld [vmem:[#allocation2 + $0xdd0] sm:$0xf]  ;;  %v7413_v25 = vor.u32 %v8976_v17, %v7412_v15  ;;  %3685 = vmatmul.bf16.vlgmr.msra.gmra.mxu0 %v9618_v34  ;;  %v3491_v17 = vpop.f32.mrf.mxu1 }
 0x1d7   :  { %v9040_v18 = vld [vmem:[#allocation2 + $0xdec] sm:$0xf0]  ;;  %3710 = vmatpush.bf16.msra.mxu2 %v6421_v20  ;;  %3729 = vmatpush.bf16.msrb.mxu0 %v7157_v24 }
 0x1d8   :  { %v7924_v21 = vld [vmem:[#allocation2 + $0xfd0] sm:$0xf]  ;;  %v7669_v26 = vor.u32 %v9040_v18, %v7668_v35  ;;  %3698 = vmatmul.bf16.vlgmr.msra.gmra.mxu1 %v9622_v42 }
 0x1d9   :  { %v9104_v22 = vld [vmem:[#allocation2 + $0xfec] sm:$0xf0]  ;;  %3723 = vmatpush.bf16.msra.mxu3 %v6677_v23  ;;  %3742 = vmatpush.bf16.msrb.mxu1 %v7413_v25  ;;  %v3492_v23 = vadd.f32 %v3491_v17, %v3479_v16  ;;  %v8652_v16 = vld [vmem:[#allocation2 + $0x1d4] sm:$0xf] }
 0x1da   :  { %v7124_v27 = vld [vmem:[#allocation2 + $0x990] sm:$0xf]  ;;  %v7925_v49 = vor.u32 %v9104_v22, %v7924_v21  ;;  %3711 = vmatmul.bf16.vlgmr.msra.gmra.mxu2 %v9616_v33  ;;  %v6134_v17 = vld [vmem:[#allocation2 + $0x1f0] sm:$0xf0] }
 0x1db   :  { %v8904_v28 = vld [vmem:[#allocation2 + $0x9ac] sm:$0xf0]  ;;  %3755 = vmatpush.bf16.msrb.mxu2 %v7669_v26 }
 0x1dc   :  { %v7380_v29 = vld [vmem:[#allocation2 + $0xb90] sm:$0xf]  ;;  %v7125_v44 = vor.u32 %v8904_v28, %v7124_v27  ;;  %3724 = vmatmul.bf16.vlgmr.msra.gmra.mxu3 %v9620_v41 }
 0x1dd   :  { %v8968_v30 = vld [vmem:[#allocation2 + $0xbac] sm:$0xf0]  ;;  %3768 = vmatpush.bf16.msrb.mxu3 %v7925_v49  ;;  %v3504_v49 = vpop.f32.mrf.mxu2 }
 0x1de   :  { %v7636_v31 = vld [vmem:[#allocation2 + $0xd90] sm:$0xf]  ;;  %v7381_v45 = vor.u32 %v8968_v30, %v7380_v29  ;;  %3730 = vmatpush.bf16.msrb.mxu0 %v7125_v44  ;;  %v3517_v44 = vpop.f32.mrf.mxu3 }
 0x1df   :  { %v9032_v36 = vld [vmem:[#allocation2 + $0xdac] sm:$0xf0] }
 0x1e0   :  { %v7892_v39 = vld [vmem:[#allocation2 + $0xf90] sm:$0xf]  ;;  %v7637_v46 = vor.u32 %v9032_v36, %v7636_v31  ;;  %3743 = vmatpush.bf16.msrb.mxu1 %v7381_v45 }
 0x1e1   :  { %v9096_v43 = vld [vmem:[#allocation2 + $0xfac] sm:$0xf0] }
 0x1e2   :  { %v7092_v48 = vld [vmem:[#allocation2 + $0x950] sm:$0xf]  ;;  %v7893_v53 = vor.u32 %v9096_v43, %v7892_v39  ;;  %3756 = vmatpush.bf16.msrb.mxu2 %v7637_v46  ;;  %v3505_v43 = vadd.f32 %v3504_v49, %v3492_v23  ;;  %v8644_v49 = vld [vmem:[#allocation2 + $0x194] sm:$0xf] }
 0x1e3   :  { %v8896_v51 = vld [vmem:[#allocation2 + $0x96c] sm:$0xf0] }
 0x1e4   :  { %v7348_v52 = vld [vmem:[#allocation2 + $0xb50] sm:$0xf]  ;;  %v7093_v59 = vor.u32 %v8896_v51, %v7092_v48  ;;  %3769 = vmatpush.bf16.msrb.mxu3 %v7893_v53  ;;  %v9685_v51 = vadd.f32 %v3517_v44, %v3505_v43  ;;  %v8772_v43 = vld [vmem:[#allocation2 + $0x594] sm:$0xf] }
 0x1e5   :  { %v8960_v54 = vld [vmem:[#allocation2 + $0xb6c] sm:$0xf0]  ;;  %v3506_v10 = vpop.f32.mrf.mxu2  ;;  %v6614_v44 = vld [vmem:[#allocation2 + $0x5b0] sm:$0xf0] }
 0x1e6   :  { %v7604_v55 = vld [vmem:[#allocation2 + $0xd50] sm:$0xf]  ;;  %v7349_v61 = vor.u32 %v8960_v54, %v7348_v52  ;;  %3731 = vmatpush.bf16.msrb.mxu0 %v7093_v59  ;;  %v3480_v52 = vpop.f32.mrf.mxu0  ;;  %v8820_v10 = vld [vmem:[#allocation2 + $0x714] sm:$0xf] }
 0x1e7   :  { %v9024_v56 = vld [vmem:[#allocation2 + $0xd6c] sm:$0xf0] }
 0x1e8   :  { %v7860_v57 = vld [vmem:[#allocation2 + $0xf50] sm:$0xf]  ;;  %v7605_v62 = vor.u32 %v9024_v56, %v7604_v55  ;;  %3744 = vmatpush.bf16.msrb.mxu1 %v7349_v61 }
 0x1e9   :  { %v9088_v58 = vld [vmem:[#allocation2 + $0xf6c] sm:$0xf0] }
 0x1ea   :  { %v7060_v60 = vld [vmem:[#allocation2 + $0x910] sm:$0xf]  ;;  %v7861_v3 = vor.u32 %v9088_v58, %v7860_v57  ;;  %3757 = vmatpush.bf16.msrb.mxu2 %v7605_v62  ;;  %v3493_v58 = vpop.f32.mrf.mxu1 }
 0x1eb   :  { %v8888_v63 = vld [vmem:[#allocation2 + $0x92c] sm:$0xf0]  ;;  %v6326_v58 = vld [vmem:[#allocation2 + $0x370] sm:$0xf0] }
 0x1ec   :  { %v7316_v0 = vld [vmem:[#allocation2 + $0xb10] sm:$0xf]  ;;  %v7061_v9 = vor.u32 %v8888_v63, %v7060_v60  ;;  %3770 = vmatpush.bf16.msrb.mxu3 %v7861_v3 }
 0x1ed   :  { %v8952_v4 = vld [vmem:[#allocation2 + $0xb2c] sm:$0xf0] }
 0x1ee   :  { %v7572_v5 = vld [vmem:[#allocation2 + $0xd10] sm:$0xf]  ;;  %v7317_v11 = vor.u32 %v8952_v4, %v7316_v0  ;;  %3732 = vmatpush.bf16.msrb.mxu0 %v7061_v9 }
 0x1ef   :  { %v9016_v6 = vld [vmem:[#allocation2 + $0xd2c] sm:$0xf0] }
 0x1f0   :  { %v7828_v7 = vld [vmem:[#allocation2 + $0xf10] sm:$0xf]  ;;  %v7573_v12 = vor.u32 %v9016_v6, %v7572_v5  ;;  %3745 = vmatpush.bf16.msrb.mxu1 %v7317_v11 }
 0x1f1   :  { %v9080_v8 = vld [vmem:[#allocation2 + $0xf2c] sm:$0xf0] }
 0x1f2   :  { %v7028_v13 = vld [vmem:[#allocation2 + $0x8d0] sm:$0xf]  ;;  %v7829_v35 = vor.u32 %v9080_v8, %v7828_v7  ;;  %3758 = vmatpush.bf16.msrb.mxu2 %v7573_v12 }
 0x1f3   :  { %v8880_v14 = vld [vmem:[#allocation2 + $0x8ec] sm:$0xf0] }
 0x1f4   :  { %v7284_v15 = vld [vmem:[#allocation2 + $0xad0] sm:$0xf]  ;;  %v7029_v24 = vor.u32 %v8880_v14, %v7028_v13  ;;  %3771 = vmatpush.bf16.msrb.mxu3 %v7829_v35  ;;  %v8716_v35 = vld [vmem:[#allocation2 + $0x3d4] sm:$0xf] }
 0x1f5   :  { %v8944_v18 = vld [vmem:[#allocation2 + $0xaec] sm:$0xf0] }
 0x1f6   :  { %v7540_v19 = vld [vmem:[#allocation2 + $0xcd0] sm:$0xf]  ;;  %v7285_v25 = vor.u32 %v8944_v18, %v7284_v15  ;;  %3733 = vmatpush.bf16.msrb.mxu0 %v7029_v24  ;;  %v3519_v15 = vpop.f32.mrf.mxu3  ;;  %v8844_v24 = vld [vmem:[#allocation2 + $0x7d4] sm:$0xf] }
 0x1f7   :  { %v9008_v20 = vld [vmem:[#allocation2 + $0xcec] sm:$0xf0] }
 0x1f8   :  { %v7796_v21 = vld [vmem:[#allocation2 + $0xed0] sm:$0xf]  ;;  %v7541_v26 = vor.u32 %v9008_v20, %v7540_v19  ;;  %3746 = vmatpush.bf16.msrb.mxu1 %v7285_v25  ;;  %v6390_v19 = vld [vmem:[#allocation2 + $0x3f0] sm:$0xf0] }
 0x1f9   :  { %v9072_v22 = vld [vmem:[#allocation2 + $0xeec] sm:$0xf0]  ;;  %v8780_v20 = vld [vmem:[#allocation2 + $0x5d4] sm:$0xf] }
 0x1fa   :  { %v6996_v27 = vld [vmem:[#allocation2 + $0x890] sm:$0xf]  ;;  %v7797_v30 = vor.u32 %v9072_v22, %v7796_v21  ;;  %3759 = vmatpush.bf16.msrb.mxu2 %v7541_v26  ;;  %v6646_v21 = vld [vmem:[#allocation2 + $0x5f0] sm:$0xf0] }
 0x1fb   :  { %v8872_v28 = vld [vmem:[#allocation2 + $0x8ac] sm:$0xf0]  ;;  %v6902_v25 = vld [vmem:[#allocation2 + $0x7f0] sm:$0xf0] }
 0x1fc   :  { %v7252_v29 = vld [vmem:[#allocation2 + $0xa90] sm:$0xf]  ;;  %v6997_v48 = vor.u32 %v8872_v28, %v6996_v27  ;;  %3772 = vmatpush.bf16.msrb.mxu3 %v7797_v30  ;;  %v6137_v27 = vor.u32 %v8652_v16, %v6134_v17  ;;  %v6393_v28 = vor.u32 %v8716_v35, %v6390_v19  ;;  %v6102_v30 = vld [vmem:[#allocation2 + $0x1b0] sm:$0xf0]  ;;  %v3543_v19 = vpop.f32.mrf.mxu1 }
 0x1fd   :  { %v8936_v31 = vld [vmem:[#allocation2 + $0xaac] sm:$0xf0]  ;;  %v8620_v16 = vld [vmem:[#allocation2 + $0xd4] sm:$0xf] }
 0x1fe   :  { %v7508_v36 = vld [vmem:[#allocation2 + $0xc90] sm:$0xf]  ;;  %v7253_v53 = vor.u32 %v8936_v31, %v7252_v29  ;;  %3734 = vmatpush.bf16.msrb.mxu0 %v6997_v48  ;;  %v6649_v29 = vor.u32 %v8780_v20, %v6646_v21  ;;  %v8708_v31 = vld [vmem:[#allocation2 + $0x394] sm:$0xf]  ;;  %v6105_v48 = vor.u32 %v8644_v49, %v6102_v30 }
 0x1ff   :  { %v9000_v39 = vld [vmem:[#allocation2 + $0xcac] sm:$0xf0]  ;;  %v6006_v17 = vld [vmem:[#allocation2 + $0xf0] sm:$0xf0] }
 0x200   :  { %v7764_v45 = vld [vmem:[#allocation2 + $0xe90] sm:$0xf]  ;;  %v7509_v54 = vor.u32 %v9000_v39, %v7508_v36  ;;  %3747 = vmatpush.bf16.msrb.mxu1 %v7253_v53  ;;  %v6905_v36 = vor.u32 %v8844_v24, %v6902_v25  ;;  %v6358_v39 = vld [vmem:[#allocation2 + $0x3b0] sm:$0xf0]  ;;  %v6617_v53 = vor.u32 %v8772_v43, %v6614_v44 }
 0x201   :  { %v9064_v46 = vld [vmem:[#allocation2 + $0xeac] sm:$0xf0]  ;;  %v6361_v52 = vor.u32 %v8708_v31, %v6358_v39  ;;  %v8684_v35 = vld [vmem:[#allocation2 + $0x2d4] sm:$0xf] }
 0x202   :  { %v6964_v55 = vld [vmem:[#allocation2 + $0x850] sm:$0xf]  ;;  %v7765_v59 = vor.u32 %v9064_v46, %v7764_v45  ;;  %3760 = vmatpush.bf16.msrb.mxu2 %v7509_v54  ;;  %v8836_v45 = vld [vmem:[#allocation2 + $0x794] sm:$0xf] }
 0x203   :  { %v8864_v56 = vld [vmem:[#allocation2 + $0x86c] sm:$0xf0]  ;;  %v6870_v46 = vld [vmem:[#allocation2 + $0x7b0] sm:$0xf0] }
 0x204   :  { %v7220_v57 = vld [vmem:[#allocation2 + $0xa50] sm:$0xf]  ;;  %v6965_v2 = vor.u32 %v8864_v56, %v6964_v55  ;;  %3773 = vmatpush.bf16.msrb.mxu3 %v7765_v59  ;;  %v8636_v54 = vld [vmem:[#allocation2 + $0x154] sm:$0xf] }
 0x205   :  { %v8928_v60 = vld [vmem:[#allocation2 + $0xa6c] sm:$0xf0]  ;;  %v6070_v55 = vld [vmem:[#allocation2 + $0x170] sm:$0xf0] }
 0x206   :  { %v7476_v61 = vld [vmem:[#allocation2 + $0xc50] sm:$0xf]  ;;  %v7221_v5 = vor.u32 %v8928_v60, %v7220_v57  ;;  %3735 = vmatpush.bf16.msrb.mxu0 %v6965_v2  ;;  %v8700_v56 = vld [vmem:[#allocation2 + $0x354] sm:$0xf]  ;;  %v6873_v57 = vor.u32 %v8836_v45, %v6870_v46  ;;  %v3569_v46 = vpop.f32.mrf.mxu3 }
 0x207   :  { %v8992_v62 = vld [vmem:[#allocation2 + $0xc6c] sm:$0xf0]  ;;  %v8764_v59 = vld [vmem:[#allocation2 + $0x554] sm:$0xf] }
 0x208   :  { %v7732_v63 = vld [vmem:[#allocation2 + $0xe50] sm:$0xf]  ;;  %v7477_v6 = vor.u32 %v8992_v62, %v7476_v61  ;;  %3748 = vmatpush.bf16.msrb.mxu1 %v7221_v5  ;;  %v6582_v60 = vld [vmem:[#allocation2 + $0x570] sm:$0xf0] }
 0x209   :  { %v9056_v0 = vld [vmem:[#allocation2 + $0xe6c] sm:$0xf0]  ;;  %v8828_v61 = vld [vmem:[#allocation2 + $0x754] sm:$0xf]  ;;  %v6585_v2 = vor.u32 %v8764_v59, %v6582_v60 }
 0x20a   :  { %v6932_v3 = vld [vmem:[#allocation2 + $0x810] sm:$0xf]  ;;  %v7733_v11 = vor.u32 %v9056_v0, %v7732_v63  ;;  %3761 = vmatpush.bf16.msrb.mxu2 %v7477_v6  ;;  %v6838_v62 = vld [vmem:[#allocation2 + $0x770] sm:$0xf0]  ;;  %v6073_v63 = vor.u32 %v8636_v54, %v6070_v55  ;;  %v6329_v0 = vor.u32 %v8700_v56, %v6326_v58 }
 0x20b   :  { %v8856_v4 = vld [vmem:[#allocation2 + $0x82c] sm:$0xf0]  ;;  %v8692_v5 = vld [vmem:[#allocation2 + $0x314] sm:$0xf]  ;;  %v6841_v6 = vor.u32 %v8828_v61, %v6838_v62  ;;  %v3545_v61 = vpop.f32.mrf.mxu1 }
 0x20c   :  { %v7188_v7 = vld [vmem:[#allocation2 + $0xa10] sm:$0xf]  ;;  %v6933_v18 = vor.u32 %v8856_v4, %v6932_v3  ;;  %3774 = vmatpush.bf16.msrb.mxu3 %v7733_v11  ;;  %v8628_v3 = vld [vmem:[#allocation2 + $0x114] sm:$0xf] }
 0x20d   :  { %v8920_v8 = vld [vmem:[#allocation2 + $0xa2c] sm:$0xf0]  ;;  %v6038_v4 = vld [vmem:[#allocation2 + $0x130] sm:$0xf0] }
 0x20e   :  { %v7444_v9 = vld [vmem:[#allocation2 + $0xc10] sm:$0xf]  ;;  %v7189_v22 = vor.u32 %v8920_v8, %v7188_v7  ;;  %3736 = vmatpush.bf16.msrb.mxu0 %v6933_v18  ;;  %v6294_v7 = vld [vmem:[#allocation2 + $0x330] sm:$0xf0] }
 0x20f   :  { %v8984_v12 = vld [vmem:[#allocation2 + $0xc2c] sm:$0xf0]  ;;  %v8756_v8 = vld [vmem:[#allocation2 + $0x514] sm:$0xf] }
 0x210   :  { %v7700_v13 = vld [vmem:[#allocation2 + $0xe10] sm:$0xf]  ;;  %v7445_v23 = vor.u32 %v8984_v12, %v7444_v9  ;;  %3749 = vmatpush.bf16.msrb.mxu1 %v7189_v22  ;;  %v6550_v9 = vld [vmem:[#allocation2 + $0x530] sm:$0xf0]  ;;  %v6041_v12 = vor.u32 %v8628_v3, %v6038_v4 }
 0x211   :  { %v9048_v14 = vld [vmem:[#allocation2 + $0xe2c] sm:$0xf0]  ;;  %3737 = vmatmul.bf16.vlgmr.msrb.gmra.mxu0 %v9633_v37  ;;  %v6806_v11 = vld [vmem:[#allocation2 + $0x730] sm:$0xf0]  ;;  %v6553_v15 = vor.u32 %v8756_v8, %v6550_v9 }
 0x212   :  { %v7701_v26 = vor.u32 %v9048_v14, %v7700_v13  ;;  %3762 = vmatpush.bf16.msrb.mxu2 %v7445_v23  ;;  %3781 = vmatpush.bf16.msra.mxu0 %v6137_v27  ;;  %v3530_v13 = vpop.f32.mrf.mxu0  ;;  %v6297_v14 = vor.u32 %v8692_v5, %v6294_v7  ;;  %v6809_v20 = vor.u32 %v8820_v10, %v6806_v11  ;;  %v6262_v21 = vld [vmem:[#allocation2 + $0x2f0] sm:$0xf0] }
 0x213   :  { %3750 = vmatmul.bf16.vlgmr.msrb.gmra.mxu1 %v9637_v40  ;;  %v3531_v18 = vadd.f32 %v3530_v13, %v9685_v51  ;;  %v8748_v22 = vld [vmem:[#allocation2 + $0x4d4] sm:$0xf]  ;;  %v6009_v27 = vor.u32 %v8620_v16, %v6006_v17 }
 0x214   :  { %3775 = vmatpush.bf16.msrb.mxu3 %v7701_v26  ;;  %3794 = vmatpush.bf16.msra.mxu1 %v6393_v28  ;;  %v6518_v23 = vld [vmem:[#allocation2 + $0x4f0] sm:$0xf0]  ;;  %v6265_v28 = vor.u32 %v8684_v35, %v6262_v21  ;;  %v3571_v35 = vpop.f32.mrf.mxu3 }
 0x215   :  { %3763 = vmatmul.bf16.vlgmr.msrb.gmra.mxu2 %v9631_v32  ;;  %v8812_v24 = vld [vmem:[#allocation2 + $0x6d4] sm:$0xf]  ;;  %v3544_v26 = vadd.f32 %v3543_v19, %v3531_v18 }
 0x216   :  { %3807 = vmatpush.bf16.msra.mxu2 %v6649_v29  ;;  %3782 = vmatpush.bf16.msra.mxu0 %v6105_v48  ;;  %v6774_v25 = vld [vmem:[#allocation2 + $0x6f0] sm:$0xf0]  ;;  %v6521_v29 = vor.u32 %v8748_v22, %v6518_v23 }
 0x217   :  { %3776 = vmatmul.bf16.vlgmr.msrb.gmra.mxu3 %v9635_v38  ;;  %v8612_v49 = vld [vmem:[#allocation2 + $0x94] sm:$0xf]  ;;  %v6777_v51 = vor.u32 %v8812_v24, %v6774_v25 }
 0x218   :  { %3820 = vmatpush.bf16.msra.mxu3 %v6905_v36  ;;  %3795 = vmatpush.bf16.msra.mxu1 %v6361_v52  ;;  %v5974_v30 = vld [vmem:[#allocation2 + $0xb0] sm:$0xf0]  ;;  %v3556_v36 = vpop.f32.mrf.mxu2 }
 0x219   :  { %v8676_v31 = vld [vmem:[#allocation2 + $0x294] sm:$0xf]  ;;  %v3557_v45 = vadd.f32 %v3556_v36, %v3544_v26 }
 0x21a   :  { %3808 = vmatpush.bf16.msra.mxu2 %v6617_v53  ;;  %3783 = vmatpush.bf16.msra.mxu0 %v6073_v63  ;;  %v6230_v39 = vld [vmem:[#allocation2 + $0x2b0] sm:$0xf0]  ;;  %v5977_v53 = vor.u32 %v8612_v49, %v5974_v30  ;;  %v3532_v55 = vpop.f32.mrf.mxu0 }
 0x21b   :  { %v8740_v43 = vld [vmem:[#allocation2 + $0x494] sm:$0xf]  ;;  %v9692_v54 = vadd.f32 %v3569_v46, %v3557_v45  ;;  %v6233_v56 = vor.u32 %v8676_v31, %v6230_v39 }
 0x21c   :  { %3821 = vmatpush.bf16.msra.mxu3 %v6873_v57  ;;  %3796 = vmatpush.bf16.msra.mxu1 %v6329_v0  ;;  %v6486_v44 = vld [vmem:[#allocation2 + $0x4b0] sm:$0xf0] }
 0x21d   :  { %v8804_v48 = vld [vmem:[#allocation2 + $0x694] sm:$0xf]  ;;  %v6489_v57 = vor.u32 %v8740_v43, %v6486_v44 }
 0x21e   :  { %3809 = vmatpush.bf16.msra.mxu2 %v6585_v2  ;;  %3784 = vmatpush.bf16.msra.mxu0 %v6041_v12  ;;  %v6742_v52 = vld [vmem:[#allocation2 + $0x6b0] sm:$0xf0] }
 0x21f   :  { %v8604_v58 = vld [vmem:[#allocation2 + $0x54] sm:$0xf]  ;;  %v6745_v62 = vor.u32 %v8804_v48, %v6742_v52 }
 0x220   :  { %3822 = vmatpush.bf16.msra.mxu3 %v6841_v6  ;;  %3797 = vmatpush.bf16.msra.mxu1 %v6297_v14  ;;  %v5942_v59 = vld [vmem:[#allocation2 + $0x70] sm:$0xf0]  ;;  %v3558_v13 = vpop.f32.mrf.mxu2 }
 0x221   :  { %v8668_v60 = vld [vmem:[#allocation2 + $0x254] sm:$0xf]  ;;  %v5945_v5 = vor.u32 %v8604_v58, %v5942_v59 }
 0x222   :  { %3810 = vmatpush.bf16.msra.mxu2 %v6553_v15  ;;  %3785 = vmatpush.bf16.msra.mxu0 %v6009_v27  ;;  %v6198_v63 = vld [vmem:[#allocation2 + $0x270] sm:$0xf0] }
 0x223   :  { %v8732_v0 = vld [vmem:[#allocation2 + $0x454] sm:$0xf]  ;;  %v6201_v8 = vor.u32 %v8668_v60, %v6198_v63 }
 0x224   :  { %3823 = vmatpush.bf16.msra.mxu3 %v6809_v20  ;;  %3798 = vmatpush.bf16.msra.mxu1 %v6265_v28  ;;  %v6454_v2 = vld [vmem:[#allocation2 + $0x470] sm:$0xf0] }
 0x225   :  { %v8796_v3 = vld [vmem:[#allocation2 + $0x654] sm:$0xf]  ;;  %v6457_v9 = vor.u32 %v8732_v0, %v6454_v2 }
 0x226   :  { %3811 = vmatpush.bf16.msra.mxu2 %v6521_v29  ;;  %v6710_v4 = vld [vmem:[#allocation2 + $0x670] sm:$0xf0]  ;;  %3786 = vmatpush.bf16.msra.mxu0 %v5977_v53 }
 0x227   :  { %v8596_v6 = vld [vmem:[#allocation2 + $0x14] sm:$0xf]  ;;  %v6713_v14 = vor.u32 %v8796_v3, %v6710_v4 }
 0x228   :  { %3824 = vmatpush.bf16.msra.mxu3 %v6777_v51  ;;  %v5910_v7 = vld [vmem:[#allocation2 + $0x30] sm:$0xf0]  ;;  %3799 = vmatpush.bf16.msra.mxu1 %v6233_v56 }
 0x229   :  { %v8660_v10 = vld [vmem:[#allocation2 + $0x214] sm:$0xf]  ;;  %v5913_v21 = vor.u32 %v8596_v6, %v5910_v7 }
 0x22a   :  { %3812 = vmatpush.bf16.msra.mxu2 %v6489_v57  ;;  %v6166_v11 = vld [vmem:[#allocation2 + $0x230] sm:$0xf0]  ;;  %3787 = vmatpush.bf16.msra.mxu0 %v5945_v5 }
 0x22b   :  { %v8724_v12 = vld [vmem:[#allocation2 + $0x414] sm:$0xf]  ;;  %v6169_v25 = vor.u32 %v8660_v10, %v6166_v11 }
 0x22c   :  { %3825 = vmatpush.bf16.msra.mxu3 %v6745_v62  ;;  %v6422_v15 = vld [vmem:[#allocation2 + $0x430] sm:$0xf0]  ;;  %3800 = vmatpush.bf16.msra.mxu1 %v6201_v8 }
 0x22d   :  { %v8788_v16 = vld [vmem:[#allocation2 + $0x614] sm:$0xf]  ;;  %v6425_v26 = vor.u32 %v8724_v12, %v6422_v15 }
 0x22e   :  { %v6678_v17 = vld [vmem:[#allocation2 + $0x630] sm:$0xf0]  ;;  %3813 = vmatpush.bf16.msra.mxu2 %v6457_v9  ;;  %3788 = vmatpush.bf16.msra.mxu0 %v5913_v21  ;;  %v688_v9 = vperm.slane %v9682_v1, 3 }
 0x22f   :  { %v8908_v18 = vld [vmem:[#allocation2 + $0x9d4] sm:$0xf]  ;;  %v6681_v29 = vor.u32 %v8788_v16, %v6678_v17  ;;  %v3582_v17 = vpop.f32.mrf.mxu0 }
 0x230   :  { %v7158_v19 = vld [vmem:[#allocation2 + $0x9f0] sm:$0xf0]  ;;  %3826 = vmatpush.bf16.msra.mxu3 %v6713_v14  ;;  %3801 = vmatpush.bf16.msra.mxu1 %v6169_v25 }
 0x231   :  { %v8972_v20 = vld [vmem:[#allocation2 + $0xbd4] sm:$0xf]  ;;  %v7161_v49 = vor.u32 %v8908_v18, %v7158_v19  ;;  %3789 = vmatmul.bf16.vlgmr.msra.gmra.mxu0 %v9618_v34 }
 0x232   :  { %v7414_v22 = vld [vmem:[#allocation2 + $0xbf0] sm:$0xf0]  ;;  %3814 = vmatpush.bf16.msra.mxu2 %v6425_v26 }
 0x233   :  { %v9036_v23 = vld [vmem:[#allocation2 + $0xdd4] sm:$0xf]  ;;  %v7417_v30 = vor.u32 %v8972_v20, %v7414_v22  ;;  %3833 = vmatpush.bf16.msrb.mxu0 %v7161_v49  ;;  %3802 = vmatmul.bf16.vlgmr.msra.gmra.mxu1 %v9622_v42  ;;  %v3583_v22 = vadd.f32 %v3582_v17, %v688_v9 }
 0x234   :  { %v7670_v24 = vld [vmem:[#allocation2 + $0xdf0] sm:$0xf0]  ;;  %3827 = vmatpush.bf16.msra.mxu3 %v6681_v29 }
 0x235   :  { %v9100_v27 = vld [vmem:[#allocation2 + $0xfd4] sm:$0xf]  ;;  %v7673_v31 = vor.u32 %v9036_v23, %v7670_v24  ;;  %3846 = vmatpush.bf16.msrb.mxu1 %v7417_v30  ;;  %3815 = vmatmul.bf16.vlgmr.msra.gmra.mxu2 %v9616_v33  ;;  %v3595_v23 = vpop.f32.mrf.mxu1 }
 0x236   :  { %v7926_v28 = vld [vmem:[#allocation2 + $0xff0] sm:$0xf0]  ;;  %v3596_v29 = vadd.f32 %v3595_v23, %v3583_v22  ;;  %v6140_v22 = vld [vmem:[#allocation2 + $0x1d8] sm:$0xf] }
 0x237   :  { %v8900_v36 = vld [vmem:[#allocation2 + $0x994] sm:$0xf]  ;;  %v7929_v43 = vor.u32 %v9100_v27, %v7926_v28  ;;  %3859 = vmatpush.bf16.msrb.mxu2 %v7673_v31  ;;  %3828 = vmatmul.bf16.vlgmr.msra.gmra.mxu3 %v9620_v41  ;;  %v8657_v23 = vld [vmem:[#allocation2 + $0x1f4] sm:$0xf0] }
 0x238   :  { %v7126_v51 = vld [vmem:[#allocation2 + $0x9b0] sm:$0xf0] }
 0x239   :  { %v8964_v39 = vld [vmem:[#allocation2 + $0xb94] sm:$0xf]  ;;  %v7129_v53 = vor.u32 %v8900_v36, %v7126_v51  ;;  %3872 = vmatpush.bf16.msrb.mxu3 %v7929_v43  ;;  %v3608_v43 = vpop.f32.mrf.mxu2 }
 0x23a   :  { %v7382_v44 = vld [vmem:[#allocation2 + $0xbb0] sm:$0xf0] }
 0x23b   :  { %v9028_v45 = vld [vmem:[#allocation2 + $0xd94] sm:$0xf]  ;;  %v7385_v55 = vor.u32 %v8964_v39, %v7382_v44  ;;  %3834 = vmatpush.bf16.msrb.mxu0 %v7129_v53  ;;  %v3621_v53 = vpop.f32.mrf.mxu3 }
 0x23c   :  { %v7638_v46 = vld [vmem:[#allocation2 + $0xdb0] sm:$0xf0] }
 0x23d   :  { %v9092_v48 = vld [vmem:[#allocation2 + $0xf94] sm:$0xf]  ;;  %v7641_v56 = vor.u32 %v9028_v45, %v7638_v46  ;;  %3847 = vmatpush.bf16.msrb.mxu1 %v7385_v55 }
 0x23e   :  { %v7894_v52 = vld [vmem:[#allocation2 + $0xfb0] sm:$0xf0] }
 0x23f   :  { %v8892_v57 = vld [vmem:[#allocation2 + $0x954] sm:$0xf]  ;;  %v7897_v60 = vor.u32 %v9092_v48, %v7894_v52  ;;  %3860 = vmatpush.bf16.msrb.mxu2 %v7641_v56  ;;  %v3609_v52 = vadd.f32 %v3608_v43, %v3596_v29  ;;  %v6108_v43 = vld [vmem:[#allocation2 + $0x198] sm:$0xf] }
 0x240   :  { %v7094_v58 = vld [vmem:[#allocation2 + $0x970] sm:$0xf0] }
 0x241   :  { %v8956_v59 = vld [vmem:[#allocation2 + $0xb54] sm:$0xf]  ;;  %v7097_v3 = vor.u32 %v8892_v57, %v7094_v58  ;;  %3873 = vmatpush.bf16.msrb.mxu3 %v7897_v60  ;;  %v9699_v58 = vadd.f32 %v3621_v53, %v3609_v52  ;;  %v3610_v17 = vpop.f32.mrf.mxu2  ;;  %v6620_v52 = vld [vmem:[#allocation2 + $0x598] sm:$0xf] }
 0x242   :  { %v7350_v61 = vld [vmem:[#allocation2 + $0xb70] sm:$0xf0]  ;;  %v8777_v53 = vld [vmem:[#allocation2 + $0x5b4] sm:$0xf0] }
 0x243   :  { %v9020_v62 = vld [vmem:[#allocation2 + $0xd54] sm:$0xf]  ;;  %v7353_v5 = vor.u32 %v8956_v59, %v7350_v61  ;;  %3835 = vmatpush.bf16.msrb.mxu0 %v7097_v3  ;;  %v3584_v59 = vpop.f32.mrf.mxu0  ;;  %v6812_v17 = vld [vmem:[#allocation2 + $0x718] sm:$0xf] }
 0x244   :  { %v7606_v63 = vld [vmem:[#allocation2 + $0xd70] sm:$0xf0] }
 0x245   :  { %v9084_v0 = vld [vmem:[#allocation2 + $0xf54] sm:$0xf]  ;;  %v7609_v6 = vor.u32 %v9020_v62, %v7606_v63  ;;  %3848 = vmatpush.bf16.msrb.mxu1 %v7353_v5 }
 0x246   :  { %v7862_v2 = vld [vmem:[#allocation2 + $0xf70] sm:$0xf0] }
 0x247   :  { %v8884_v4 = vld [vmem:[#allocation2 + $0x914] sm:$0xf]  ;;  %v7865_v10 = vor.u32 %v9084_v0, %v7862_v2  ;;  %3861 = vmatpush.bf16.msrb.mxu2 %v7609_v6  ;;  %v3597_v2 = vpop.f32.mrf.mxu1 }
 0x248   :  { %v7062_v7 = vld [vmem:[#allocation2 + $0x930] sm:$0xf0]  ;;  %v8705_v2 = vld [vmem:[#allocation2 + $0x374] sm:$0xf0] }
 0x249   :  { %v8948_v8 = vld [vmem:[#allocation2 + $0xb14] sm:$0xf]  ;;  %v7065_v16 = vor.u32 %v8884_v4, %v7062_v7  ;;  %3874 = vmatpush.bf16.msrb.mxu3 %v7865_v10 }
 0x24a   :  { %v7318_v11 = vld [vmem:[#allocation2 + $0xb30] sm:$0xf0] }
 0x24b   :  { %v9012_v12 = vld [vmem:[#allocation2 + $0xd14] sm:$0xf]  ;;  %v7321_v35 = vor.u32 %v8948_v8, %v7318_v11  ;;  %3836 = vmatpush.bf16.msrb.mxu0 %v7065_v16 }
 0x24c   :  { %v7574_v13 = vld [vmem:[#allocation2 + $0xd30] sm:$0xf0] }
 0x24d   :  { %v9076_v14 = vld [vmem:[#allocation2 + $0xf14] sm:$0xf]  ;;  %v7577_v18 = vor.u32 %v9012_v12, %v7574_v13  ;;  %3849 = vmatpush.bf16.msrb.mxu1 %v7321_v35 }
 0x24e   :  { %v7830_v15 = vld [vmem:[#allocation2 + $0xf30] sm:$0xf0] }
 0x24f   :  { %v8876_v19 = vld [vmem:[#allocation2 + $0x8d4] sm:$0xf]  ;;  %v7833_v1 = vor.u32 %v9076_v14, %v7830_v15  ;;  %3862 = vmatpush.bf16.msrb.mxu2 %v7577_v18 }
 0x250   :  { %v7030_v20 = vld [vmem:[#allocation2 + $0x8f0] sm:$0xf0] }
 0x251   :  { %v8940_v21 = vld [vmem:[#allocation2 + $0xad4] sm:$0xf]  ;;  %v7033_v49 = vor.u32 %v8876_v19, %v7030_v20  ;;  %3875 = vmatpush.bf16.msrb.mxu3 %v7833_v1  ;;  %v6396_v1 = vld [vmem:[#allocation2 + $0x3d8] sm:$0xf] }
 0x252   :  { %v7286_v24 = vld [vmem:[#allocation2 + $0xaf0] sm:$0xf0] }
 0x253   :  { %v9004_v25 = vld [vmem:[#allocation2 + $0xcd4] sm:$0xf]  ;;  %v7289_v30 = vor.u32 %v8940_v21, %v7286_v24  ;;  %3837 = vmatpush.bf16.msrb.mxu0 %v7033_v49  ;;  %v3623_v21 = vpop.f32.mrf.mxu3  ;;  %v6908_v49 = vld [vmem:[#allocation2 + $0x7d8] sm:$0xf] }
 0x254   :  { %v7542_v26 = vld [vmem:[#allocation2 + $0xcf0] sm:$0xf0] }
 0x255   :  { %v9068_v27 = vld [vmem:[#allocation2 + $0xed4] sm:$0xf]  ;;  %v7545_v31 = vor.u32 %v9004_v25, %v7542_v26  ;;  %3850 = vmatpush.bf16.msrb.mxu1 %v7289_v30  ;;  %v8721_v25 = vld [vmem:[#allocation2 + $0x3f4] sm:$0xf0] }
 0x256   :  { %v7798_v28 = vld [vmem:[#allocation2 + $0xef0] sm:$0xf0]  ;;  %v6652_v26 = vld [vmem:[#allocation2 + $0x5d8] sm:$0xf] }
 0x257   :  { %v8868_v36 = vld [vmem:[#allocation2 + $0x894] sm:$0xf]  ;;  %v7801_v44 = vor.u32 %v9068_v27, %v7798_v28  ;;  %3863 = vmatpush.bf16.msrb.mxu2 %v7545_v31  ;;  %v8785_v27 = vld [vmem:[#allocation2 + $0x5f4] sm:$0xf0] }
 0x258   :  { %v6998_v51 = vld [vmem:[#allocation2 + $0x8b0] sm:$0xf0]  ;;  %v8849_v30 = vld [vmem:[#allocation2 + $0x7f4] sm:$0xf0] }
 0x259   :  { %v8932_v39 = vld [vmem:[#allocation2 + $0xa94] sm:$0xf]  ;;  %v7001_v57 = vor.u32 %v8868_v36, %v6998_v51  ;;  %3876 = vmatpush.bf16.msrb.mxu3 %v7801_v44  ;;  %v6141_v36 = vor.u32 %v8657_v23, %v6140_v22  ;;  %v6397_v51 = vor.u32 %v8721_v25, %v6396_v1  ;;  %v8649_v44 = vld [vmem:[#allocation2 + $0x1b4] sm:$0xf0]  ;;  %v3647_v25 = vpop.f32.mrf.mxu1 }
 0x25a   :  { %v7254_v45 = vld [vmem:[#allocation2 + $0xab0] sm:$0xf0]  ;;  %v6012_v22 = vld [vmem:[#allocation2 + $0xd8] sm:$0xf] }
 0x25b   :  { %v8996_v46 = vld [vmem:[#allocation2 + $0xc94] sm:$0xf]  ;;  %v7257_v60 = vor.u32 %v8932_v39, %v7254_v45  ;;  %3838 = vmatpush.bf16.msrb.mxu0 %v7001_v57  ;;  %v6653_v39 = vor.u32 %v8785_v27, %v6652_v26  ;;  %v6364_v45 = vld [vmem:[#allocation2 + $0x398] sm:$0xf]  ;;  %v6109_v57 = vor.u32 %v8649_v44, %v6108_v43 }
 0x25c   :  { %v7510_v48 = vld [vmem:[#allocation2 + $0xcb0] sm:$0xf0]  ;;  %v8625_v23 = vld [vmem:[#allocation2 + $0xf4] sm:$0xf0] }
 0x25d   :  { %v9060_v55 = vld [vmem:[#allocation2 + $0xe94] sm:$0xf]  ;;  %v7513_v61 = vor.u32 %v8996_v46, %v7510_v48  ;;  %3851 = vmatpush.bf16.msrb.mxu1 %v7257_v60  ;;  %v6909_v46 = vor.u32 %v8849_v30, %v6908_v49  ;;  %v8713_v48 = vld [vmem:[#allocation2 + $0x3b4] sm:$0xf0]  ;;  %v6621_v60 = vor.u32 %v8777_v53, %v6620_v52 }
 0x25e   :  { %v7766_v56 = vld [vmem:[#allocation2 + $0xeb0] sm:$0xf0]  ;;  %v6365_v59 = vor.u32 %v8713_v48, %v6364_v45  ;;  %v6268_v1 = vld [vmem:[#allocation2 + $0x2d8] sm:$0xf] }
 0x25f   :  { %v8860_v62 = vld [vmem:[#allocation2 + $0x854] sm:$0xf]  ;;  %v7769_v3 = vor.u32 %v9060_v55, %v7766_v56  ;;  %3864 = vmatpush.bf16.msrb.mxu2 %v7513_v61  ;;  %v6876_v55 = vld [vmem:[#allocation2 + $0x798] sm:$0xf] }
 0x260   :  { %v6966_v63 = vld [vmem:[#allocation2 + $0x870] sm:$0xf0]  ;;  %v8841_v56 = vld [vmem:[#allocation2 + $0x7b4] sm:$0xf0] }
 0x261   :  { %v8924_v0 = vld [vmem:[#allocation2 + $0xa54] sm:$0xf]  ;;  %v6969_v9 = vor.u32 %v8860_v62, %v6966_v63  ;;  %3877 = vmatpush.bf16.msrb.mxu3 %v7769_v3  ;;  %v6076_v61 = vld [vmem:[#allocation2 + $0x158] sm:$0xf] }
 0x262   :  { %v7222_v4 = vld [vmem:[#allocation2 + $0xa70] sm:$0xf0]  ;;  %v8641_v62 = vld [vmem:[#allocation2 + $0x174] sm:$0xf0] }
 0x263   :  { %v8988_v5 = vld [vmem:[#allocation2 + $0xc54] sm:$0xf]  ;;  %v7225_v12 = vor.u32 %v8924_v0, %v7222_v4  ;;  %3839 = vmatpush.bf16.msrb.mxu0 %v6969_v9  ;;  %v6332_v63 = vld [vmem:[#allocation2 + $0x358] sm:$0xf]  ;;  %v6877_v0 = vor.u32 %v8841_v56, %v6876_v55  ;;  %v3673_v56 = vpop.f32.mrf.mxu3 }
 0x264   :  { %v7478_v6 = vld [vmem:[#allocation2 + $0xc70] sm:$0xf0]  ;;  %v6588_v3 = vld [vmem:[#allocation2 + $0x558] sm:$0xf] }
 0x265   :  { %v9052_v7 = vld [vmem:[#allocation2 + $0xe54] sm:$0xf]  ;;  %v7481_v13 = vor.u32 %v8988_v5, %v7478_v6  ;;  %3852 = vmatpush.bf16.msrb.mxu1 %v7225_v12  ;;  %v8769_v4 = vld [vmem:[#allocation2 + $0x574] sm:$0xf0] }
 0x266   :  { %v7734_v8 = vld [vmem:[#allocation2 + $0xe70] sm:$0xf0]  ;;  %v6844_v5 = vld [vmem:[#allocation2 + $0x758] sm:$0xf]  ;;  %v6589_v9 = vor.u32 %v8769_v4, %v6588_v3 }
 0x267   :  { %v8852_v10 = vld [vmem:[#allocation2 + $0x814] sm:$0xf]  ;;  %v7737_v35 = vor.u32 %v9052_v7, %v7734_v8  ;;  %3865 = vmatpush.bf16.msrb.mxu2 %v7481_v13  ;;  %v8833_v6 = vld [vmem:[#allocation2 + $0x774] sm:$0xf0]  ;;  %v6077_v7 = vor.u32 %v8641_v62, %v6076_v61  ;;  %v6333_v8 = vor.u32 %v8705_v2, %v6332_v63 }
 0x268   :  { %v6934_v11 = vld [vmem:[#allocation2 + $0x830] sm:$0xf0]  ;;  %v6300_v12 = vld [vmem:[#allocation2 + $0x318] sm:$0xf]  ;;  %v6845_v13 = vor.u32 %v8833_v6, %v6844_v5  ;;  %v3649_v5 = vpop.f32.mrf.mxu1 }
 0x269   :  { %v8916_v14 = vld [vmem:[#allocation2 + $0xa14] sm:$0xf]  ;;  %v6937_v24 = vor.u32 %v8852_v10, %v6934_v11  ;;  %3878 = vmatpush.bf16.msrb.mxu3 %v7737_v35  ;;  %v6044_v10 = vld [vmem:[#allocation2 + $0x118] sm:$0xf] }
 0x26a   :  { %v7190_v15 = vld [vmem:[#allocation2 + $0xa30] sm:$0xf0]  ;;  %v8633_v11 = vld [vmem:[#allocation2 + $0x134] sm:$0xf0] }
 0x26b   :  { %v8980_v16 = vld [vmem:[#allocation2 + $0xc14] sm:$0xf]  ;;  %v7193_v28 = vor.u32 %v8916_v14, %v7190_v15  ;;  %3840 = vmatpush.bf16.msrb.mxu0 %v6937_v24  ;;  %v8697_v14 = vld [vmem:[#allocation2 + $0x334] sm:$0xf0] }
 0x26c   :  { %v7446_v18 = vld [vmem:[#allocation2 + $0xc30] sm:$0xf0]  ;;  %v6556_v15 = vld [vmem:[#allocation2 + $0x518] sm:$0xf] }
 0x26d   :  { %v9044_v19 = vld [vmem:[#allocation2 + $0xe14] sm:$0xf]  ;;  %v7449_v29 = vor.u32 %v8980_v16, %v7446_v18  ;;  %3853 = vmatpush.bf16.msrb.mxu1 %v7193_v28  ;;  %v8761_v16 = vld [vmem:[#allocation2 + $0x534] sm:$0xf0]  ;;  %v6045_v18 = vor.u32 %v8633_v11, %v6044_v10 }
 0x26e   :  { %v7702_v20 = vld [vmem:[#allocation2 + $0xe30] sm:$0xf0]  ;;  %3841 = vmatmul.bf16.vlgmr.msrb.gmra.mxu0 %v9633_v37  ;;  %v8825_v35 = vld [vmem:[#allocation2 + $0x734] sm:$0xf0]  ;;  %v6557_v21 = vor.u32 %v8761_v16, %v6556_v15 }
 0x26f   :  { %v7705_v31 = vor.u32 %v9044_v19, %v7702_v20  ;;  %3866 = vmatpush.bf16.msrb.mxu2 %v7449_v29  ;;  %3885 = vmatpush.bf16.msra.mxu0 %v6141_v36  ;;  %v3634_v19 = vpop.f32.mrf.mxu0  ;;  %v6301_v20 = vor.u32 %v8697_v14, %v6300_v12  ;;  %v6813_v26 = vor.u32 %v8825_v35, %v6812_v17  ;;  %v8689_v27 = vld [vmem:[#allocation2 + $0x2f4] sm:$0xf0] }
 0x270   :  { %3854 = vmatmul.bf16.vlgmr.msrb.gmra.mxu1 %v9637_v40  ;;  %v3635_v24 = vadd.f32 %v3634_v19, %v9699_v58  ;;  %v6524_v28 = vld [vmem:[#allocation2 + $0x4d8] sm:$0xf]  ;;  %v6013_v36 = vor.u32 %v8625_v23, %v6012_v22 }
 0x271   :  { %3879 = vmatpush.bf16.msrb.mxu3 %v7705_v31  ;;  %3898 = vmatpush.bf16.msra.mxu1 %v6397_v51  ;;  %v8753_v29 = vld [vmem:[#allocation2 + $0x4f4] sm:$0xf0]  ;;  %v6269_v51 = vor.u32 %v8689_v27, %v6268_v1  ;;  %v3675_v1 = vpop.f32.mrf.mxu3 }
 0x272   :  { %3867 = vmatmul.bf16.vlgmr.msrb.gmra.mxu2 %v9631_v32  ;;  %v6780_v49 = vld [vmem:[#allocation2 + $0x6d8] sm:$0xf]  ;;  %v3648_v31 = vadd.f32 %v3647_v25, %v3635_v24 }
 0x273   :  { %3911 = vmatpush.bf16.msra.mxu2 %v6653_v39  ;;  %3886 = vmatpush.bf16.msra.mxu0 %v6109_v57  ;;  %v8817_v30 = vld [vmem:[#allocation2 + $0x6f4] sm:$0xf0]  ;;  %v6525_v39 = vor.u32 %v8753_v29, %v6524_v28 }
 0x274   :  { %3880 = vmatmul.bf16.vlgmr.msrb.gmra.mxu3 %v9635_v38  ;;  %v5980_v43 = vld [vmem:[#allocation2 + $0x98] sm:$0xf]  ;;  %v6781_v58 = vor.u32 %v8817_v30, %v6780_v49 }
 0x275   :  { %3924 = vmatpush.bf16.msra.mxu3 %v6909_v46  ;;  %3899 = vmatpush.bf16.msra.mxu1 %v6365_v59  ;;  %v8617_v44 = vld [vmem:[#allocation2 + $0xb4] sm:$0xf0]  ;;  %v3660_v46 = vpop.f32.mrf.mxu2 }
 0x276   :  { %v6236_v45 = vld [vmem:[#allocation2 + $0x298] sm:$0xf]  ;;  %v3661_v55 = vadd.f32 %v3660_v46, %v3648_v31 }
 0x277   :  { %3912 = vmatpush.bf16.msra.mxu2 %v6621_v60  ;;  %3887 = vmatpush.bf16.msra.mxu0 %v6077_v7  ;;  %v8681_v48 = vld [vmem:[#allocation2 + $0x2b4] sm:$0xf0]  ;;  %v5981_v60 = vor.u32 %v8617_v44, %v5980_v43  ;;  %v3636_v62 = vpop.f32.mrf.mxu0 }
 0x278   :  { %v6492_v52 = vld [vmem:[#allocation2 + $0x498] sm:$0xf]  ;;  %v9706_v61 = vadd.f32 %v3673_v56, %v3661_v55  ;;  %v6237_v63 = vor.u32 %v8681_v48, %v6236_v45 }
 0x279   :  { %3925 = vmatpush.bf16.msra.mxu3 %v6877_v0  ;;  %3900 = vmatpush.bf16.msra.mxu1 %v6333_v8  ;;  %v8745_v53 = vld [vmem:[#allocation2 + $0x4b4] sm:$0xf0] }
 0x27a   :  { %v6748_v57 = vld [vmem:[#allocation2 + $0x698] sm:$0xf]  ;;  %v6493_v0 = vor.u32 %v8745_v53, %v6492_v52 }
 0x27b   :  { %3913 = vmatpush.bf16.msra.mxu2 %v6589_v9  ;;  %3888 = vmatpush.bf16.msra.mxu0 %v6045_v18  ;;  %v8809_v59 = vld [vmem:[#allocation2 + $0x6b4] sm:$0xf0] }
 0x27c   :  { %v5948_v2 = vld [vmem:[#allocation2 + $0x58] sm:$0xf]  ;;  %v6749_v6 = vor.u32 %v8809_v59, %v6748_v57 }
 0x27d   :  { %3926 = vmatpush.bf16.msra.mxu3 %v6845_v13  ;;  %3901 = vmatpush.bf16.msra.mxu1 %v6301_v20  ;;  %v8609_v3 = vld [vmem:[#allocation2 + $0x74] sm:$0xf0]  ;;  %v3662_v19 = vpop.f32.mrf.mxu2 }
 0x27e   :  { %v6204_v4 = vld [vmem:[#allocation2 + $0x258] sm:$0xf]  ;;  %v5949_v12 = vor.u32 %v8609_v3, %v5948_v2 }
 0x27f   :  { %3914 = vmatpush.bf16.msra.mxu2 %v6557_v21  ;;  %3889 = vmatpush.bf16.msra.mxu0 %v6013_v36  ;;  %v8673_v7 = vld [vmem:[#allocation2 + $0x274] sm:$0xf0]  ;;  %v3686_v1 = vpop.f32.mrf.mxu0 }
 0x280   :  { %v6460_v8 = vld [vmem:[#allocation2 + $0x458] sm:$0xf]  ;;  %v6205_v15 = vor.u32 %v8673_v7, %v6204_v4 }
 0x281   :  { %3927 = vmatpush.bf16.msra.mxu3 %v6813_v26  ;;  %3902 = vmatpush.bf16.msra.mxu1 %v6269_v51  ;;  %v8737_v9 = vld [vmem:[#allocation2 + $0x474] sm:$0xf0] }
 0x282   :  { %v6716_v10 = vld [vmem:[#allocation2 + $0x658] sm:$0xf]  ;;  %v6461_v16 = vor.u32 %v8737_v9, %v6460_v8 }
 0x283   :  { %3915 = vmatpush.bf16.msra.mxu2 %v6525_v39  ;;  %v8801_v11 = vld [vmem:[#allocation2 + $0x674] sm:$0xf0]  ;;  %3890 = vmatpush.bf16.msra.mxu0 %v5981_v60 }
 0x284   :  { %v5916_v13 = vld [vmem:[#allocation2 + $0x18] sm:$0xf]  ;;  %v6717_v20 = vor.u32 %v8801_v11, %v6716_v10 }
 0x285   :  { %3928 = vmatpush.bf16.msra.mxu3 %v6781_v58  ;;  %v8601_v14 = vld [vmem:[#allocation2 + $0x34] sm:$0xf0]  ;;  %3903 = vmatpush.bf16.msra.mxu1 %v6237_v63 }
 0x286   :  { %v6172_v17 = vld [vmem:[#allocation2 + $0x218] sm:$0xf]  ;;  %v5917_v27 = vor.u32 %v8601_v14, %v5916_v13 }
 0x287   :  { %3916 = vmatpush.bf16.msra.mxu2 %v6493_v0  ;;  %v8665_v35 = vld [vmem:[#allocation2 + $0x234] sm:$0xf0]  ;;  %3891 = vmatpush.bf16.msra.mxu0 %v5949_v12 }
 0x288   :  { %v6428_v18 = vld [vmem:[#allocation2 + $0x418] sm:$0xf]  ;;  %v6173_v30 = vor.u32 %v8665_v35, %v6172_v17 }
 0x289   :  { %3929 = vmatpush.bf16.msra.mxu3 %v6749_v6  ;;  %v8729_v21 = vld [vmem:[#allocation2 + $0x434] sm:$0xf0]  ;;  %3904 = vmatpush.bf16.msra.mxu1 %v6205_v15 }
 0x28a   :  { %v6684_v22 = vld [vmem:[#allocation2 + $0x618] sm:$0xf]  ;;  %v6429_v31 = vor.u32 %v8729_v21, %v6428_v18 }
 0x28b   :  { %v8793_v23 = vld [vmem:[#allocation2 + $0x634] sm:$0xf0]  ;;  %3917 = vmatpush.bf16.msra.mxu2 %v6461_v16  ;;  %3892 = vmatpush.bf16.msra.mxu0 %v5917_v27  ;;  %v9712_v16 = vld [vmem:[#allocation5] sm:$0xff] }
 0x28c   :  { %v7164_v24 = vld [vmem:[#allocation2 + $0x9d8] sm:$0xf]  ;;  %v6685_v39 = vor.u32 %v8793_v23, %v6684_v22  ;;  %v689_v17 = vperm.slane %v9712_v16, 4 }
 0x28d   :  { %v8913_v25 = vld [vmem:[#allocation2 + $0x9f4] sm:$0xf0]  ;;  %3930 = vmatpush.bf16.msra.mxu3 %v6717_v20  ;;  %3905 = vmatpush.bf16.msra.mxu1 %v6173_v30 }
 0x28e   :  { %v7420_v26 = vld [vmem:[#allocation2 + $0xbd8] sm:$0xf]  ;;  %v7165_v43 = vor.u32 %v8913_v25, %v7164_v24  ;;  %3893 = vmatmul.bf16.vlgmr.msra.gmra.mxu0 %v9618_v34 }
 0x28f   :  { %v8977_v28 = vld [vmem:[#allocation2 + $0xbf4] sm:$0xf0]  ;;  %3918 = vmatpush.bf16.msra.mxu2 %v6429_v31 }
 0x290   :  { %v7676_v29 = vld [vmem:[#allocation2 + $0xdd8] sm:$0xf]  ;;  %v7421_v44 = vor.u32 %v8977_v28, %v7420_v26  ;;  %3937 = vmatpush.bf16.msrb.mxu0 %v7165_v43  ;;  %3906 = vmatmul.bf16.vlgmr.msra.gmra.mxu1 %v9622_v42 }
 0x291   :  { %v9041_v49 = vld [vmem:[#allocation2 + $0xdf4] sm:$0xf0]  ;;  %3931 = vmatpush.bf16.msra.mxu3 %v6685_v39 }
 0x292   :  { %v7932_v36 = vld [vmem:[#allocation2 + $0xfd8] sm:$0xf]  ;;  %v7677_v45 = vor.u32 %v9041_v49, %v7676_v29  ;;  %3950 = vmatpush.bf16.msrb.mxu1 %v7421_v44  ;;  %3919 = vmatmul.bf16.vlgmr.msra.gmra.mxu2 %v9616_v33  ;;  %v3687_v29 = vadd.f32 %v3686_v1, %v689_v17  ;;  %v3699_v49 = vpop.f32.mrf.mxu1 }
 0x293   :  { %v9105_v51 = vld [vmem:[#allocation2 + $0xff4] sm:$0xf0] }
 0x294   :  { %v7132_v46 = vld [vmem:[#allocation2 + $0x998] sm:$0xf]  ;;  %v7933_v52 = vor.u32 %v9105_v51, %v7932_v36  ;;  %3963 = vmatpush.bf16.msrb.mxu2 %v7677_v45  ;;  %3932 = vmatmul.bf16.vlgmr.msra.gmra.mxu3 %v9620_v41  ;;  %v3700_v44 = vadd.f32 %v3699_v49, %v3687_v29 }
 0x295   :  { %v8905_v58 = vld [vmem:[#allocation2 + $0x9b4] sm:$0xf0] }
 0x296   :  { %v7388_v48 = vld [vmem:[#allocation2 + $0xb98] sm:$0xf]  ;;  %v7133_v60 = vor.u32 %v8905_v58, %v7132_v46  ;;  %3976 = vmatpush.bf16.msrb.mxu3 %v7933_v52 }
 0x297   :  { %v8969_v53 = vld [vmem:[#allocation2 + $0xbb4] sm:$0xf0] }
 0x298   :  { %v7644_v55 = vld [vmem:[#allocation2 + $0xd98] sm:$0xf]  ;;  %v7389_v62 = vor.u32 %v8969_v53, %v7388_v48  ;;  %3938 = vmatpush.bf16.msrb.mxu0 %v7133_v60 }
 0x299   :  { %v9033_v56 = vld [vmem:[#allocation2 + $0xdb4] sm:$0xf0] }
 0x29a   :  { %v7900_v57 = vld [vmem:[#allocation2 + $0xf98] sm:$0xf]  ;;  %v7645_v63 = vor.u32 %v9033_v56, %v7644_v55  ;;  %3951 = vmatpush.bf16.msrb.mxu1 %v7389_v62  ;;  %v3712_v55 = vpop.f32.mrf.mxu2 }
 0x29b   :  { %v9097_v59 = vld [vmem:[#allocation2 + $0xfb4] sm:$0xf0]  ;;  %v3713_v62 = vadd.f32 %v3712_v55, %v3700_v44  ;;  %v6654_v44 = vld [vmem:[#allocation2 + $0x5f8] sm:$0xf0] }
 0x29c   :  { %v7100_v0 = vld [vmem:[#allocation2 + $0x958] sm:$0xf]  ;;  %v7901_v4 = vor.u32 %v9097_v59, %v7900_v57  ;;  %3964 = vmatpush.bf16.msrb.mxu2 %v7645_v63  ;;  %v3725_v63 = vpop.f32.mrf.mxu3 }
 0x29d   :  { %v8897_v2 = vld [vmem:[#allocation2 + $0x974] sm:$0xf0] }
 0x29e   :  { %v7356_v3 = vld [vmem:[#allocation2 + $0xb58] sm:$0xf]  ;;  %v7101_v10 = vor.u32 %v8897_v2, %v7100_v0  ;;  %3977 = vmatpush.bf16.msrb.mxu3 %v7901_v4  ;;  %v9715_v4 = vadd.f32 %v3725_v63, %v3713_v62  ;;  %v6366_v63 = vld [vmem:[#allocation2 + $0x3b8] sm:$0xf0] }
 0x29f   :  { %v8961_v5 = vld [vmem:[#allocation2 + $0xb74] sm:$0xf0] }
 0x2a0   :  { %v7612_v6 = vld [vmem:[#allocation2 + $0xd58] sm:$0xf]  ;;  %v7357_v12 = vor.u32 %v8961_v5, %v7356_v3  ;;  %3939 = vmatpush.bf16.msrb.mxu0 %v7101_v10  ;;  %v3688_v5 = vpop.f32.mrf.mxu0 }
 0x2a1   :  { %v9025_v7 = vld [vmem:[#allocation2 + $0xd74] sm:$0xf0]  ;;  %v6878_v5 = vld [vmem:[#allocation2 + $0x7b8] sm:$0xf0] }
 0x2a2   :  { %v7868_v8 = vld [vmem:[#allocation2 + $0xf58] sm:$0xf]  ;;  %v7613_v13 = vor.u32 %v9025_v7, %v7612_v6  ;;  %3952 = vmatpush.bf16.msrb.mxu1 %v7357_v12 }
 0x2a3   :  { %v9089_v9 = vld [vmem:[#allocation2 + $0xf74] sm:$0xf0] }
 0x2a4   :  { %v7068_v11 = vld [vmem:[#allocation2 + $0x918] sm:$0xf]  ;;  %v7869_v35 = vor.u32 %v9089_v9, %v7868_v8  ;;  %3965 = vmatpush.bf16.msrb.mxu2 %v7613_v13  ;;  %v3727_v49 = vpop.f32.mrf.mxu3 }
 0x2a5   :  { %v8889_v14 = vld [vmem:[#allocation2 + $0x934] sm:$0xf0] }
 0x2a6   :  { %v7324_v15 = vld [vmem:[#allocation2 + $0xb18] sm:$0xf]  ;;  %v7069_v23 = vor.u32 %v8889_v14, %v7068_v11  ;;  %3978 = vmatpush.bf16.msrb.mxu3 %v7869_v35  ;;  %v3701_v11 = vpop.f32.mrf.mxu1 }
 0x2a7   :  { %v8953_v18 = vld [vmem:[#allocation2 + $0xb34] sm:$0xf0]  ;;  %v8701_v11 = vld [vmem:[#allocation2 + $0x35c] sm:$0xf] }
 0x2a8   :  { %v7580_v19 = vld [vmem:[#allocation2 + $0xd18] sm:$0xf]  ;;  %v7325_v24 = vor.u32 %v8953_v18, %v7324_v15  ;;  %3940 = vmatpush.bf16.msrb.mxu0 %v7069_v23  ;;  %v3738_v49 = vpop.f32.mrf.mxu0 }
 0x2a9   :  { %v9017_v20 = vld [vmem:[#allocation2 + $0xd34] sm:$0xf0] }
 0x2aa   :  { %v7836_v21 = vld [vmem:[#allocation2 + $0xf18] sm:$0xf]  ;;  %v7581_v25 = vor.u32 %v9017_v20, %v7580_v19  ;;  %3953 = vmatpush.bf16.msrb.mxu1 %v7325_v24 }
 0x2ab   :  { %v9081_v22 = vld [vmem:[#allocation2 + $0xf34] sm:$0xf0] }
 0x2ac   :  { %v7036_v26 = vld [vmem:[#allocation2 + $0x8d8] sm:$0xf]  ;;  %v7837_v30 = vor.u32 %v9081_v22, %v7836_v21  ;;  %3966 = vmatpush.bf16.msrb.mxu2 %v7581_v25  ;;  %v3714_v25 = vpop.f32.mrf.mxu2 }
 0x2ad   :  { %v8881_v27 = vld [vmem:[#allocation2 + $0x8f4] sm:$0xf0]  ;;  %v8757_v25 = vld [vmem:[#allocation2 + $0x51c] sm:$0xf] }
 0x2ae   :  { %v7292_v28 = vld [vmem:[#allocation2 + $0xad8] sm:$0xf]  ;;  %v7037_v45 = vor.u32 %v8881_v27, %v7036_v26  ;;  %3979 = vmatpush.bf16.msrb.mxu3 %v7837_v30  ;;  %v8653_v30 = vld [vmem:[#allocation2 + $0x1dc] sm:$0xf] }
 0x2af   :  { %v8945_v31 = vld [vmem:[#allocation2 + $0xaf4] sm:$0xf0] }
 0x2b0   :  { %v7548_v36 = vld [vmem:[#allocation2 + $0xcd8] sm:$0xf]  ;;  %v7293_v46 = vor.u32 %v8945_v31, %v7292_v28  ;;  %3941 = vmatpush.bf16.msrb.mxu0 %v7037_v45  ;;  %v6142_v31 = vld [vmem:[#allocation2 + $0x1f8] sm:$0xf0] }
 0x2b1   :  { %v9009_v51 = vld [vmem:[#allocation2 + $0xcf4] sm:$0xf0] }
 0x2b2   :  { %v7804_v39 = vld [vmem:[#allocation2 + $0xed8] sm:$0xf]  ;;  %v7549_v58 = vor.u32 %v9009_v51, %v7548_v36  ;;  %3954 = vmatpush.bf16.msrb.mxu1 %v7293_v46  ;;  %v8717_v36 = vld [vmem:[#allocation2 + $0x3dc] sm:$0xf] }
 0x2b3   :  { %v9073_v43 = vld [vmem:[#allocation2 + $0xef4] sm:$0xf0] }
 0x2b4   :  { %v7004_v48 = vld [vmem:[#allocation2 + $0x898] sm:$0xf]  ;;  %v7805_v56 = vor.u32 %v9073_v43, %v7804_v39  ;;  %3967 = vmatpush.bf16.msrb.mxu2 %v7549_v58  ;;  %v6398_v39 = vld [vmem:[#allocation2 + $0x3f8] sm:$0xf0] }
 0x2b5   :  { %v8873_v52 = vld [vmem:[#allocation2 + $0x8b4] sm:$0xf0]  ;;  %v8781_v43 = vld [vmem:[#allocation2 + $0x5dc] sm:$0xf]  ;;  %v6401_v55 = vor.u32 %v8717_v36, %v6398_v39 }
 0x2b6   :  { %v7260_v53 = vld [vmem:[#allocation2 + $0xa98] sm:$0xf]  ;;  %v7005_v3 = vor.u32 %v8873_v52, %v7004_v48  ;;  %3980 = vmatpush.bf16.msrb.mxu3 %v7805_v56  ;;  %v8845_v58 = vld [vmem:[#allocation2 + $0x7dc] sm:$0xf]  ;;  %v6657_v56 = vor.u32 %v8781_v43, %v6654_v44  ;;  %v3739_v43 = vadd.f32 %v3738_v49, %v9715_v4  ;;  %v3751_v44 = vpop.f32.mrf.mxu1 }
 0x2b7   :  { %v8937_v57 = vld [vmem:[#allocation2 + $0xab4] sm:$0xf0]  ;;  %v6910_v48 = vld [vmem:[#allocation2 + $0x7f8] sm:$0xf0] }
 0x2b8   :  { %v7516_v59 = vld [vmem:[#allocation2 + $0xc98] sm:$0xf]  ;;  %v7261_v6 = vor.u32 %v8937_v57, %v7260_v53  ;;  %3942 = vmatpush.bf16.msrb.mxu0 %v7005_v3  ;;  %v6145_v53 = vor.u32 %v8653_v30, %v6142_v31  ;;  %v8645_v57 = vld [vmem:[#allocation2 + $0x19c] sm:$0xf]  ;;  %v6913_v62 = vor.u32 %v8845_v58, %v6910_v48 }
 0x2b9   :  { %v9001_v60 = vld [vmem:[#allocation2 + $0xcb4] sm:$0xf0]  ;;  %v8837_v3 = vld [vmem:[#allocation2 + $0x79c] sm:$0xf] }
 0x2ba   :  { %v7772_v0 = vld [vmem:[#allocation2 + $0xe98] sm:$0xf]  ;;  %v7517_v7 = vor.u32 %v9001_v60, %v7516_v59  ;;  %3955 = vmatpush.bf16.msrb.mxu1 %v7261_v6  ;;  %v6110_v59 = vld [vmem:[#allocation2 + $0x1b8] sm:$0xf0] }
 0x2bb   :  { %v9065_v2 = vld [vmem:[#allocation2 + $0xeb4] sm:$0xf0]  ;;  %v8709_v60 = vld [vmem:[#allocation2 + $0x39c] sm:$0xf]  ;;  %v6113_v6 = vor.u32 %v8645_v57, %v6110_v59 }
 0x2bc   :  { %v6972_v8 = vld [vmem:[#allocation2 + $0x858] sm:$0xf]  ;;  %v7773_v12 = vor.u32 %v9065_v2, %v7772_v0  ;;  %3968 = vmatpush.bf16.msrb.mxu2 %v7517_v7  ;;  %v8773_v0 = vld [vmem:[#allocation2 + $0x59c] sm:$0xf]  ;;  %v6369_v7 = vor.u32 %v8709_v60, %v6366_v63 }
 0x2bd   :  { %v8865_v9 = vld [vmem:[#allocation2 + $0x874] sm:$0xf0]  ;;  %v6622_v2 = vld [vmem:[#allocation2 + $0x5b8] sm:$0xf0] }
 0x2be   :  { %v7228_v10 = vld [vmem:[#allocation2 + $0xa58] sm:$0xf]  ;;  %v6973_v18 = vor.u32 %v8865_v9, %v6972_v8  ;;  %3981 = vmatpush.bf16.msrb.mxu3 %v7773_v12  ;;  %v6625_v8 = vor.u32 %v8773_v0, %v6622_v2  ;;  %v8637_v9 = vld [vmem:[#allocation2 + $0x15c] sm:$0xf]  ;;  %v6881_v12 = vor.u32 %v8837_v3, %v6878_v5  ;;  %v3764_v0 = vpop.f32.mrf.mxu2 }
 0x2bf   :  { %v8929_v13 = vld [vmem:[#allocation2 + $0xa74] sm:$0xf0]  ;;  %v8621_v36 = vld [vmem:[#allocation2 + $0xdc] sm:$0xf] }
 0x2c0   :  { %v7484_v14 = vld [vmem:[#allocation2 + $0xc58] sm:$0xf]  ;;  %v7229_v21 = vor.u32 %v8929_v13, %v7228_v10  ;;  %3943 = vmatpush.bf16.msrb.mxu0 %v6973_v18  ;;  %v6078_v10 = vld [vmem:[#allocation2 + $0x178] sm:$0xf0] }
 0x2c1   :  { %v8993_v15 = vld [vmem:[#allocation2 + $0xc74] sm:$0xf0]  ;;  %v6334_v13 = vld [vmem:[#allocation2 + $0x378] sm:$0xf0]  ;;  %v6081_v18 = vor.u32 %v8637_v9, %v6078_v10 }
 0x2c2   :  { %v7740_v17 = vld [vmem:[#allocation2 + $0xe58] sm:$0xf]  ;;  %v7485_v22 = vor.u32 %v8993_v15, %v7484_v14  ;;  %3956 = vmatpush.bf16.msrb.mxu1 %v7229_v21  ;;  %v8765_v14 = vld [vmem:[#allocation2 + $0x55c] sm:$0xf] }
 0x2c3   :  { %v9057_v35 = vld [vmem:[#allocation2 + $0xe74] sm:$0xf0]  ;;  %v6590_v15 = vld [vmem:[#allocation2 + $0x578] sm:$0xf0] }
 0x2c4   :  { %v6940_v19 = vld [vmem:[#allocation2 + $0x818] sm:$0xf]  ;;  %v7741_v26 = vor.u32 %v9057_v35, %v7740_v17  ;;  %3969 = vmatpush.bf16.msrb.mxu2 %v7485_v22  ;;  %v8829_v17 = vld [vmem:[#allocation2 + $0x75c] sm:$0xf] }
 0x2c5   :  { %v8857_v20 = vld [vmem:[#allocation2 + $0x834] sm:$0xf0]  ;;  %v6846_v35 = vld [vmem:[#allocation2 + $0x778] sm:$0xf0] }
 0x2c6   :  { %v7196_v23 = vld [vmem:[#allocation2 + $0xa18] sm:$0xf]  ;;  %v6941_v51 = vor.u32 %v8857_v20, %v6940_v19  ;;  %3982 = vmatpush.bf16.msrb.mxu3 %v7741_v26  ;;  %v6337_v19 = vor.u32 %v8701_v11, %v6334_v13  ;;  %v6593_v20 = vor.u32 %v8765_v14, %v6590_v15  ;;  %v8629_v21 = vld [vmem:[#allocation2 + $0x11c] sm:$0xf] }
 0x2c7   :  { %v8921_v1 = vld [vmem:[#allocation2 + $0xa34] sm:$0xf0]  ;;  %v6046_v22 = vld [vmem:[#allocation2 + $0x138] sm:$0xf0] }
 0x2c8   :  { %v7452_v24 = vld [vmem:[#allocation2 + $0xc18] sm:$0xf]  ;;  %v7197_v45 = vor.u32 %v8921_v1, %v7196_v23  ;;  %3944 = vmatpush.bf16.msrb.mxu0 %v6941_v51  ;;  %v8693_v23 = vld [vmem:[#allocation2 + $0x31c] sm:$0xf]  ;;  %v6849_v1 = vor.u32 %v8829_v17, %v6846_v35 }
 0x2c9   :  { %v8985_v27 = vld [vmem:[#allocation2 + $0xc34] sm:$0xf0]  ;;  %v6558_v26 = vld [vmem:[#allocation2 + $0x538] sm:$0xf0] }
 0x2ca   :  { %v7708_v28 = vld [vmem:[#allocation2 + $0xe18] sm:$0xf]  ;;  %v7453_v46 = vor.u32 %v8985_v27, %v7452_v24  ;;  %3957 = vmatpush.bf16.msrb.mxu1 %v7197_v45  ;;  %v6302_v24 = vld [vmem:[#allocation2 + $0x338] sm:$0xf0]  ;;  %v6561_v31 = vor.u32 %v8757_v25, %v6558_v26 }
 0x2cb   :  { %v9049_v29 = vld [vmem:[#allocation2 + $0xe34] sm:$0xf0]  ;;  %3945 = vmatmul.bf16.vlgmr.msrb.gmra.mxu0 %v9633_v37  ;;  %v8821_v27 = vld [vmem:[#allocation2 + $0x71c] sm:$0xf]  ;;  %v6305_v30 = vor.u32 %v8693_v23, %v6302_v24 }
 0x2cc   :  { %v7709_v52 = vor.u32 %v9049_v29, %v7708_v28  ;;  %3970 = vmatpush.bf16.msrb.mxu2 %v7453_v46  ;;  %3989 = vmatpush.bf16.msra.mxu0 %v6145_v53  ;;  %v6814_v28 = vld [vmem:[#allocation2 + $0x738] sm:$0xf0]  ;;  %v6049_v29 = vor.u32 %v8629_v21, %v6046_v22 }
 0x2cd   :  { %3958 = vmatmul.bf16.vlgmr.msrb.gmra.mxu1 %v9637_v40  ;;  %v6014_v51 = vld [vmem:[#allocation2 + $0xf8] sm:$0xf0]  ;;  %v6817_v45 = vor.u32 %v8821_v27, %v6814_v28 }
 0x2ce   :  { %3983 = vmatpush.bf16.msrb.mxu3 %v7709_v52  ;;  %4002 = vmatpush.bf16.msra.mxu1 %v6401_v55  ;;  %v8685_v39 = vld [vmem:[#allocation2 + $0x2dc] sm:$0xf]  ;;  %v3752_v55 = vadd.f32 %v3751_v44, %v3739_v43 }
 0x2cf   :  { %3971 = vmatmul.bf16.vlgmr.msrb.gmra.mxu2 %v9631_v32  ;;  %v6270_v46 = vld [vmem:[#allocation2 + $0x2f8] sm:$0xf0] }
 0x2d0   :  { %4015 = vmatpush.bf16.msra.mxu2 %v6657_v56  ;;  %3990 = vmatpush.bf16.msra.mxu0 %v6113_v6  ;;  %v8749_v58 = vld [vmem:[#allocation2 + $0x4dc] sm:$0xf]  ;;  %v6017_v56 = vor.u32 %v8621_v36, %v6014_v51  ;;  %v6273_v57 = vor.u32 %v8685_v39, %v6270_v46  ;;  %v3765_v6 = vadd.f32 %v3764_v0, %v3752_v55 }
 0x2d1   :  { %3984 = vmatmul.bf16.vlgmr.msrb.gmra.mxu3 %v9635_v38  ;;  %v6526_v48 = vld [vmem:[#allocation2 + $0x4f8] sm:$0xf0] }
 0x2d2   :  { %4028 = vmatpush.bf16.msra.mxu3 %v6913_v62  ;;  %4003 = vmatpush.bf16.msra.mxu1 %v6369_v7  ;;  %v8813_v52 = vld [vmem:[#allocation2 + $0x6dc] sm:$0xf]  ;;  %v6529_v59 = vor.u32 %v8749_v58, %v6526_v48  ;;  %v3777_v7 = vpop.f32.mrf.mxu3 }
 0x2d3   :  { %v6782_v53 = vld [vmem:[#allocation2 + $0x6f8] sm:$0xf0]  ;;  %v9722_v11 = vadd.f32 %v3777_v7, %v3765_v6 }
 0x2d4   :  { %4016 = vmatpush.bf16.msra.mxu2 %v6625_v8  ;;  %3991 = vmatpush.bf16.msra.mxu0 %v6081_v18  ;;  %v8613_v60 = vld [vmem:[#allocation2 + $0x9c] sm:$0xf]  ;;  %v6785_v4 = vor.u32 %v8813_v52, %v6782_v53  ;;  %v3753_v18 = vpop.f32.mrf.mxu1 }
 0x2d5   :  { %v5982_v62 = vld [vmem:[#allocation2 + $0xb8] sm:$0xf0] }
 0x2d6   :  { %4029 = vmatpush.bf16.msra.mxu3 %v6881_v12  ;;  %4004 = vmatpush.bf16.msra.mxu1 %v6337_v19  ;;  %v8677_v63 = vld [vmem:[#allocation2 + $0x29c] sm:$0xf]  ;;  %v5985_v10 = vor.u32 %v8613_v60, %v5982_v62  ;;  %v3740_v12 = vpop.f32.mrf.mxu0 }
 0x2d7   :  { %v6238_v2 = vld [vmem:[#allocation2 + $0x2b8] sm:$0xf0] }
 0x2d8   :  { %4017 = vmatpush.bf16.msra.mxu2 %v6593_v20  ;;  %3992 = vmatpush.bf16.msra.mxu0 %v6049_v29  ;;  %v8741_v3 = vld [vmem:[#allocation2 + $0x49c] sm:$0xf]  ;;  %v6241_v13 = vor.u32 %v8677_v63, %v6238_v2 }
 0x2d9   :  { %v6494_v5 = vld [vmem:[#allocation2 + $0x4b8] sm:$0xf0] }
 0x2da   :  { %4030 = vmatpush.bf16.msra.mxu3 %v6849_v1  ;;  %4005 = vmatpush.bf16.msra.mxu1 %v6305_v30  ;;  %v8805_v8 = vld [vmem:[#allocation2 + $0x69c] sm:$0xf]  ;;  %v6497_v14 = vor.u32 %v8741_v3, %v6494_v5  ;;  %v3779_v44 = vpop.f32.mrf.mxu3 }
 0x2db   :  { %v6750_v9 = vld [vmem:[#allocation2 + $0x6b8] sm:$0xf0] }
 0x2dc   :  { %4018 = vmatpush.bf16.msra.mxu2 %v6561_v31  ;;  %3993 = vmatpush.bf16.msra.mxu0 %v6017_v56  ;;  %v8605_v15 = vld [vmem:[#allocation2 + $0x5c] sm:$0xf]  ;;  %v6753_v19 = vor.u32 %v8805_v8, %v6750_v9  ;;  %v3766_v31 = vpop.f32.mrf.mxu2 }
 0x2dd   :  { %v5950_v17 = vld [vmem:[#allocation2 + $0x78] sm:$0xf0] }
 0x2de   :  { %4031 = vmatpush.bf16.msra.mxu3 %v6817_v45  ;;  %4006 = vmatpush.bf16.msra.mxu1 %v6273_v57  ;;  %v8669_v35 = vld [vmem:[#allocation2 + $0x25c] sm:$0xf]  ;;  %v5953_v24 = vor.u32 %v8605_v15, %v5950_v17 }
 0x2df   :  { %v6206_v20 = vld [vmem:[#allocation2 + $0x278] sm:$0xf0] }
 0x2e0   :  { %4019 = vmatpush.bf16.msra.mxu2 %v6529_v59  ;;  %v8733_v21 = vld [vmem:[#allocation2 + $0x45c] sm:$0xf]  ;;  %3994 = vmatpush.bf16.msra.mxu0 %v5985_v10  ;;  %v6209_v27 = vor.u32 %v8669_v35, %v6206_v20 }
 0x2e1   :  { %v6462_v22 = vld [vmem:[#allocation2 + $0x478] sm:$0xf0] }
 0x2e2   :  { %4032 = vmatpush.bf16.msra.mxu3 %v6785_v4  ;;  %v8797_v23 = vld [vmem:[#allocation2 + $0x65c] sm:$0xf]  ;;  %4007 = vmatpush.bf16.msra.mxu1 %v6241_v13  ;;  %v6465_v28 = vor.u32 %v8733_v21, %v6462_v22 }
 0x2e3   :  { %v6718_v1 = vld [vmem:[#allocation2 + $0x678] sm:$0xf0] }
 0x2e4   :  { %v8597_v25 = vld [vmem:[#allocation2 + $0x1c] sm:$0xf]  ;;  %4020 = vmatpush.bf16.msra.mxu2 %v6497_v14  ;;  %v6721_v36 = vor.u32 %v8797_v23, %v6718_v1  ;;  %3995 = vmatpush.bf16.msra.mxu0 %v5953_v24 }
 0x2e5   :  { %v5918_v26 = vld [vmem:[#allocation2 + $0x38] sm:$0xf0] }
 0x2e6   :  { %v8661_v29 = vld [vmem:[#allocation2 + $0x21c] sm:$0xf]  ;;  %4033 = vmatpush.bf16.msra.mxu3 %v6753_v19  ;;  %v5921_v48 = vor.u32 %v8597_v25, %v5918_v26  ;;  %4008 = vmatpush.bf16.msra.mxu1 %v6209_v27 }
 0x2e7   :  { %v6174_v49 = vld [vmem:[#allocation2 + $0x238] sm:$0xf0] }
 0x2e8   :  { %v8725_v30 = vld [vmem:[#allocation2 + $0x41c] sm:$0xf]  ;;  %4021 = vmatpush.bf16.msra.mxu2 %v6465_v28  ;;  %v6177_v56 = vor.u32 %v8661_v29, %v6174_v49  ;;  %3996 = vmatpush.bf16.msra.mxu0 %v5921_v48 }
 0x2e9   :  { %v6430_v51 = vld [vmem:[#allocation2 + $0x438] sm:$0xf0] }
 0x2ea   :  { %v8789_v39 = vld [vmem:[#allocation2 + $0x61c] sm:$0xf]  ;;  %v6433_v57 = vor.u32 %v8725_v30, %v6430_v51  ;;  %4034 = vmatpush.bf16.msra.mxu3 %v6721_v36  ;;  %4009 = vmatpush.bf16.msra.mxu1 %v6177_v56  ;;  %v9728_v51 = vpop.f32.mrf.mxu0 }
 0x2eb   :  { %v6686_v43 = vld [vmem:[#allocation2 + $0x638] sm:$0xf0]  ;;  %3997 = vmatmul.bf16.vlgmr.msra.gmra.mxu0 %v9618_v34 }
 0x2ec   :  { %v8909_v45 = vld [vmem:[#allocation2 + $0x9dc] sm:$0xf]  ;;  %v6689_v62 = vor.u32 %v8789_v39, %v6686_v43  ;;  %4022 = vmatpush.bf16.msra.mxu2 %v6433_v57 }
 0x2ed   :  { %v7166_v46 = vld [vmem:[#allocation2 + $0x9f8] sm:$0xf0]  ;;  %4010 = vmatmul.bf16.vlgmr.msra.gmra.mxu1 %v9622_v42 }
 0x2ee   :  { %v8973_v58 = vld [vmem:[#allocation2 + $0xbdc] sm:$0xf]  ;;  %v7169_v63 = vor.u32 %v8909_v45, %v7166_v46  ;;  %4035 = vmatpush.bf16.msra.mxu3 %v6689_v62  ;;  %v9730_v46 = vpop.f32.mrf.mxu1 }
 0x2ef   :  { %v7422_v52 = vld [vmem:[#allocation2 + $0xbf8] sm:$0xf0]  ;;  %4023 = vmatmul.bf16.vlgmr.msra.gmra.mxu2 %v9616_v33 }
 0x2f0   :  { %v9037_v53 = vld [vmem:[#allocation2 + $0xddc] sm:$0xf]  ;;  %v7425_v0 = vor.u32 %v8973_v58, %v7422_v52  ;;  %4041 = vmatpush.bf16.msrb.mxu0 %v7169_v63 }
 0x2f1   :  { %v7678_v55 = vld [vmem:[#allocation2 + $0xdf8] sm:$0xf0]  ;;  %4036 = vmatmul.bf16.vlgmr.msra.gmra.mxu3 %v9620_v41 }
 0x2f2   :  { %v9101_v59 = vld [vmem:[#allocation2 + $0xfdc] sm:$0xf]  ;;  %v7681_v4 = vor.u32 %v9037_v53, %v7678_v55  ;;  %4054 = vmatpush.bf16.msrb.mxu1 %v7425_v0 }
 0x2f3   :  { %v7934_v60 = vld [vmem:[#allocation2 + $0xff8] sm:$0xf0] }
 0x2f4   :  { %v8901_v2 = vld [vmem:[#allocation2 + $0x99c] sm:$0xf]  ;;  %v7937_v6 = vor.u32 %v9101_v59, %v7934_v60  ;;  %4067 = vmatpush.bf16.msrb.mxu2 %v7681_v4  ;;  %v9732_v4 = vpop.f32.mrf.mxu2 }
 0x2f5   :  { %v7134_v3 = vld [vmem:[#allocation2 + $0x9b8] sm:$0xf0] }
 0x2f6   :  { %v8965_v5 = vld [vmem:[#allocation2 + $0xb9c] sm:$0xf]  ;;  %v7137_v13 = vor.u32 %v8901_v2, %v7134_v3  ;;  %4080 = vmatpush.bf16.msrb.mxu3 %v7937_v6 }
 0x2f7   :  { %v7390_v7 = vld [vmem:[#allocation2 + $0xbb8] sm:$0xf0] }
 0x2f8   :  { %v9029_v8 = vld [vmem:[#allocation2 + $0xd9c] sm:$0xf]  ;;  %v7393_v14 = vor.u32 %v8965_v5, %v7390_v7  ;;  %4042 = vmatpush.bf16.msrb.mxu0 %v7137_v13  ;;  %v9734_v7 = vpop.f32.mrf.mxu3 }
 0x2f9   :  { %v7646_v9 = vld [vmem:[#allocation2 + $0xdb8] sm:$0xf0] }
 0x2fa   :  { %v9093_v10 = vld [vmem:[#allocation2 + $0xf9c] sm:$0xf]  ;;  %v7649_v15 = vor.u32 %v9029_v8, %v7646_v9  ;;  %4055 = vmatpush.bf16.msrb.mxu1 %v7393_v14 }
 0x2fb   :  { %v7902_v12 = vld [vmem:[#allocation2 + $0xfb8] sm:$0xf0] }
 0x2fc   :  { %v8893_v17 = vld [vmem:[#allocation2 + $0x95c] sm:$0xf]  ;;  %v7905_v19 = vor.u32 %v9093_v10, %v7902_v12  ;;  %4068 = vmatpush.bf16.msrb.mxu2 %v7649_v15  ;;  %v3792_v12 = vpop.f32.mrf.mxu0 }
 0x2fd   :  { %v7102_v35 = vld [vmem:[#allocation2 + $0x978] sm:$0xf0] }
 0x2fe   :  { %v8957_v18 = vld [vmem:[#allocation2 + $0xb5c] sm:$0xf]  ;;  %v7105_v24 = vor.u32 %v8893_v17, %v7102_v35  ;;  %4081 = vmatpush.bf16.msrb.mxu3 %v7905_v19 }
 0x2ff   :  { %v7358_v20 = vld [vmem:[#allocation2 + $0xb78] sm:$0xf0] }
 0x300   :  { %v9021_v21 = vld [vmem:[#allocation2 + $0xd5c] sm:$0xf]  ;;  %v7361_v25 = vor.u32 %v8957_v18, %v7358_v20  ;;  %4043 = vmatpush.bf16.msrb.mxu0 %v7105_v24  ;;  %v3805_v18 = vpop.f32.mrf.mxu1 }
 0x301   :  { %v7614_v22 = vld [vmem:[#allocation2 + $0xd78] sm:$0xf0]  ;;  %v9132_v18 = vld [vmem:[%s10257_s3 + $0xd0] sm:$0xff] }
 0x302   :  { %v9085_v23 = vld [vmem:[#allocation2 + $0xf5c] sm:$0xf]  ;;  %v7617_v26 = vor.u32 %v9021_v21, %v7614_v22  ;;  %4056 = vmatpush.bf16.msrb.mxu1 %v7361_v25 }
 0x303   :  { %v7870_v1 = vld [vmem:[#allocation2 + $0xf78] sm:$0xf0] }
 0x304   :  { %v8885_v27 = vld [vmem:[#allocation2 + $0x91c] sm:$0xf]  ;;  %v7873_v29 = vor.u32 %v9085_v23, %v7870_v1  ;;  %4069 = vmatpush.bf16.msrb.mxu2 %v7617_v26 }
 0x305   :  { %v7070_v28 = vld [vmem:[#allocation2 + $0x938] sm:$0xf0] }
 0x306   :  { %v8949_v33 = vld [vmem:[#allocation2 + $0xb1c] sm:$0xf]  ;;  %v7073_v41 = vor.u32 %v8885_v27, %v7070_v28  ;;  %4082 = vmatpush.bf16.msrb.mxu3 %v7873_v29  ;;  %v3818_v29 = vpop.f32.mrf.mxu2 }
 0x307   :  { %v7326_v49 = vld [vmem:[#allocation2 + $0xb38] sm:$0xf0]  ;;  %v9145_v29 = vld [vmem:[%s10257_s3 + $0x138] sm:$0xff] }
 0x308   :  { %v9013_v30 = vld [vmem:[#allocation2 + $0xd1c] sm:$0xf]  ;;  %v7329_v42 = vor.u32 %v8949_v33, %v7326_v49  ;;  %4044 = vmatpush.bf16.msrb.mxu0 %v7073_v41 }
 0x309   :  { %v7582_v31 = vld [vmem:[#allocation2 + $0xd38] sm:$0xf0] }
 0x30a   :  { %v9077_v36 = vld [vmem:[#allocation2 + $0xf1c] sm:$0xf]  ;;  %v7585_v39 = vor.u32 %v9013_v30, %v7582_v31  ;;  %4057 = vmatpush.bf16.msrb.mxu1 %v7329_v42 }
 0x30b   :  { %v7838_v34 = vld [vmem:[#allocation2 + $0xf38] sm:$0xf0] }
 0x30c   :  { %v8877_v43 = vld [vmem:[#allocation2 + $0x8dc] sm:$0xf]  ;;  %v7841_v58 = vor.u32 %v9077_v36, %v7838_v34  ;;  %4070 = vmatpush.bf16.msrb.mxu2 %v7585_v39  ;;  %v3831_v34 = vpop.f32.mrf.mxu3 }
 0x30d   :  { %v7038_v44 = vld [vmem:[#allocation2 + $0x8f8] sm:$0xf0] }
 0x30e   :  { %v8941_v45 = vld [vmem:[#allocation2 + $0xadc] sm:$0xf]  ;;  %v7041_v57 = vor.u32 %v8877_v43, %v7038_v44  ;;  %4083 = vmatpush.bf16.msrb.mxu3 %v7841_v58  ;;  %v9113_v58 = vld [vmem:[%s10257_s3 + $0x38] sm:$0xff] }
 0x30f   :  { %v7294_v48 = vld [vmem:[#allocation2 + $0xaf8] sm:$0xf0] }
 0x310   :  { %v9005_v52 = vld [vmem:[#allocation2 + $0xcdc] sm:$0xf]  ;;  %v7297_v59 = vor.u32 %v8941_v45, %v7294_v48  ;;  %4045 = vmatpush.bf16.msrb.mxu0 %v7041_v57  ;;  %v9121_v48 = vld [vmem:[%s10257_s3 + $0x78] sm:$0xff]  ;;  %v9128_v57 = vld [vmem:[%s10257_s3 + $0xb0] sm:$0xff] }
 0x311   :  { %v7550_v53 = vld [vmem:[#allocation2 + $0xcf8] sm:$0xf0] }
 0x312   :  { %v9069_v55 = vld [vmem:[#allocation2 + $0xedc] sm:$0xf]  ;;  %v7553_v60 = vor.u32 %v9005_v52, %v7550_v53  ;;  %4058 = vmatpush.bf16.msrb.mxu1 %v7297_v59  ;;  %v9129_v52 = vld [vmem:[%s10257_s3 + $0xb8] sm:$0xff]  ;;  %v9136_v59 = vld [vmem:[%s10257_s3 + $0xf0] sm:$0xff] }
 0x313   :  { %v7806_v56 = vld [vmem:[#allocation2 + $0xef8] sm:$0xf0]  ;;  %v9137_v53 = vld [vmem:[%s10257_s3 + $0xf8] sm:$0xff] }
 0x314   :  { %v8869_v62 = vld [vmem:[#allocation2 + $0x89c] sm:$0xf]  ;;  %v7809_v2 = vor.u32 %v9069_v55, %v7806_v56  ;;  %4071 = vmatpush.bf16.msrb.mxu2 %v7553_v60  ;;  %v9112_v55 = vld [vmem:[%s10257_s3 + $0x30] sm:$0xff]  ;;  %v9111_v60 = vld [vmem:[%s10257_s3 + $0x28] sm:$0xff]  ;;  %v9806_v12 = vpop.f32.mrf.mxu3 }
 0x315   :  { %v7006_v63 = vld [vmem:[#allocation2 + $0x8b8] sm:$0xf0]  ;;  %v9120_v56 = vld [vmem:[%s10257_s3 + $0x70] sm:$0xff] }
 0x316   :  { %v8933_v0 = vld [vmem:[#allocation2 + $0xa9c] sm:$0xf]  ;;  %v7009_v10 = vor.u32 %v8869_v62, %v7006_v63  ;;  %4084 = vmatpush.bf16.msrb.mxu3 %v7809_v2  ;;  %v9127_v62 = vld [vmem:[%s10257_s3 + $0xa8] sm:$0xff]  ;;  %v9787_v2 = vpop.f32.mrf.mxu1 }
 0x317   :  { %v7262_v3 = vld [vmem:[#allocation2 + $0xab8] sm:$0xf0] }
 0x318   :  { %v8997_v5 = vld [vmem:[#allocation2 + $0xc9c] sm:$0xf]  ;;  %v7265_v13 = vor.u32 %v8933_v0, %v7262_v3  ;;  %4046 = vmatpush.bf16.msrb.mxu0 %v7009_v10  ;;  %v9133_v10 = vld [vmem:[%s10257_s3 + $0xd8] sm:$0xff] }
 0x319   :  { %v7518_v6 = vld [vmem:[#allocation2 + $0xcb8] sm:$0xf0] }
 0x31a   :  { %v9061_v8 = vld [vmem:[#allocation2 + $0xe9c] sm:$0xf]  ;;  %v7521_v14 = vor.u32 %v8997_v5, %v7518_v6  ;;  %4059 = vmatpush.bf16.msrb.mxu1 %v7265_v13  ;;  %v9109_v5 = vld [vmem:[%s10257_s3 + $0x18] sm:$0xff]  ;;  %v9108_v13 = vld [vmem:[%s10257_s3 + $0x10] sm:$0xff] }
 0x31b   :  { %v7774_v9 = vld [vmem:[#allocation2 + $0xeb8] sm:$0xf0]  ;;  %v9117_v6 = vld [vmem:[%s10257_s3 + $0x58] sm:$0xff] }
 0x31c   :  { %v8861_v15 = vld [vmem:[#allocation2 + $0x85c] sm:$0xf]  ;;  %v7777_v19 = vor.u32 %v9061_v8, %v7774_v9  ;;  %4072 = vmatpush.bf16.msrb.mxu2 %v7521_v14  ;;  %v9125_v8 = vld [vmem:[%s10257_s3 + $0x98] sm:$0xff]  ;;  %v9801_v9 = vpop.f32.mrf.mxu2 }
 0x31d   :  { %v6974_v17 = vld [vmem:[#allocation2 + $0x878] sm:$0xf0] }
 0x31e   :  { %v8925_v35 = vld [vmem:[#allocation2 + $0xa5c] sm:$0xf]  ;;  %v6977_v24 = vor.u32 %v8861_v15, %v6974_v17  ;;  %4085 = vmatpush.bf16.msrb.mxu3 %v7777_v19  ;;  %v9116_v15 = vld [vmem:[%s10257_s3 + $0x50] sm:$0xff]  ;;  %v690_v19 = vperm.slane %v9712_v16, 5  ;;  %v9131_v16 = vld [vmem:[%s10257_s3 + $0xc8] sm:$0xff] }
 0x31f   :  { %v7230_v20 = vld [vmem:[#allocation2 + $0xa78] sm:$0xf0]  ;;  %v9124_v17 = vld [vmem:[%s10257_s3 + $0x90] sm:$0xff] }
 0x320   :  { %v8989_v21 = vld [vmem:[#allocation2 + $0xc5c] sm:$0xf]  ;;  %v7233_v25 = vor.u32 %v8925_v35, %v7230_v20  ;;  %4047 = vmatpush.bf16.msrb.mxu0 %v6977_v24  ;;  %v3857_v35 = vpop.f32.mrf.mxu1  ;;  %v9107_v20 = vld [vmem:[%s10257_s3 + $0x8] sm:$0xff]  ;;  %v3791_v24 = vadd.f32 %v9728_v51, %v690_v19 }
 0x321   :  { %v7486_v22 = vld [vmem:[#allocation2 + $0xc78] sm:$0xf0] }
 0x322   :  { %v9053_v23 = vld [vmem:[#allocation2 + $0xe5c] sm:$0xf]  ;;  %v7489_v26 = vor.u32 %v8989_v21, %v7486_v22  ;;  %4060 = vmatpush.bf16.msrb.mxu1 %v7233_v25  ;;  %v9115_v21 = vld [vmem:[%s10257_s3 + $0x48] sm:$0xff] }
 0x323   :  { %v7742_v1 = vld [vmem:[#allocation2 + $0xe78] sm:$0xf0]  ;;  %v9123_v22 = vld [vmem:[%s10257_s3 + $0x88] sm:$0xff] }
 0x324   :  { %v8853_v27 = vld [vmem:[#allocation2 + $0x81c] sm:$0xf]  ;;  %v7745_v49 = vor.u32 %v9053_v23, %v7742_v1  ;;  %4073 = vmatpush.bf16.msrb.mxu2 %v7489_v26  ;;  %v3870_v23 = vpop.f32.mrf.mxu2  ;;  %v3883_v1 = vpop.f32.mrf.mxu3 }
 0x325   :  { %v6942_v28 = vld [vmem:[#allocation2 + $0x838] sm:$0xf0]  ;;  %v9193_v23 = vld [vmem:[%s10259_s5 + $0xb8] sm:$0xff] }
 0x326   :  { %v8917_v33 = vld [vmem:[#allocation2 + $0xa1c] sm:$0xf]  ;;  %v6945_v39 = vor.u32 %v8853_v27, %v6942_v28  ;;  %4086 = vmatpush.bf16.msrb.mxu3 %v7745_v49  ;;  %v4093_v28 = vmax.f32 %v9662_v50, 0.0  ;;  %v4095_v49 = vmax.f32 %v9692_v54, 0.0  ;;  %v9161_v50 = vld [vmem:[%s10257_s3 + $0x1b8] sm:$0xff]  ;;  %v9144_v54 = vld [vmem:[%s10257_s3 + $0x130] sm:$0xff] }
 0x327   :  { %v7198_v30 = vld [vmem:[#allocation2 + $0xa38] sm:$0xf0] }
 0x328   :  { %v8981_v31 = vld [vmem:[#allocation2 + $0xc1c] sm:$0xf]  ;;  %v7201_v43 = vor.u32 %v8917_v33, %v7198_v30  ;;  %4048 = vmatpush.bf16.msrb.mxu0 %v6945_v39  ;;  %v4094_v33 = vmax.f32 %v9676_v47, 0.0  ;;  %v4096_v30 = vmax.f32 %v9706_v61, 0.0  ;;  %v3804_v47 = vadd.f32 %v9730_v46, %v3791_v24  ;;  %v9152_v46 = vld [vmem:[%s10257_s3 + $0x170] sm:$0xff] }
 0x329   :  { %v7454_v36 = vld [vmem:[#allocation2 + $0xc38] sm:$0xf0]  ;;  %v9867_v61 = vpack.c.bf16 %v4095_v49, %v4095_v49 }
 0x32a   :  { %v9045_v41 = vld [vmem:[#allocation2 + $0xe1c] sm:$0xf]  ;;  %v7457_v44 = vor.u32 %v8981_v31, %v7454_v36  ;;  %4061 = vmatpush.bf16.msrb.mxu1 %v7201_v43  ;;  %v9153_v31 = vld [vmem:[%s10257_s3 + $0x178] sm:$0xff]  ;;  %v9860_v36 = vpack.c.bf16 %v4093_v28, %v4093_v28  ;;  %v9862_v34 = vpack.c.bf16 %v4094_v33, %v4094_v33  ;;  %v3817_v39 = vadd.f32 %v9732_v4, %v3804_v47  ;;  %v9143_v43 = vld [vmem:[%s10257_s3 + $0x128] sm:$0xff] }
 0x32b   :  { %v7710_v42 = vld [vmem:[#allocation2 + $0xe38] sm:$0xf0]  ;;  %4049 = vmatmul.bf16.vlgmr.msrb.gmra.mxu0 %v9633_v37  ;;  %v9119_v37 = vld [vmem:[%s10257_s3 + $0x68] sm:$0xff]  ;;  %v9192_v28 = vld [vmem:[%s10259_s5 + $0xb0] sm:$0xff] }
 0x32c   :  { %v7713_v45 = vor.u32 %v9045_v41, %v7710_v42  ;;  %4074 = vmatpush.bf16.msrb.mxu2 %v7457_v44  ;;  %4625 = vmatpush.bf16.msra.mxu0 %v9113_v58  ;;  %v9118_v63 = vld [vmem:[%s10257_s3 + $0x60] sm:$0xff]  ;;  %v9869_v41 = vpack.c.bf16 %v4096_v30, %v4096_v30  ;;  %v9160_v42 = vld [vmem:[%s10257_s3 + $0x1b0] sm:$0xff]  ;;  %v9151_v44 = vld [vmem:[%s10257_s3 + $0x168] sm:$0xff] }
 0x32d   :  { %4062 = vmatmul.bf16.vlgmr.msrb.gmra.mxu1 %v9637_v40  ;;  %v9779_v40 = vpop.f32.mrf.mxu0  ;;  %v9126_v0 = vld [vmem:[%s10257_s3 + $0xa0] sm:$0xff]  ;;  %v9159_v4 = vld [vmem:[%s10257_s3 + $0x1a8] sm:$0xff] }
 0x32e   :  { %4087 = vmatpush.bf16.msrb.mxu3 %v7713_v45  ;;  %4638 = vmatpush.bf16.msra.mxu1 %v9121_v48  ;;  %v9134_v3 = vld [vmem:[%s10257_s3 + $0xe0] sm:$0xff]  ;;  %v3830_v45 = vadd.f32 %v9734_v7, %v3817_v39  ;;  %v9141_v7 = vld [vmem:[%s10257_s3 + $0x118] sm:$0xff]  ;;  %v9167_v33 = vld [vmem:[%s10257_s3 + $0x1e8] sm:$0xff] }
 0x32f   :  { %4075 = vmatmul.bf16.vlgmr.msrb.gmra.mxu2 %v9631_v32  ;;  %v9135_v32 = vld [vmem:[%s10257_s3 + $0xe8] sm:$0xff]  ;;  %v9106_v25 = vld [vmem:[%s10257_s3] sm:$0xff] }
 0x330   :  { %4651 = vmatpush.bf16.msra.mxu2 %v9129_v52  ;;  %4626 = vmatpush.bf16.msra.mxu0 %v9112_v55  ;;  %v9114_v26 = vld [vmem:[%s10257_s3 + $0x40] sm:$0xff]  ;;  %v3907_v55 = vpop.f32.mrf.mxu1  ;;  %v9191_v30 = vld [vmem:[%s10259_s5 + $0xa8] sm:$0xff] }
 0x331   :  { %4088 = vmatmul.bf16.vlgmr.msrb.gmra.mxu3 %v9635_v38  ;;  %v9110_v38 = vld [vmem:[%s10257_s3 + $0x20] sm:$0xff] }
 0x332   :  { %4664 = vmatpush.bf16.msra.mxu3 %v9137_v53  ;;  %4639 = vmatpush.bf16.msra.mxu1 %v9120_v56  ;;  %v9122_v27 = vld [vmem:[%s10257_s3 + $0x80] sm:$0xff]  ;;  %v3843_v56 = vadd.f32 %v9779_v40, %v3830_v45  ;;  %v9148_v40 = vld [vmem:[%s10257_s3 + $0x150] sm:$0xff]  ;;  %v9181_v45 = vld [vmem:[%s10259_s5 + $0x58] sm:$0xff] }
 0x333   :  { %v9130_v51 = vld [vmem:[%s10257_s3 + $0xc0] sm:$0xff] }
 0x334   :  { %4652 = vmatpush.bf16.msra.mxu2 %v9128_v57  ;;  %4627 = vmatpush.bf16.msra.mxu0 %v9111_v60  ;;  %v9142_v58 = vld [vmem:[%s10257_s3 + $0x120] sm:$0xff]  ;;  %v9149_v57 = vld [vmem:[%s10257_s3 + $0x158] sm:$0xff]  ;;  %v3920_v60 = vpop.f32.mrf.mxu2 }
 0x335   :  { %v3844_v14 = vpop.f32.mrf.mxu0  ;;  %v9150_v52 = vld [vmem:[%s10257_s3 + $0x160] sm:$0xff] }
 0x336   :  { %4665 = vmatpush.bf16.msra.mxu3 %v9136_v59  ;;  %4640 = vmatpush.bf16.msra.mxu1 %v9119_v37  ;;  %v9158_v53 = vld [vmem:[%s10257_s3 + $0x1a0] sm:$0xff]  ;;  %v9157_v59 = vld [vmem:[%s10257_s3 + $0x198] sm:$0xff]  ;;  %v3856_v37 = vadd.f32 %v9787_v2, %v3843_v56 }
 0x337   :  { %v9138_v35 = vld [vmem:[%s10257_s3 + $0x100] sm:$0xff] }
 0x338   :  { %4653 = vmatpush.bf16.msra.mxu2 %v9127_v62  ;;  %4628 = vmatpush.bf16.msra.mxu0 %v9110_v38  ;;  %v3933_v62 = vpop.f32.mrf.mxu3  ;;  %v3869_v2 = vadd.f32 %v9801_v9, %v3856_v37  ;;  %v9146_v19 = vld [vmem:[%s10257_s3 + $0x140] sm:$0xff] }
 0x339   :  { %v9182_v47 = vld [vmem:[%s10259_s5 + $0x60] sm:$0xff] }
 0x33a   :  { %4666 = vmatpush.bf16.msra.mxu3 %v9135_v32  ;;  %4641 = vmatpush.bf16.msra.mxu1 %v9118_v63  ;;  %v9140_v32 = vld [vmem:[%s10257_s3 + $0x110] sm:$0xff] }
 0x33b   :  { %v9156_v63 = vld [vmem:[%s10257_s3 + $0x190] sm:$0xff] }
 0x33c   :  { %4654 = vmatpush.bf16.msra.mxu2 %v9126_v0  ;;  %4629 = vmatpush.bf16.msra.mxu0 %v9109_v5  ;;  %v3909_v0 = vpop.f32.mrf.mxu1  ;;  %v3922_v9 = vpop.f32.mrf.mxu2 }
 0x33d   :  { %v3894_v48 = vpop.f32.mrf.mxu0  ;;  %v9187_v0 = vld [vmem:[%s10259_s5 + $0x88] sm:$0xff]  ;;  %v9178_v9 = vld [vmem:[%s10259_s5 + $0x40] sm:$0xff] }
 0x33e   :  { %4667 = vmatpush.bf16.msra.mxu3 %v9134_v3  ;;  %4642 = vmatpush.bf16.msra.mxu1 %v9117_v6  ;;  %v9922_v3 = vld [vmem:[#allocation5] sm:$0xff] }
 0x33f   :  { %v691_v5 = vperm.slane %v9922_v3, 6  ;;  %v9139_v6 = vld [vmem:[%s10257_s3 + $0x108] sm:$0xff] }
 0x340   :  { %4655 = vmatpush.bf16.msra.mxu2 %v9125_v8  ;;  %4630 = vmatpush.bf16.msra.mxu0 %v9108_v13  ;;  %v9147_v8 = vld [vmem:[%s10257_s3 + $0x148] sm:$0xff]  ;;  %v3882_v13 = vadd.f32 %v9806_v12, %v3869_v2  ;;  %v3935_v14 = vpop.f32.mrf.mxu3  ;;  %v9154_v12 = vld [vmem:[%s10257_s3 + $0x180] sm:$0xff] }
 0x341   :  { %v9209_v14 = vld [vmem:[%s10259_s5 + $0x138] sm:$0xff] }
 0x342   :  { %4668 = vmatpush.bf16.msra.mxu3 %v9133_v10  ;;  %4643 = vmatpush.bf16.msra.mxu1 %v9116_v15  ;;  %v9155_v10 = vld [vmem:[%s10257_s3 + $0x188] sm:$0xff]  ;;  %v3895_v15 = vadd.f32 %v3894_v48, %v691_v5 }
 0x344   :  { %4656 = vmatpush.bf16.msra.mxu2 %v9124_v17  ;;  %4631 = vmatpush.bf16.msra.mxu0 %v9107_v20  ;;  %v9169_v17 = vld [vmem:[%s10257_s3 + $0x1f8] sm:$0xff]  ;;  %v4098_v20 = vmax.f32 %v3882_v13, 0.0  ;;  %v9186_v13 = vld [vmem:[%s10259_s5 + $0x80] sm:$0xff] }
 0x345   :  { %v3896_v38 = vpop.f32.mrf.mxu0 }
 0x346   :  { %4669 = vmatpush.bf16.msra.mxu3 %v9132_v18  ;;  %4644 = vmatpush.bf16.msra.mxu1 %v9115_v21  ;;  %v4097_v18 = vmax.f32 %v9722_v11, 0.0  ;;  %v9177_v21 = vld [vmem:[%s10259_s5 + $0x38] sm:$0xff]  ;;  %v3908_v11 = vadd.f32 %v3907_v55, %v3895_v15  ;;  %v9962_v24 = vpack.c.bf16 %v4098_v20, %v4098_v20  ;;  %v9164_v55 = vld [vmem:[%s10257_s3 + $0x1d0] sm:$0xff]  ;;  %v9199_v20 = vld [vmem:[%s10259_s5 + $0xe8] sm:$0xff] }
 0x347   :  { %v9217_v15 = vld [vmem:[%s10259_s5 + $0x178] sm:$0xff] }
 0x348   :  { %4657 = vmatpush.bf16.msra.mxu2 %v9123_v22  ;;  %4632 = vmatpush.bf16.msra.mxu0 %v9106_v25  ;;  %v9185_v22 = vld [vmem:[%s10259_s5 + $0x78] sm:$0xff]  ;;  %v9960_v1 = vpack.c.bf16 %v4097_v18, %v4097_v18  ;;  %v9176_v25 = vld [vmem:[%s10259_s5 + $0x30] sm:$0xff] }
 0x349   :  { %v9208_v18 = vld [vmem:[%s10259_s5 + $0x130] sm:$0xff] }
 0x34a   :  { %4670 = vmatpush.bf16.msra.mxu3 %v9131_v16  ;;  %4645 = vmatpush.bf16.msra.mxu1 %v9114_v26  ;;  %v9168_v16 = vld [vmem:[%s10257_s3 + $0x1f0] sm:$0xff]  ;;  %v3959_v39 = vpop.f32.mrf.mxu1 }
 0x34b   :  { %4633 = vmatmul.bf16.vlgmr.msra.gmra.mxu0 %v9860_v36  ;;  %v9184_v26 = vld [vmem:[%s10259_s5 + $0x70] sm:$0xff] }
 0x34c   :  { %4658 = vmatpush.bf16.msra.mxu2 %v9122_v27  ;;  %4677 = vmatpush.bf16.msrb.mxu0 %v9145_v29  ;;  %v3921_v27 = vadd.f32 %v3920_v60, %v3908_v11  ;;  %v9183_v29 = vld [vmem:[%s10259_s5 + $0x68] sm:$0xff]  ;;  %v9188_v60 = vld [vmem:[%s10259_s5 + $0x90] sm:$0xff]  ;;  %v9206_v11 = vld [vmem:[%s10259_s5 + $0x120] sm:$0xff] }
 0x34d   :  { %4646 = vmatmul.bf16.vlgmr.msra.gmra.mxu1 %v9862_v34 }
 0x34e   :  { %4671 = vmatpush.bf16.msra.mxu3 %v9130_v51  ;;  %4690 = vmatpush.bf16.msrb.mxu1 %v9153_v31  ;;  %v9175_v51 = vld [vmem:[%s10259_s5 + $0x28] sm:$0xff]  ;;  %v3934_v49 = vadd.f32 %v3933_v62, %v3921_v27  ;;  %v9166_v31 = vld [vmem:[%s10257_s3 + $0x1e0] sm:$0xff]  ;;  %v9197_v27 = vld [vmem:[%s10259_s5 + $0xd8] sm:$0xff] }
 0x34f   :  { %4659 = vmatmul.bf16.vlgmr.msra.gmra.mxu2 %v9867_v61 }
 0x350   :  { %4703 = vmatpush.bf16.msrb.mxu2 %v9161_v50  ;;  %4678 = vmatpush.bf16.msrb.mxu0 %v9144_v54  ;;  %v9174_v50 = vld [vmem:[%s10259_s5 + $0x20] sm:$0xff]  ;;  %v3946_v54 = vpop.f32.mrf.mxu0 }
 0x351   :  { %4672 = vmatmul.bf16.vlgmr.msra.gmra.mxu3 %v9869_v41 }
 0x352   :  { %4691 = vmatpush.bf16.msrb.mxu1 %v9152_v46  ;;  %4716 = vmatpush.bf16.msrb.mxu3 %v9169_v17  ;;  %v9190_v46 = vld [vmem:[%s10259_s5 + $0xa0] sm:$0xff]  ;;  %v3972_v48 = vpop.f32.mrf.mxu2  ;;  %v3961_v37 = vpop.f32.mrf.mxu1  ;;  %v9225_v17 = vld [vmem:[%s10259_s5 + $0x1b8] sm:$0xff] }
 0x354   :  { %4704 = vmatpush.bf16.msrb.mxu2 %v9160_v42  ;;  %4679 = vmatpush.bf16.msrb.mxu0 %v9143_v43  ;;  %v3947_v42 = vadd.f32 %v3946_v54, %v3934_v49  ;;  %v9165_v43 = vld [vmem:[%s10257_s3 + $0x1d8] sm:$0xff]  ;;  %v9196_v49 = vld [vmem:[%s10259_s5 + $0xd0] sm:$0xff] }
 0x356   :  { %4692 = vmatpush.bf16.msrb.mxu1 %v9151_v44  ;;  %4717 = vmatpush.bf16.msrb.mxu3 %v9168_v16  ;;  %v3960_v44 = vadd.f32 %v3959_v39, %v3947_v42  ;;  %v9222_v16 = vld [vmem:[%s10259_s5 + $0x1a0] sm:$0xff]  ;;  %v9203_v42 = vld [vmem:[%s10259_s5 + $0x108] sm:$0xff] }
 0x357   :  { %v9211_v39 = vld [vmem:[%s10259_s5 + $0x148] sm:$0xff] }
 0x358   :  { %4705 = vmatpush.bf16.msrb.mxu2 %v9159_v4  ;;  %4680 = vmatpush.bf16.msrb.mxu0 %v9142_v58  ;;  %v9173_v4 = vld [vmem:[%s10259_s5 + $0x18] sm:$0xff] }
 0x359   :  { %v9189_v58 = vld [vmem:[%s10259_s5 + $0x98] sm:$0xff] }
 0x35a   :  { %4693 = vmatpush.bf16.msrb.mxu1 %v9150_v52  ;;  %4718 = vmatpush.bf16.msrb.mxu3 %v9167_v33  ;;  %v3973_v52 = vadd.f32 %v3972_v48, %v3960_v44  ;;  %v3974_v2 = vpop.f32.mrf.mxu2  ;;  %v9213_v33 = vld [vmem:[%s10259_s5 + $0x158] sm:$0xff]  ;;  %v692_v44 = vperm.slane %v9922_v3, 7  ;;  %v9202_v48 = vld [vmem:[%s10259_s5 + $0x100] sm:$0xff] }
 0x35b   :  { %v9218_v3 = vld [vmem:[%s10259_s5 + $0x180] sm:$0xff] }
 0x35c   :  { %4706 = vmatpush.bf16.msrb.mxu2 %v9158_v53  ;;  %4681 = vmatpush.bf16.msrb.mxu0 %v9141_v7  ;;  %v3985_v53 = vpop.f32.mrf.mxu3  ;;  %v9172_v7 = vld [vmem:[%s10259_s5 + $0x10] sm:$0xff] }
 0x35d   :  { %v3986_v56 = vadd.f32 %v3985_v53, %v3973_v52  ;;  %v9210_v52 = vld [vmem:[%s10259_s5 + $0x140] sm:$0xff] }
 0x35e   :  { %4694 = vmatpush.bf16.msrb.mxu1 %v9149_v57  ;;  %4719 = vmatpush.bf16.msrb.mxu3 %v9166_v31  ;;  %v9180_v57 = vld [vmem:[%s10259_s5 + $0x50] sm:$0xff] }
 0x35f   :  { %v4099_v62 = vmax.f32 %v3986_v56, 0.0  ;;  %v9212_v31 = vld [vmem:[%s10259_s5 + $0x150] sm:$0xff] }
 0x360   :  { %4707 = vmatpush.bf16.msrb.mxu2 %v9157_v59  ;;  %4682 = vmatpush.bf16.msrb.mxu0 %v9140_v32  ;;  %v3948_v59 = vpop.f32.mrf.mxu0  ;;  %v9163_v32 = vld [vmem:[%s10257_s3 + $0x1c8] sm:$0xff] }
 0x361   :  { %v10026_v38 = vpack.c.bf16 %v4099_v62, %v4099_v62 }
 0x362   :  { %4695 = vmatpush.bf16.msrb.mxu1 %v9148_v40  ;;  %4720 = vmatpush.bf16.msrb.mxu3 %v9165_v43  ;;  %v9171_v40 = vld [vmem:[%s10259_s5 + $0x8] sm:$0xff] }
 0x363   :  { %v9219_v43 = vld [vmem:[%s10259_s5 + $0x188] sm:$0xff] }
 0x364   :  { %4708 = vmatpush.bf16.msrb.mxu2 %v9156_v63  ;;  %4683 = vmatpush.bf16.msrb.mxu0 %v9139_v6  ;;  %v9179_v63 = vld [vmem:[%s10259_s5 + $0x48] sm:$0xff]  ;;  %v3987_v5 = vpop.f32.mrf.mxu3  ;;  %v9162_v6 = vld [vmem:[%s10257_s3 + $0x1c0] sm:$0xff]  ;;  %s5859_s3 = sshll.u32 %s10265_s11, 4  ;;  %s5860_s3 = int_to_ptr.hbm [resolvable:$true] %s5859_s3 }
 0x366   :  { %4696 = vmatpush.bf16.msrb.mxu1 %v9147_v8  ;;  %4721 = vmatpush.bf16.msrb.mxu3 %v9164_v55  ;;  %v9201_v8 = vld [vmem:[%s10259_s5 + $0xf8] sm:$0xff] }
 0x368   :  { %4709 = vmatpush.bf16.msrb.mxu2 %v9155_v10  ;;  %4684 = vmatpush.bf16.msrb.mxu0 %v9138_v35  ;;  %v9170_v10 = vld [vmem:[%s10259_s5] sm:$0xff]  ;;  %v9200_v35 = vld [vmem:[%s10259_s5 + $0xf0] sm:$0xff] }
 0x36a   :  { %4697 = vmatpush.bf16.msrb.mxu1 %v9146_v19  ;;  %4722 = vmatpush.bf16.msrb.mxu3 %v9163_v32  ;;  %v9216_v19 = vld [vmem:[%s10259_s5 + $0x170] sm:$0xff] }
 0x36b   :  { %4685 = vmatmul.bf16.vlgmr.msrb.gmra.mxu0 %v9960_v1 }
 0x36c   :  { %4710 = vmatpush.bf16.msrb.mxu2 %v9154_v12  ;;  %5245 = vmatpush.bf16.msra.mxu0 %v9177_v21  ;;  %v9224_v12 = vld [vmem:[%s10259_s5 + $0x1b0] sm:$0xff]  ;;  %v9207_v21 = vld [vmem:[%s10259_s5 + $0x128] sm:$0xff] }
 0x36d   :  { %4698 = vmatmul.bf16.vlgmr.msrb.gmra.mxu1 %v9962_v24 }
 0x36e   :  { %5258 = vmatpush.bf16.msra.mxu1 %v9185_v22  ;;  %4723 = vmatpush.bf16.msrb.mxu3 %v9162_v6  ;;  %v9215_v22 = vld [vmem:[%s10259_s5 + $0x168] sm:$0xff] }
 0x36f   :  { %4711 = vmatmul.bf16.vlgmr.msrb.gmra.mxu2 %v10026_v38 }
 0x370   :  { %5271 = vmatpush.bf16.msra.mxu2 %v9193_v23  ;;  %5246 = vmatpush.bf16.msra.mxu0 %v9176_v25  ;;  %v9214_v23 = vld [vmem:[%s10259_s5 + $0x160] sm:$0xff]  ;;  %v3998_v25 = vpop.f32.mrf.mxu0 }
 0x371   :  { %v3999_v53 = vadd.f32 %v3998_v25, %v692_v44 }
 0x372   :  { %5259 = vmatpush.bf16.msra.mxu1 %v9184_v26  ;;  %5284 = vmatpush.bf16.msra.mxu3 %v9201_v8  ;;  %v4011_v26 = vpop.f32.mrf.mxu1  ;;  %v9232_v8 = vld [vmem:[%s10259_s5 + $0x1f0] sm:$0xff] }
 0x373   :  { %v4012_v55 = vadd.f32 %v4011_v26, %v3999_v53 }
 0x374   :  { %5272 = vmatpush.bf16.msra.mxu2 %v9192_v28  ;;  %5247 = vmatpush.bf16.msra.mxu0 %v9175_v51  ;;  %v9205_v28 = vld [vmem:[%s10259_s5 + $0x118] sm:$0xff]  ;;  %v4024_v51 = vpop.f32.mrf.mxu2 }
 0x375   :  { %v4025_v56 = vadd.f32 %v4024_v51, %v4012_v55  ;;  %v9280_v51 = vld [vmem:[#allocation8] ss:$0 sm:$0xff] }
 0x376   :  { %5260 = vmatpush.bf16.msra.mxu1 %v9183_v29  ;;  %5285 = vmatpush.bf16.msra.mxu3 %v9200_v35  ;;  %v4037_v29 = vpop.f32.mrf.mxu3 }
 0x378   :  { %5273 = vmatpush.bf16.msra.mxu2 %v9191_v30  ;;  %5248 = vmatpush.bf16.msra.mxu0 %v9174_v50  ;;  %v9204_v30 = vld [vmem:[%s10259_s5 + $0x110] sm:$0xff] }
 0x379   :  { %v9220_v50 = vld [vmem:[%s10259_s5 + $0x190] sm:$0xff] }
 0x37a   :  { %5261 = vmatpush.bf16.msra.mxu1 %v9182_v47  ;;  %5286 = vmatpush.bf16.msra.mxu3 %v9199_v20  ;;  %v4000_v47 = vpop.f32.mrf.mxu0  ;;  %v4013_v54 = vpop.f32.mrf.mxu1 }
 0x37c   :  { %5274 = vmatpush.bf16.msra.mxu2 %v9190_v46  ;;  %5249 = vmatpush.bf16.msra.mxu0 %v9173_v4  ;;  %v9195_v46 = vld [vmem:[%s10259_s5 + $0xc8] sm:$0xff]  ;;  %v4026_v4 = vpop.f32.mrf.mxu2 }
 0x37e   :  { %5262 = vmatpush.bf16.msra.mxu1 %v9181_v45  ;;  %v4039_v45 = vpop.f32.mrf.mxu3 }
 0x380   :  { %5275 = vmatpush.bf16.msra.mxu2 %v9189_v58  ;;  %5250 = vmatpush.bf16.msra.mxu0 %v9172_v7  ;;  %v9194_v58 = vld [vmem:[%s10259_s5 + $0xc0] sm:$0xff]  ;;  %v4038_v7 = vadd.f32 %v4037_v29, %v4025_v56 }
 0x382   :  { %5263 = vmatpush.bf16.msra.mxu1 %v9180_v57 }
 0x384   :  { %5276 = vmatpush.bf16.msra.mxu2 %v9188_v60  ;;  %5251 = vmatpush.bf16.msra.mxu0 %v9171_v40 }
 0x386   :  { %5264 = vmatpush.bf16.msra.mxu1 %v9179_v63 }
 0x388   :  { %5277 = vmatpush.bf16.msra.mxu2 %v9187_v0  ;;  %5252 = vmatpush.bf16.msra.mxu0 %v9170_v10  ;;  %v9231_v10 = vld [vmem:[%s10259_s5 + $0x1e8] sm:$0xff] }
 0x38a   :  { %5265 = vmatpush.bf16.msra.mxu1 %v9178_v9  ;;  %v9230_v9 = vld [vmem:[%s10259_s5 + $0x1e0] sm:$0xff] }
 0x38b   :  { %5253 = vmatmul.bf16.vlgmr.msra.gmra.mxu0 %v9860_v36  ;;  %v9223_v36 = vld [vmem:[%s10259_s5 + $0x1a8] sm:$0xff] }
 0x38c   :  { %5278 = vmatpush.bf16.msra.mxu2 %v9186_v13  ;;  %5297 = vmatpush.bf16.msrb.mxu0 %v9209_v14  ;;  %v9279_v13 = vld [vmem:[#allocation7] ss:$0 sm:$0xff]  ;;  %v9229_v14 = vld [vmem:[%s10259_s5 + $0x1d8] sm:$0xff] }
 0x38d   :  { %5266 = vmatmul.bf16.vlgmr.msra.gmra.mxu1 %v9862_v34  ;;  %v9198_v34 = vld [vmem:[%s10259_s5 + $0xe0] sm:$0xff] }
 0x38e   :  { %5310 = vmatpush.bf16.msrb.mxu1 %v9217_v15  ;;  %5287 = vmatpush.bf16.msra.mxu3 %v9198_v34 }
 0x38f   :  { %5279 = vmatmul.bf16.vlgmr.msra.gmra.mxu2 %v9867_v61  ;;  %v9221_v61 = vld [vmem:[%s10259_s5 + $0x198] sm:$0xff] }
 0x390   :  { %5323 = vmatpush.bf16.msrb.mxu2 %v9225_v17  ;;  %5298 = vmatpush.bf16.msrb.mxu0 %v9208_v18 }
 0x392   :  { %5311 = vmatpush.bf16.msrb.mxu1 %v9216_v19  ;;  %5288 = vmatpush.bf16.msra.mxu3 %v9197_v27  ;;  %v9228_v19 = vld [vmem:[%s10259_s5 + $0x1d0] sm:$0xff] }
 0x394   :  { %5324 = vmatpush.bf16.msrb.mxu2 %v9224_v12  ;;  %5299 = vmatpush.bf16.msrb.mxu0 %v9207_v21  ;;  %v9227_v21 = vld [vmem:[%s10259_s5 + $0x1c8] sm:$0xff] }
 0x396   :  { %5312 = vmatpush.bf16.msrb.mxu1 %v9215_v22  ;;  %5289 = vmatpush.bf16.msra.mxu3 %v9196_v49 }
 0x398   :  { %5325 = vmatpush.bf16.msrb.mxu2 %v9223_v36  ;;  %5300 = vmatpush.bf16.msrb.mxu0 %v9206_v11 }
 0x39a   :  { %5313 = vmatpush.bf16.msrb.mxu1 %v9214_v23  ;;  %5290 = vmatpush.bf16.msra.mxu3 %v9195_v46 }
 0x39c   :  { %5326 = vmatpush.bf16.msrb.mxu2 %v9222_v16  ;;  %5301 = vmatpush.bf16.msrb.mxu0 %v9205_v28 }
 0x39e   :  { %5314 = vmatpush.bf16.msrb.mxu1 %v9213_v33  ;;  %5291 = vmatpush.bf16.msra.mxu3 %v9194_v58 }
 0x3a0   :  { %5327 = vmatpush.bf16.msrb.mxu2 %v9221_v61  ;;  %5302 = vmatpush.bf16.msrb.mxu0 %v9204_v30 }
 0x3a2   :  { %5315 = vmatpush.bf16.msrb.mxu1 %v9212_v31 }
 0x3a4   :  { %5328 = vmatpush.bf16.msrb.mxu2 %v9220_v50  ;;  %5303 = vmatpush.bf16.msrb.mxu0 %v9203_v42 }
 0x3a6   :  { %5316 = vmatpush.bf16.msrb.mxu1 %v9211_v39 }
 0x3a8   :  { %5329 = vmatpush.bf16.msrb.mxu2 %v9219_v43  ;;  %5304 = vmatpush.bf16.msrb.mxu0 %v9202_v48  ;;  %v4050_v57 = vpop.f32.mrf.mxu0 }
 0x3a9   :  { %v4051_v60 = vadd.f32 %v4050_v57, %v4038_v7  ;;  %v8524_v7 = vld [vmem:[#allocation11 + $0x88] sm:$0xf] }
 0x3aa   :  { %5317 = vmatpush.bf16.msrb.mxu1 %v9210_v52  ;;  %v4063_v59 = vpop.f32.mrf.mxu1  ;;  %v9259_v57 = vld [vmem:[#allocation11 + $0xc4] sm:$0xf0] }
 0x3ab   :  { %5305 = vmatmul.bf16.vlgmr.msrb.gmra.mxu0 %v9960_v1  ;;  %v4064_v37 = vadd.f32 %v4063_v59, %v4051_v60  ;;  %v9233_v1 = vld [vmem:[%s10259_s5 + $0x1f8] sm:$0xff]  ;;  %v9251_v59 = vld [vmem:[#allocation11 + $0x8c] sm:$0xf]  ;;  %v8525_v60 = vor.u32 %v9259_v57, %v8524_v7 }
 0x3ac   :  { %5330 = vmatpush.bf16.msrb.mxu2 %v9218_v3  ;;  %v8556_v57 = vld [vmem:[#allocation11 + $0xa8] sm:$0xf] }
 0x3ad   :  { %5318 = vmatmul.bf16.vlgmr.msrb.gmra.mxu1 %v9962_v24 }
 0x3af   :  { %5331 = vmatmul.bf16.vlgmr.msrb.gmra.mxu2 %v10026_v38 }
 0x3b0   :  { %v4052_v63 = vpop.f32.mrf.mxu0  ;;  %5620 = vmatpush.bf16.msra.mxu2 %v8525_v60  ;;  %v8558_v60 = vld [vmem:[#allocation11 + $0xe8] sm:$0xf0] }
 0x3b2   :  { %v4076_v62 = vpop.f32.mrf.mxu2  ;;  %v4065_v0 = vpop.f32.mrf.mxu1 }
 0x3b3   :  { %v4077_v32 = vadd.f32 %v4076_v62, %v4064_v37  ;;  %v8526_v37 = vld [vmem:[#allocation11 + $0xc8] sm:$0xf0]  ;;  %v8516_v62 = vld [vmem:[#allocation11 + $0x80] sm:$0xf]  ;;  %v9250_v0 = vld [vmem:[#allocation11 + $0x84] sm:$0xf] }
 0x3b4   :  { %v4089_v40 = vpop.f32.mrf.mxu3 }
 0x3b5   :  { %v4090_v2 = vadd.f32 %v4089_v40, %v4077_v32  ;;  %v9258_v32 = vld [vmem:[#allocation11 + $0xbc] sm:$0xf0]  ;;  %v8529_v40 = vor.u32 %v9251_v59, %v8526_v37  ;;  %v9255_v59 = vld [vmem:[#allocation11 + $0xac] sm:$0xf] }
 0x3b6   :  { %v8517_v63 = vor.u32 %v9258_v32, %v8516_v62  ;;  %v8548_v37 = vld [vmem:[#allocation11 + $0xa0] sm:$0xf] }
 0x3b7   :  { %v4100_v5 = vmax.f32 %v4090_v2, 0.0  ;;  %v8518_v2 = vld [vmem:[#allocation11 + $0xc0] sm:$0xf0]  ;;  %v9262_v32 = vld [vmem:[#allocation11 + $0xdc] sm:$0xf0] }
 0x3b8   :  { %5594 = vmatpush.bf16.msra.mxu0 %v8517_v63 }
 0x3b9   :  { %v4108_v24 = vpack.c.bf16 %v4100_v5, %v4100_v5  ;;  %v8521_v5 = vor.u32 %v9250_v0, %v8518_v2  ;;  %v8561_v2 = vor.u32 %v9255_v59, %v8558_v60 }
 0x3ba   :  { %v4078_v6 = vpop.f32.mrf.mxu2 }
 0x3bb   :  { %4724 = vmatmul.bf16.vlgmr.msrb.gmra.mxu3 %v4108_v24  ;;  %v9243_v6 = vld [vmem:[#allocation11 + $0x44] sm:$0xf0]  ;;  %5607 = vmatpush.bf16.msra.mxu1 %v8521_v5 }
 0x3bc   :  { %v4091_v38 = vpop.f32.mrf.mxu3  ;;  %5336 = vmatpush.bf16.msrb.mxu3 %v9233_v1  ;;  %v8492_v5 = vld [vmem:[#allocation11 + $0x28] sm:$0xf] }
 0x3bd   :  { %v9235_v38 = vld [vmem:[#allocation11 + $0xc] sm:$0xf] }
 0x3c0   :  { %5337 = vmatpush.bf16.msrb.mxu3 %v9232_v8 }
 0x3c4   :  { %5338 = vmatpush.bf16.msrb.mxu3 %v9231_v10  ;;  %v8462_v10 = vld [vmem:[#allocation11 + $0x48] sm:$0xf0] }
 0x3c8   :  { %5339 = vmatpush.bf16.msrb.mxu3 %v9230_v9  ;;  %v4634_v15 = vpop.f32.mrf.mxu0  ;;  %v8452_v9 = vld [vmem:[#allocation11] sm:$0xf] }
 0x3c9   :  { %v4635_v35 = vadd.f32 %v9279_v13, %v4634_v15  ;;  %v9242_v13 = vld [vmem:[#allocation11 + $0x3c] sm:$0xf0] }
 0x3ca   :  { %v4647_v17 = vpop.f32.mrf.mxu1  ;;  %v8453_v15 = vor.u32 %v9242_v13, %v8452_v9  ;;  %v9238_v9 = vld [vmem:[#allocation11 + $0x24] sm:$0xf] }
 0x3cb   :  { %5292 = vmatmul.bf16.vlgmr.msra.gmra.mxu3 %v9869_v41  ;;  %v4648_v18 = vadd.f32 %v4647_v17, %v4635_v35  ;;  %v9226_v41 = vld [vmem:[%s10259_s5 + $0x1c0] sm:$0xff]  ;;  %v9234_v17 = vld [vmem:[#allocation11 + $0x4] sm:$0xf]  ;;  %s9525_s5 = smov [#allocation14]  }
 0x3cc   :  { %5340 = vmatpush.bf16.msrb.mxu3 %v9229_v14  ;;  %v8465_v14 = vor.u32 %v9235_v38, %v8462_v10  ;;  %v8454_v35 = vld [vmem:[#allocation11 + $0x40] sm:$0xf0]  ;;  %5595 = vmatpush.bf16.msra.mxu0 %v8453_v15  ;;  %v9239_v38 = vld [vmem:[#allocation11 + $0x2c] sm:$0xf]  ;;  %v8484_v10 = vld [vmem:[#allocation11 + $0x20] sm:$0xf] }
 0x3cd   :  { %v8486_v13 = vld [vmem:[#allocation11 + $0x60] sm:$0xf0]  ;;  %s5857_s16 = sshll.u32 %s9525_s5, 4  ;;  %s5858_s16 = int_to_ptr.vmem [resolvable:$true] %s5857_s16 }
 0x3d0   :  { %5341 = vmatpush.bf16.msrb.mxu3 %v9228_v19  ;;  %v4636_v36 = vpop.f32.mrf.mxu0  ;;  %v8457_v19 = vor.u32 %v9234_v17, %v8454_v35  ;;  %v8489_v35 = vor.u32 %v9238_v9, %v8486_v13 }
 0x3d1   :  { %v8542_v36 = vld [vmem:[#allocation11 + $0xd8] sm:$0xf0] }
 0x3d2   :  { %v4660_v12 = vpop.f32.mrf.mxu2  ;;  %v4649_v34 = vpop.f32.mrf.mxu1  ;;  %5608 = vmatpush.bf16.msra.mxu1 %v8457_v19  ;;  %v9265_v19 = vld [vmem:[#allocation11 + $0xf4] sm:$0xf0] }
 0x3d3   :  { %v4661_v22 = vadd.f32 %v4660_v12, %v4648_v18  ;;  %v8540_v12 = vld [vmem:[#allocation11 + $0x98] sm:$0xf]  ;;  %v8532_v34 = vld [vmem:[#allocation11 + $0x90] sm:$0xf] }
 0x3d4   :  { %v4673_v20 = vpop.f32.mrf.mxu3  ;;  %5342 = vmatpush.bf16.msrb.mxu3 %v9227_v21  ;;  %v9253_v21 = vld [vmem:[#allocation11 + $0x9c] sm:$0xf] }
 0x3d5   :  { %v4674_v11 = vadd.f32 %v4673_v20, %v4661_v22  ;;  %v9261_v20 = vld [vmem:[#allocation11 + $0xd4] sm:$0xf0] }
 0x3d6   :  { %v8541_v22 = vor.u32 %v9261_v20, %v8540_v12  ;;  %v9257_v12 = vld [vmem:[#allocation11 + $0xbc] sm:$0xf] }
 0x3d7   :  { %v8574_v20 = vld [vmem:[#allocation11 + $0xf8] sm:$0xf0] }
 0x3d8   :  { %5343 = vmatpush.bf16.msrb.mxu3 %v9226_v41 }
 0x3da   :  { %v4662_v23 = vpop.f32.mrf.mxu2 }
 0x3db   :  { %5344 = vmatmul.bf16.vlgmr.msrb.gmra.mxu3 %v4108_v24  ;;  %v8460_v24 = vld [vmem:[#allocation11 + $0x8] sm:$0xf]  ;;  %v8545_v23 = vor.u32 %v9253_v21, %v8542_v36  ;;  %v8564_v21 = vld [vmem:[#allocation11 + $0xb0] sm:$0xf]  ;;  %v9256_v36 = vld [vmem:[#allocation11 + $0xb4] sm:$0xf] }
 0x3dc   :  { %v4675_v16 = vpop.f32.mrf.mxu3  ;;  %5633 = vmatpush.bf16.msra.mxu3 %v8529_v40  ;;  %v8461_v8 = vor.u32 %v9243_v6, %v8460_v24  ;;  %v8550_v40 = vld [vmem:[#allocation11 + $0xe0] sm:$0xf0]  ;;  %v8549_v24 = vor.u32 %v9262_v32, %v8548_v37 }
 0x3de   :  { %5621 = vmatpush.bf16.msra.mxu2 %v8461_v8  ;;  %v8494_v8 = vld [vmem:[#allocation11 + $0x68] sm:$0xf0] }
 0x3df   :  { %v8497_v15 = vor.u32 %v9239_v38, %v8494_v8 }
 0x3e0   :  { %5634 = vmatpush.bf16.msra.mxu3 %v8465_v14 }
 0x3e2   :  { %5672 = vmatpush.bf16.msrb.mxu2 %v8541_v22  ;;  %v9264_v22 = vld [vmem:[#allocation11 + $0xec] sm:$0xf0] }
 0x3e4   :  { %5685 = vmatpush.bf16.msrb.mxu3 %v8545_v23  ;;  %v8508_v23 = vld [vmem:[#allocation11 + $0x38] sm:$0xf] }
 0x3e8   :  { %v4686_v25 = vpop.f32.mrf.mxu0 }
 0x3e9   :  { %v4687_v26 = vadd.f32 %v4686_v25, %v4674_v11  ;;  %v9260_v11 = vld [vmem:[#allocation11 + $0xcc] sm:$0xf0]  ;;  %v9252_v25 = vld [vmem:[#allocation11 + $0x94] sm:$0xf] }
 0x3ea   :  { %v4699_v27 = vpop.f32.mrf.mxu1  ;;  %v8533_v16 = vor.u32 %v9260_v11, %v8532_v34  ;;  %v8566_v34 = vld [vmem:[#allocation11 + $0xf0] sm:$0xf0] }
 0x3eb   :  { %v4700_v28 = vadd.f32 %v4699_v27, %v4687_v26  ;;  %v8534_v26 = vld [vmem:[#allocation11 + $0xd0] sm:$0xf0]  ;;  %v8476_v27 = vld [vmem:[#allocation11 + $0x18] sm:$0xf] }
 0x3ec   :  { %5646 = vmatpush.bf16.msrb.mxu0 %v8533_v16  ;;  %v9249_v16 = vld [vmem:[#allocation11 + $0x74] sm:$0xf0] }
 0x3f0   :  { %v4688_v33 = vpop.f32.mrf.mxu0 }
 0x3f1   :  { %v8537_v33 = vor.u32 %v9252_v25, %v8534_v26  ;;  %v8565_v25 = vor.u32 %v9264_v22, %v8564_v21  ;;  %v8569_v26 = vor.u32 %v9256_v36, %v8566_v34 }
 0x3f2   :  { %v4701_v61 = vpop.f32.mrf.mxu1  ;;  %v4712_v29 = vpop.f32.mrf.mxu2 }
 0x3f3   :  { %v4713_v3 = vadd.f32 %v4712_v29, %v4700_v28  ;;  %v9245_v61 = vld [vmem:[#allocation11 + $0x54] sm:$0xf0]  ;;  %v8478_v29 = vld [vmem:[#allocation11 + $0x58] sm:$0xf0]  ;;  %5659 = vmatpush.bf16.msrb.mxu1 %v8537_v33  ;;  %v8500_v33 = vld [vmem:[#allocation11 + $0x30] sm:$0xf] }
 0x3fa   :  { %v4714_v47 = vpop.f32.mrf.mxu2 }
 0x3fb   :  { %v9236_v47 = vld [vmem:[#allocation11 + $0x14] sm:$0xf] }
 0x408   :  { %v5254_v49 = vpop.f32.mrf.mxu0 }
 0x409   :  { %v5255_v31 = vadd.f32 %v9280_v51, %v5254_v49  ;;  %v9237_v51 = vld [vmem:[#allocation11 + $0x1c] sm:$0xf]  ;;  %v8477_v49 = vor.u32 %v9245_v61, %v8476_v27  ;;  %v9248_v61 = vld [vmem:[#allocation11 + $0x6c] sm:$0xf0] }
 0x40a   :  { %v5267_v30 = vpop.f32.mrf.mxu1  ;;  %v9241_v27 = vld [vmem:[#allocation11 + $0x3c] sm:$0xf] }
 0x40b   :  { %v5268_v50 = vadd.f32 %v5267_v30, %v5255_v31  ;;  %v8481_v30 = vor.u32 %v9237_v51, %v8478_v29  ;;  %v8468_v31 = vld [vmem:[#allocation11 + $0x10] sm:$0xf]  ;;  %5673 = vmatpush.bf16.msrb.mxu2 %v8477_v49  ;;  %v9240_v51 = vld [vmem:[#allocation11 + $0x34] sm:$0xf]  ;;  %v8509_v49 = vor.u32 %v9249_v16, %v8508_v23 }
 0x40c   :  { %v8502_v29 = vld [vmem:[#allocation11 + $0x70] sm:$0xf0] }
 0x40d   :  { %5686 = vmatpush.bf16.msrb.mxu3 %v8481_v30 }
 0x410   :  { %v5256_v54 = vpop.f32.mrf.mxu0 }
 0x412   :  { %v5269_v46 = vpop.f32.mrf.mxu1  ;;  %v5280_v42 = vpop.f32.mrf.mxu2 }
 0x413   :  { %v5281_v39 = vadd.f32 %v5280_v42, %v5268_v50  ;;  %v9244_v50 = vld [vmem:[#allocation11 + $0x4c] sm:$0xf0]  ;;  %v8470_v46 = vld [vmem:[#allocation11 + $0x50] sm:$0xf0] }
 0x414   :  { %v8469_v54 = vor.u32 %v9244_v50, %v8468_v31  ;;  %v8501_v31 = vor.u32 %v9248_v61, %v8500_v33  ;;  %v8505_v50 = vor.u32 %v9240_v51, %v8502_v29 }
 0x416   :  { %5647 = vmatpush.bf16.msrb.mxu0 %v8469_v54 }
 0x41a   :  { %v5282_v43 = vpop.f32.mrf.mxu2 }
 0x428   :  { %v5306_v44 = vpop.f32.mrf.mxu0 }
 0x42a   :  { %v10178_v4 = vpop.f32.mrf.mxu1 }
 0x430   :  { %v5308_v58 = vpop.f32.mrf.mxu0 }
 0x432   :  { %v10180_v45 = vpop.f32.mrf.mxu2  ;;  %v5321_v48 = vpop.f32.mrf.mxu1 }
 0x43a   :  { %v5334_v52 = vpop.f32.mrf.mxu2 }
 0x43e   :  { %v4725_v53 = vpop.f32.mrf.mxu3 }
 0x43f   :  { %v10182_v55 = vadd.f32 %v4725_v53, %v4713_v3  ;;  %v5349_v53 = vld [vmem:[#allocation10] sm:$0x3] }
 0x441   :  { %5848 = vst.msk [vmem:[#allocation14] sm:$0x3] %vm5847_vm0, %v10182_v55 }
 0x442   :  { %5862 = dma.vmem_to_hbm [thread:$0]  %s5858_s16, 32, %s5860_s3, [#allocation4]  }
 0x446   :  { %v4727_v56 = vpop.f32.mrf.mxu3 }
 0x44e   :  { %v5293_v1 = vpop.f32.mrf.mxu3 }
 0x44f   :  { %v5294_v18 = vadd.f32 %v5293_v1, %v5281_v39  ;;  %v8473_v39 = vor.u32 %v9236_v47, %v8470_v46  ;;  %v9247_v1 = vld [vmem:[#allocation11 + $0x64] sm:$0xf0]  ;;  %v5388_v47 = vld [vmem:[#allocation13] sm:$0xff] }
 0x450   :  { %v8493_v14 = vor.u32 %v9247_v1, %v8492_v5  ;;  %v5393_v46 = vperm.slane %v5388_v47, 1  ;;  %v5398_v1 = vperm.slane %v5388_v47, 6 }
 0x451   :  { %v5307_v41 = vadd.f32 %v5306_v44, %v5294_v18  ;;  %5660 = vmatpush.bf16.msrb.mxu1 %v8473_v39  ;;  %v8572_v18 = vld [vmem:[#allocation11 + $0xb8] sm:$0xf] }
 0x452   :  { %v8573_v11 = vor.u32 %v9265_v19, %v8572_v18 }
 0x453   :  { %v5320_v42 = vadd.f32 %v10178_v4, %v5307_v41  ;;  %v9263_v4 = vld [vmem:[#allocation11 + $0xe4] sm:$0xf0]  ;;  %v8577_v41 = vor.u32 %v9257_v12, %v8574_v20 }
 0x454   :  { %v8557_v0 = vor.u32 %v9263_v4, %v8556_v57  ;;  %v5389_v20 = vld [vmem:[#allocation13 + $0x8] sm:$0xff] }
 0x455   :  { %v5333_v43 = vadd.f32 %v10180_v45, %v5320_v42  ;;  %v9254_v45 = vld [vmem:[#allocation11 + $0xa4] sm:$0xf]  ;;  %v5401_v34 = vperm.slane %v5389_v20, 1  ;;  %v5402_v23 = vperm.slane %v5389_v20, 2  ;;  %v5403_v16 = vperm.slane %v5389_v20, 3 }
 0x456   :  { %v5295_v28 = vpop.f32.mrf.mxu3  ;;  %v8553_v6 = vor.u32 %v9254_v45, %v8550_v40 }
 0x457   :  { %v8510_v28 = vld [vmem:[#allocation11 + $0x78] sm:$0xf0] }
 0x458   :  { %v8513_v30 = vor.u32 %v9241_v27, %v8510_v28 }
 0x45e   :  { %v5345_v44 = vpop.f32.mrf.mxu3 }
 0x45f   :  { %v5346_v58 = vadd.f32 %v5345_v44, %v5333_v43  ;;  %v5394_v43 = vperm.slane %v5388_v47, 2  ;;  %v5395_v44 = vperm.slane %v5388_v47, 3 }
 0x461   :  { %v5350_v48 = vmul.f32 0.5, %v5346_v58  ;;  %5849 = vst.msk [vmem:[#allocation15] sm:$0x3] %vm5847_vm0, %v5346_v58  ;;  %v5392_v58 = vperm.slane %v5388_v47, 0 }
 0x462   :  { %5873 = dma.vmem_to_hbm [thread:$0]  %s5869_s9, 32, %s5871_s0, [#allocation16]  }
 0x463   :  { %v5351_v52 = vmul.f32 1.442695, %v5350_v48 }
 0x465   :  { %9281 = vpow2.f32 %v5351_v52 }
 0x466   :  { %v5347_v3 = vpop.f32.mrf.mxu3 }
 0x46b   :  { %v9282_v56 = vpop.eup %9281 }
 0x46c   :  { %v5353_v7 = vmul.f32 %v9282_v56, %v5349_v53 }
 0x46e   :  { %v5354_v62 = vadd.f32 %v5353_v7, %v10182_v55  ;;  %v9246_v55 = vld [vmem:[#allocation11 + $0x5c] sm:$0xf0] }
 0x46f   :  { %v8485_v17 = vor.u32 %v9246_v55, %v8484_v10 }
 0x470   :  { %v10190_v63 = vpack.c.bf16 %v5354_v62, %v5354_v62 }
 0x472   :  { %8578 = vmatmul.msk.bf16.vlgmr.msra.gmra.mxu0 %vm5584_vm1, %v10190_v63  ;;  %8579 = vmatmul.msk.bf16.vlgmr.msra.gmra.mxu1 %vm5584_vm1, %v10190_v63 }
 0x473   :  { %8580 = vmatmul.msk.bf16.vlgmr.msra.gmra.mxu2 %vm5584_vm1, %v10190_v63  ;;  %8581 = vmatmul.msk.bf16.vlgmr.msra.gmra.mxu3 %vm5584_vm1, %v10190_v63 }
 0x474   :  { %5724 = vmatpush.bf16.msra.mxu2 %v8557_v0  ;;  %5737 = vmatpush.bf16.msra.mxu3 %v8561_v2  ;;  %v5397_v0 = vperm.slane %v5388_v47, 5 }
 0x475   :  { %5698 = vmatpush.bf16.msra.mxu0 %v8549_v24  ;;  %5711 = vmatpush.bf16.msra.mxu1 %v8553_v6  ;;  %v5399_v24 = vperm.slane %v5388_v47, 7  ;;  %v5396_v6 = vperm.slane %v5388_v47, 4 }
 0x478   :  { %5725 = vmatpush.bf16.msra.mxu2 %v8493_v14  ;;  %5738 = vmatpush.bf16.msra.mxu3 %v8497_v15 }
 0x479   :  { %5699 = vmatpush.bf16.msra.mxu0 %v8485_v17  ;;  %5712 = vmatpush.bf16.msra.mxu1 %v8489_v35 }
 0x482   :  { %8582 = vmatmul.msk.bf16.vlgmr.msrb.gmra.mxu0 %vm5584_vm1, %v10190_v63  ;;  %8583 = vmatmul.msk.bf16.vlgmr.msrb.gmra.mxu1 %vm5584_vm1, %v10190_v63 }
 0x483   :  { %8584 = vmatmul.msk.bf16.vlgmr.msrb.gmra.mxu2 %vm5584_vm1, %v10190_v63  ;;  %8585 = vmatmul.msk.bf16.vlgmr.msrb.gmra.mxu3 %vm5584_vm1, %v10190_v63 }
 0x484   :  { %5776 = vmatpush.bf16.msrb.mxu2 %v8573_v11  ;;  %5789 = vmatpush.bf16.msrb.mxu3 %v8577_v41 }
 0x485   :  { %5750 = vmatpush.bf16.msrb.mxu0 %v8565_v25  ;;  %5763 = vmatpush.bf16.msrb.mxu1 %v8569_v26  ;;  %v5400_v25 = vperm.slane %v5389_v20, 0 }
 0x488   :  { %5777 = vmatpush.bf16.msrb.mxu2 %v8509_v49  ;;  %5790 = vmatpush.bf16.msrb.mxu3 %v8513_v30 }
 0x489   :  { %5751 = vmatpush.bf16.msrb.mxu0 %v8501_v31  ;;  %5764 = vmatpush.bf16.msrb.mxu1 %v8505_v50 }
 0x492   :  { %8586 = vmatmul.msk.bf16.vlgmr.msra.gmra.mxu0 %vm5584_vm1, %v10190_v63  ;;  %8587 = vmatmul.msk.bf16.vlgmr.msra.gmra.mxu1 %vm5584_vm1, %v10190_v63 }
 0x493   :  { %8588 = vmatmul.msk.bf16.vlgmr.msra.gmra.mxu2 %vm5584_vm1, %v10190_v63  ;;  %8589 = vmatmul.msk.bf16.vlgmr.msra.gmra.mxu3 %vm5584_vm1, %v10190_v63 }
 0x4a2   :  { %8590 = vmatmul.msk.bf16.vlgmr.msrb.gmra.mxu0 %vm5584_vm1, %v10190_v63  ;;  %8591 = vmatmul.msk.bf16.vlgmr.msrb.gmra.mxu1 %vm5584_vm1, %v10190_v63 }
 0x4a3   :  { %8592 = vmatmul.msk.bf16.vlgmr.msrb.gmra.mxu2 %vm5584_vm1, %v10190_v63  ;;  %8593 = vmatmul.msk.bf16.vlgmr.msrb.gmra.mxu3 %vm5584_vm1, %v10190_v63 }
 0x4ef   :  { %v5597_v54 = vpop.f32.mrf.mxu0  ;;  %v5610_v42 = vpop.f32.mrf.mxu1 }
 0x4f0   :  { %v5611_v39 = vadd.f32 %v5610_v42, %v5393_v46  ;;  %v5598_v4 = vadd.f32 %v5597_v54, %v5392_v58 }
 0x4f2   :  { %v5812_v3 = vrot.slane %v5611_v39, 6 }
 0x4f4   :  { %v5825_v37 = vsel %vm5824_vm2, %v5598_v4, %v5812_v3  ;;  %v5404_v3 = vperm.slane %v5389_v20, 4 }
 0x4f6   :  { %v5623_v48 = vpop.f32.mrf.mxu2  ;;  %v5636_v52 = vpop.f32.mrf.mxu3 }
 0x4f7   :  { %v5624_v53 = vadd.f32 %v5623_v48, %v5394_v43  ;;  %v5637_v56 = vadd.f32 %v5636_v52, %v5395_v44  ;;  %v5599_v7 = vpop.f32.mrf.mxu0  ;;  %v5612_v57 = vpop.f32.mrf.mxu1  ;;  %v5405_v43 = vperm.slane %v5389_v20, 5  ;;  %v5406_v48 = vperm.slane %v5389_v20, 6 }
 0x4f8   :  { %v5407_v52 = vperm.slane %v5389_v20, 7 }
 0x4f9   :  { %v5813_v59 = vrot.slane %v5624_v53, 4  ;;  %v5814_v60 = vrot.slane %v5637_v56, 2 }
 0x4fb   :  { %v5827_v62 = vsel %vm5826_vm3, %v5813_v59, %v5814_v60 }
 0x4fc   :  { %v5829_v32 = vsel %vm5828_vm4, %v5825_v37, %v5827_v62 }
 0x4fd   :  { %5843 = vst [vmem:[%s10264_s10] sm:$0xff] %v5829_v32 }
 0x4fe   :  { %v5625_v45 = vpop.f32.mrf.mxu2  ;;  %v5638_v40 = vpop.f32.mrf.mxu3 }
 0x4ff   :  { %v5649_v63 = vpop.f32.mrf.mxu0  ;;  %v5662_v2 = vpop.f32.mrf.mxu1 }
 0x500   :  { %v5663_v5 = vadd.f32 %v5662_v2, %v5397_v0  ;;  %v5650_v15 = vadd.f32 %v5649_v63, %v5396_v6 }
 0x502   :  { %v5815_v10 = vrot.slane %v5663_v5, 6 }
 0x504   :  { %v5830_v18 = vsel %vm5824_vm2, %v5650_v15, %v5815_v10 }
 0x506   :  { %v5675_v38 = vpop.f32.mrf.mxu2  ;;  %v5688_v8 = vpop.f32.mrf.mxu3 }
 0x507   :  { %v5676_v55 = vadd.f32 %v5675_v38, %v5398_v1  ;;  %v5689_v9 = vadd.f32 %v5688_v8, %v5399_v24  ;;  %v5651_v13 = vpop.f32.mrf.mxu0  ;;  %v5664_v14 = vpop.f32.mrf.mxu1 }
 0x509   :  { %v5816_v17 = vrot.slane %v5676_v55, 4  ;;  %v5817_v35 = vrot.slane %v5689_v9, 2 }
 0x50b   :  { %v5831_v19 = vsel %vm5826_vm3, %v5816_v17, %v5817_v35 }
 0x50c   :  { %v5832_v12 = vsel %vm5828_vm4, %v5830_v18, %v5831_v19 }
 0x50d   :  { %5844 = vst [vmem:[%s10264_s10 + $0x8] sm:$0xff] %v5832_v12 }
 0x50e   :  { %v5677_v21 = vpop.f32.mrf.mxu2  ;;  %v5690_v22 = vpop.f32.mrf.mxu3 }
 0x50f   :  { %v5701_v36 = vpop.f32.mrf.mxu0  ;;  %v5714_v11 = vpop.f32.mrf.mxu1 }
 0x510   :  { %v5715_v41 = vadd.f32 %v5714_v11, %v5401_v34  ;;  %v5702_v49 = vadd.f32 %v5701_v36, %v5400_v25 }
 0x512   :  { %v5818_v28 = vrot.slane %v5715_v41, 6 }
 0x514   :  { %v5833_v50 = vsel %vm5824_vm2, %v5702_v49, %v5818_v28 }
 0x516   :  { %v5727_v26 = vpop.f32.mrf.mxu2  ;;  %v5740_v27 = vpop.f32.mrf.mxu3 }
 0x517   :  { %v5728_v33 = vadd.f32 %v5727_v26, %v5402_v23  ;;  %v5741_v61 = vadd.f32 %v5740_v27, %v5403_v16  ;;  %v5703_v51 = vpop.f32.mrf.mxu0  ;;  %v5716_v29 = vpop.f32.mrf.mxu1 }
 0x519   :  { %v5819_v30 = vrot.slane %v5728_v33, 4  ;;  %v5820_v31 = vrot.slane %v5741_v61, 2 }
 0x51b   :  { %v5834_v47 = vsel %vm5826_vm3, %v5819_v30, %v5820_v31 }
 0x51c   :  { %v5835_v54 = vsel %vm5828_vm4, %v5833_v50, %v5834_v47 }
 0x51d   :  { %5845 = vst [vmem:[%s10264_s10 + $0x10] sm:$0xff] %v5835_v54 }
 0x51e   :  { %v5729_v46 = vpop.f32.mrf.mxu2  ;;  %v5742_v42 = vpop.f32.mrf.mxu3 }
 0x51f   :  { %v5753_v39 = vpop.f32.mrf.mxu0  ;;  %v5766_v44 = vpop.f32.mrf.mxu1 }
 0x520   :  { %v5767_v58 = vadd.f32 %v5766_v44, %v5405_v43  ;;  %v5754_v37 = vadd.f32 %v5753_v39, %v5404_v3 }
 0x522   :  { %v5821_v7 = vrot.slane %v5767_v58, 6 }
 0x524   :  { %v5836_v45 = vsel %vm5824_vm2, %v5754_v37, %v5821_v7 }
 0x526   :  { %v5779_v53 = vpop.f32.mrf.mxu2  ;;  %v5792_v56 = vpop.f32.mrf.mxu3 }
 0x527   :  { %v5780_v57 = vadd.f32 %v5779_v53, %v5406_v48  ;;  %v5793_v4 = vadd.f32 %v5792_v56, %v5407_v52  ;;  %v5755_v59 = vpop.f32.mrf.mxu0  ;;  %v5768_v60 = vpop.f32.mrf.mxu1 }
 0x529   :  { %v5822_v62 = vrot.slane %v5780_v57, 4  ;;  %v5823_v32 = vrot.slane %v5793_v4, 2 }
 0x52b   :  { %v5837_v40 = vsel %vm5826_vm3, %v5822_v62, %v5823_v32 }
 0x52c   :  { %v5838_v63 = vsel %vm5828_vm4, %v5836_v45, %v5837_v40 }
 0x52d   :  { %5846 = vst [vmem:[%s10264_s10 + $0x18] sm:$0xff] %v5838_v63 }
 0x52e   :  { %v5781_v0 = vpop.f32.mrf.mxu2  ;;  %v5794_v2 = vpop.f32.mrf.mxu3 }
 0x52f   :  { %9510 = dma.done.wait [#allocation4], 32  }
 0x530   :  { %9511 = vsyncadd [#allocation4], 4294967264 }
 0x531   :  { %9512 = dma.done.wait [#allocation16], 32  }
 0x532   :  { %9513 = vsyncadd [#allocation16], 4294967264 }
 0x533   :  { %5884 = vsyncpa [#allocation3], 1 }
 0x534   :  { %5885 = vsyncpa [#allocation6], 1 }
 0x535   :  { %5886 = vsyncpa [#allocation9], 1 }
 0x536   :  { %5887 = vsyncpa [#allocation12], 1 }
 0x537   :  { %5888 = vsyncpa [#allocation4], 1 }
 0x538   :  { %5889 = vsyncpa [#allocation16], 1 }

</bundles_post_ra>
